<compile_context>
chip_gen: v6e
topology: v6e:2x2x1
jax: 0.10.0
libtpu: 0.0.40
codegen_flags: <defaults>
</compile_context>

<pallas_src>
import numpy as np
import jax
import jax.numpy as jnp
from jax.experimental import pallas as pl
from jax.experimental.pallas import tpu as pltpu

# ----------------------- config (mirrors CFG.diffEEG_trainer) ----------------
B = 2
N_CLASSES = 4
N_CHANNELS = 4
HIDDEN = 32
DILATIONS = (1, 2, 4, 8)

FREQ = 9          # spectrogram freq bins
T_SPEC = 1        # spectrogram time bins
# ConvTranspose2d(k=3, s=2, p=1): out = 2*in - 1
F2, TS2 = 2 * FREQ - 1, 2 * T_SPEC - 1
F3, TS3 = 2 * F2 - 1, 2 * TS2 - 1
T = F3 * TS3      # x time dim must equal flattened spectrogram map (= 33)

S0 = FREQ * T_SPEC        # 9   upconv1 input spatial size
S1 = F2 * TS2             # 17  upconv1 output spatial size
S2 = F3 * TS3             # 33  upconv2 output spatial size
C0 = N_CHANNELS
C1 = HIDDEN // 2
C2 = HIDDEN

PAD = 8                   # >= max dilation
TB = 48                   # per-batch row stride (multiple of 8, >= T + PAD)
R = B * TB                # stacked activation rows (96)
TPAD_S = PAD + R + PAD    # padded dilation-scratch rows (112)

assert TB % 8 == 0 and TB >= T + PAD and PAD >= max(DILATIONS) and T == S2


# ----------------------------- Pallas kernel ----------------------------------
def diffeeg_kernel(x_ref, sin_ref, oh_ref, spec_ref,
                   bd1_ref, w1t_ref, b1_ref, bd2_ref, w2t_ref, b2_ref, we_ref,
                   sel_ref, smallw_ref, smallb_ref, resw_ref, resb_ref,
                   ow2_ref, ob2_ref,
                   out_ref, pad_ref):
    """Whole DiffEEG forward for the full (batch-folded) problem, one launch."""
    f32 = jnp.float32
    H = HIDDEN

    # --- spectrogram conditioner: ConvT2d -> ReLU -> ConvT2d -> ReLU -> 1x1 ---
    # Per-tap factored transposed convs:  out = sum_k Spread_k @ (in @ W_k).
    # Spread matrices are block-diagonal over the batch; layer-2 spreads place
    # each sample's 33 output rows at its TB-strided slot, so `cond` lands
    # directly in the stacked (R, H) row layout.
    sp = spec_ref[...]                                                # (B*S0, C0)
    t1 = None
    for k in range(bd1_ref.shape[0]):
        u = jnp.dot(sp, w1t_ref[k], preferred_element_type=f32)      # (B*S0, C1)
        u = jnp.dot(bd1_ref[k], u, preferred_element_type=f32)       # (B*S1, C1)
        t1 = u if t1 is None else t1 + u
    h1 = jnp.maximum(t1 + b1_ref[...], 0.0)                          # (B*S1, C1)

    t2 = None
    for k in range(bd2_ref.shape[0]):
        u = jnp.dot(h1, w2t_ref[k], preferred_element_type=f32)      # (B*S1, C2)
        u = jnp.dot(bd2_ref[k], u, preferred_element_type=f32)       # (R, C2)
        t2 = u if t2 is None else t2 + u
    g2 = jnp.maximum(t2 + b2_ref[...], 0.0)                          # (R, C2); pad rows unused
    # 1x1 embed conv against the raw (32,32) weight; embed bias is folded into
    # the input-conv bias host-side.
    cond = jnp.dot(g2, we_ref[...], preferred_element_type=f32)      # (R, H)

    # --- diffusion-step MLP: Linear -> ReLU -> Linear -> ReLU -> Linear ---
    s = sin_ref[...]                                                  # (B, H)
    for j in range(3):
        s = (jnp.dot(s, smallw_ref[pl.ds(j * H, H), :], preferred_element_type=f32)
             + smallb_ref[pl.ds(j, 1), :])
        if j < 2:
            s = jnp.maximum(s, 0.0)

    # --- class embedding as one-hot @ table ---
    cls = jnp.dot(oh_ref[...], smallw_ref[pl.ds(3 * H, N_CLASSES), :],
                  preferred_element_type=f32)                         # (B, H)

    # broadcast per-sample (step + class) rows onto their TB-strided data rows
    bc = jnp.dot(sel_ref[...], s + cls, preferred_element_type=f32)   # (R, H)

    # --- input 1x1 conv + conditional additions ---
    z = (jnp.dot(x_ref[...], smallw_ref[pl.ds(3 * H + N_CLASSES, N_CHANNELS), :],
                 preferred_element_type=f32)
         + smallb_ref[pl.ds(3, 1), :] + bc + cond)                    # (R, H)

    # --- 4 GTU residual blocks ---
    pad_ref[...] = jnp.zeros_like(pad_ref)   # once per call (single grid step)
    v = z
    skip = None
    for i, d in enumerate(DILATIONS):
        w_blk = resw_ref[i]                                           # (5H, H)
        b_blk = resb_ref[i]                                           # (3, H)
        # Conv1d(1x1) -> Tanh
        a = jnp.tanh(jnp.dot(v, w_blk[0:H, :], preferred_element_type=f32)
                     + b_blk[0:1, :])
        # dilated Conv1d(k=3, dilation=d, padding=d): only data rows are copied
        # into the zero-padded scratch, so shifts never cross sample boundaries.
        for b in range(B):
            pad_ref[pl.ds(PAD + b * TB, T), :] = a[b * TB:b * TB + T, :]
        a_m = pad_ref[pl.ds(PAD - d, R), :]                           # a[t-d]
        a_p = pad_ref[pl.ds(PAD + d, R), :]                           # a[t+d]
        pre = (jnp.dot(a_m, w_blk[H:2 * H, :], preferred_element_type=f32)
               + jnp.dot(a, w_blk[2 * H:3 * H, :], preferred_element_type=f32)
               + jnp.dot(a_p, w_blk[3 * H:4 * H, :], preferred_element_type=f32)
               + b_blk[1:2, :])
        g = 0.5 * (jnp.tanh(0.5 * pre) + 1.0)                         # Sigmoid via EUP tanh
        # Conv1d(1x1); nn.Dropout is identity in eval mode
        # TODO(synk): stochastic (train-mode) dropout intentionally omitted.
        v = (jnp.dot(g, w_blk[4 * H:5 * H, :], preferred_element_type=f32)
             + b_blk[2:3, :])
        skip = v if skip is None else skip + v

    # --- skip-sum conv fused with output conv (no nonlinearity between) ---
    out_ref[...] = jnp.dot(skip, ow2_ref[...], preferred_element_type=f32) + ob2_ref[...]


# ----------------------------- pallas_call wrapper -----------------------------
def _full_spec(shape):
    shape = tuple(int(d) for d in shape)
    n = len(shape)
    return pl.BlockSpec(shape, lambda i, _n=n: (0,) * _n)


def diffeeg_pallas(x_all, sin_emb, onehot, spec_all, kp):
    args = (x_all, sin_emb, onehot, spec_all,
            kp["bd1"], kp["w1t"], kp["b1"], kp["bd2"], kp["w2t"], kp["b2"], kp["we"],
            kp["selB"], kp["small_w"], kp["small_b"], kp["res_w"], kp["res_b"],
            kp["ow2"], kp["ob2"])
    return pl.pallas_call(
        diffeeg_kernel,
        out_shape=jax.ShapeDtypeStruct((R, N_CHANNELS), jnp.float32),
        grid=(1,),
        in_specs=[_full_spec(a.shape) for a in args],
        out_specs=_full_spec((R, N_CHANNELS)),
        scratch_shapes=[pltpu.VMEM((TPAD_S, HIDDEN), jnp.float32)],
        compiler_params=pltpu.CompilerParams(dimension_semantics=("arbitrary",)),
    )(*args)


# ----------------------------- parameters (PyTorch layouts) -------------------
def init_params(key):
    ks = iter(jax.random.split(key, 64))

    def nrm(shape, scale=0.1):
        return (scale * jax.random.normal(next(ks), shape)).astype(jnp.float32)

    p = {"emb_table": nrm((N_CLASSES, HIDDEN))}
    for i in range(3):
        p[f"mlp_w{i}"] = nrm((HIDDEN, HIDDEN))
        p[f"mlp_b{i}"] = nrm((HIDDEN,))
    p["up1_w"] = nrm((N_CHANNELS, HIDDEN // 2, 3, 3)); p["up1_b"] = nrm((HIDDEN // 2,))
    p["up2_w"] = nrm((HIDDEN // 2, HIDDEN, 3, 3));     p["up2_b"] = nrm((HIDDEN,))
    p["embed_w"] = nrm((HIDDEN, HIDDEN, 1, 1));        p["embed_b"] = nrm((HIDDEN,))
    p["in_w"] = nrm((HIDDEN, N_CHANNELS, 1));          p["in_b"] = nrm((HIDDEN,))
    for i in range(4):
        p[f"r{i}_w1"] = nrm((HIDDEN, HIDDEN, 1)); p[f"r{i}_b1"] = nrm((HIDDEN,))
        p[f"r{i}_wd"] = nrm((HIDDEN, HIDDEN, 3)); p[f"r{i}_bd"] = nrm((HIDDEN,))
        p[f"r{i}_w2"] = nrm((HIDDEN, HIDDEN, 1)); p[f"r{i}_b2"] = nrm((HIDDEN,))
    p["skip_w"] = nrm((HIDDEN, HIDDEN, 1));            p["skip_b"] = nrm((HIDDEN,))
    p["out_w"] = nrm((N_CHANNELS, HIDDEN, 1));         p["out_b"] = nrm((N_CHANNELS,))
    return p


def build_spread(Hin, Win, Hout, Wout):
    """(9, Hout*Wout, Hin*Win) per-tap spatial spreading matrices for
    ConvTranspose2d(k=3, stride=2, padding=1)."""
    S = np.zeros((9, Hout * Wout, Hin * Win), np.float32)
    for kh in range(3):
        for kw in range(3):
            k = kh * 3 + kw
            for ih in range(Hin):
                oi = 2 * ih + kh - 1
                if oi < 0 or oi >= Hout:
                    continue
                for iw in range(Win):
                    oj = 2 * iw + kw - 1
                    if oj < 0 or oj >= Wout:
                        continue
                    S[k, oi * Wout + oj, ih * Win + iw] = 1.0
    return S


def kernel_params(p):
    kp = {}
    # ---- spectrogram path: per-tap spread + channel-mix operators ----
    s1 = build_spread(FREQ, T_SPEC, F2, TS2)                   # (9, S1, S0)
    s2 = build_spread(F2, TS2, F3, TS3)                        # (9, S2, S1)
    w1 = np.transpose(np.asarray(p["up1_w"]), (2, 3, 0, 1)).reshape(9, C0, C1)
    w2 = np.transpose(np.asarray(p["up2_w"]), (2, 3, 0, 1)).reshape(9, C1, C2)
    keep1 = [k for k in range(9) if s1[k].any()]               # prune all-zero taps
    keep2 = [k for k in range(9) if s2[k].any()]
    # block-diagonal over batch; layer-2 output rows placed at TB stride
    bd1 = np.zeros((len(keep1), B * S1, B * S0), np.float32)
    for t, k in enumerate(keep1):
        for b in range(B):
            bd1[t, b * S1:(b + 1) * S1, b * S0:(b + 1) * S0] = s1[k]
    bd2 = np.zeros((len(keep2), B * TB, B * S1), np.float32)
    for t, k in enumerate(keep2):
        for b in range(B):
            bd2[t, b * TB:b * TB + S2, b * S1:(b + 1) * S1] = s2[k]
    kp["bd1"] = jnp.asarray(bd1)
    kp["w1t"] = jnp.asarray(w1[keep1])                         # (n1, C0, C1)
    kp["bd2"] = jnp.asarray(bd2)
    kp["w2t"] = jnp.asarray(w2[keep2])                         # (n2, C1, C2)
    kp["b1"] = p["up1_b"][None, :]                             # (1, C1)
    kp["b2"] = p["up2_b"][None, :]                             # (1, C2)
    kp["we"] = p["embed_w"][:, :, 0, 0].T                      # (H, H)

    # ---- packed small 1x1 / linear weights ----
    kp["small_w"] = jnp.concatenate(
        [p["mlp_w0"].T, p["mlp_w1"].T, p["mlp_w2"].T,
         p["emb_table"], p["in_w"][:, :, 0].T], axis=0)        # (3H+n_cls+n_ch, H)
    kp["small_b"] = jnp.stack(
        [p["mlp_b0"], p["mlp_b1"], p["mlp_b2"],
         p["in_b"] + p["embed_b"]], axis=0)                    # (4, H)  (embed bias folded)

    # ---- packed residual-block weights: [rw1 | wd0 | wd1 | wd2 | rw2] ----
    kp["res_w"] = jnp.stack([
        jnp.concatenate([p[f"r{i}_w1"][:, :, 0].T,
                         p[f"r{i}_wd"][:, :, 0].T,
                         p[f"r{i}_wd"][:, :, 1].T,
                         p[f"r{i}_wd"][:, :, 2].T,
                         p[f"r{i}_w2"][:, :, 0].T], axis=0)
        for i in range(4)])                                    # (4, 5H, H)
    kp["res_b"] = jnp.stack([
        jnp.stack([p[f"r{i}_b1"], p[f"r{i}_bd"], p[f"r{i}_b2"]], axis=0)
        for i in range(4)])                                    # (4, 3, H)

    # ---- skip conv composed with output conv (exact: no nonlinearity between) ----
    skw = p["skip_w"][:, :, 0].T                               # (H, H)
    ow = p["out_w"][:, :, 0].T                                 # (H, C)
    kp["ow2"] = skw @ ow                                       # (H, C)
    kp["ob2"] = p["skip_b"][None, :] @ ow + p["out_b"][None, :]  # (1, C)

    # ---- batch -> stacked-row broadcast selector (data rows only) ----
    sel = np.zeros((R, B), np.float32)
    for b in range(B):
        sel[b * TB:b * TB + T, b] = 1.0
    kp["selB"] = jnp.asarray(sel)                              # (R, B)
    return kp


# ----------------------------- full forward (glue + kernel) -------------------
def diffeeg_forward(kp, x, class_label, diffusion_step, spectrogram):
    Bn = x.shape[0]
    assert Bn == B and x.shape[2] == T and spectrogram.shape[2:] == (FREQ, T_SPEC)
    half = HIDDEN // 2
    # sinusoidal positional encoding of the diffusion step (parameter-free glue)
    freqs = jnp.exp(jnp.arange(half, dtype=jnp.float32) * (-np.log(10000.0) / (half - 1)))
    emb = diffusion_step.astype(jnp.float32) * freqs[None, :]
    sin_emb = jnp.concatenate([jnp.sin(emb), jnp.cos(emb)], axis=-1)          # (B, H)
    # class_label.argmax(dim=1) -> embedding lookup; re-one-hot so the kernel can matmul
    labels = jnp.argmax(class_label, axis=1)
    onehot = jax.nn.one_hot(labels, N_CLASSES, dtype=jnp.float32)             # (B, n_cls)

    # spectrogram to (B*S0, C) in (spatial-major, channel-minor) order
    # TODO(synk): spatial flattening assumes the ConvT output width stays TS*2-1
    #             as in the module config (T_SPEC=1 here).
    spec_t = jnp.transpose(spectrogram.reshape(Bn, N_CHANNELS, S0), (0, 2, 1))
    spec_all = spec_t.reshape(Bn * S0, N_CHANNELS)

    # x to stacked rows (B*TB, C) with zero pad rows between samples
    x_t = jnp.transpose(x, (0, 2, 1))                                         # (B, T, C)
    x_pad = jnp.pad(x_t, ((0, 0), (0, TB - T), (0, 0)))                       # (B, TB, C)
    x_all = x_pad.reshape(Bn * TB, N_CHANNELS)

    out_all = diffeeg_pallas(x_all, sin_emb, onehot, spec_all, kp)            # (R, C)
    out = out_all.reshape(Bn, TB, N_CHANNELS)[:, :T, :]                       # (B, T, C)
    return jnp.transpose(out, (0, 2, 1))                                      # (B, C, T)


# ----------------------------- pure-JAX reference -----------------------------
def _convT2d_ref(x, w, b):
    wf = jnp.transpose(jnp.flip(w, axis=(2, 3)), (1, 0, 2, 3))
    out = jax.lax.conv_general_dilated(
        x, wf, window_strides=(1, 1), padding=((1, 1), (1, 1)),
        lhs_dilation=(2, 2), dimension_numbers=("NCHW", "OIHW", "NCHW"))
    return out + b[None, :, None, None]


def reference_forward(p, x, class_label, diffusion_step, spectrogram):
    Bn = x.shape[0]
    half = HIDDEN // 2
    freqs = jnp.exp(jnp.arange(half, dtype=jnp.float32) * (-np.log(10000.0) / (half - 1)))
    emb = diffusion_step * freqs[None, :]
    s = jnp.concatenate([jnp.sin(emb), jnp.cos(emb)], axis=-1)
    for i in range(3):
        s = s @ p[f"mlp_w{i}"].T + p[f"mlp_b{i}"]
        if i < 2:
            s = jax.nn.relu(s)
    cls = p["emb_table"][jnp.argmax(class_label, axis=1)]
    sp = jax.nn.relu(_convT2d_ref(spectrogram, p["up1_w"], p["up1_b"]))
    sp = jax.nn.relu(_convT2d_ref(sp, p["up2_w"], p["up2_b"]))
    sp = jnp.einsum("oc,bchw->bohw", p["embed_w"][:, :, 0, 0], sp) + p["embed_b"][None, :, None, None]
    sp = sp.reshape(Bn, HIDDEN, -1)
    z = jnp.einsum("oc,bct->bot", p["in_w"][:, :, 0], x) + p["in_b"][None, :, None]
    z = z + s[:, :, None] + cls[:, :, None] + sp

    def rb(v, i):
        a = jnp.tanh(jnp.einsum("oc,bct->bot", p[f"r{i}_w1"][:, :, 0], v) + p[f"r{i}_b1"][None, :, None])
        d = DILATIONS[i]
        g = jax.lax.conv_general_dilated(
            a, p[f"r{i}_wd"], window_strides=(1,), padding=((d, d),),
            rhs_dilation=(d,), dimension_numbers=("NCH", "OIH", "NCH"))
        g = jax.nn.sigmoid(g + p[f"r{i}_bd"][None, :, None])
        return jnp.einsum("oc,bct->bot", p[f"r{i}_w2"][:, :, 0], g) + p[f"r{i}_b2"][None, :, None]

    x1 = rb(z, 0); x2 = rb(x1, 1); x3 = rb(x2, 2); x4 = rb(x3, 3)
    y = jnp.einsum("oc,bct->bot", p["skip_w"][:, :, 0], x1 + x2 + x3 + x4) + p["skip_b"][None, :, None]
    return jnp.einsum("oc,bct->bot", p["out_w"][:, :, 0], y) + p["out_b"][None, :, None]


# ----------------------------- main -------------------------------------------
if __name__ == "__main__":
    key = jax.random.PRNGKey(0)
    kx, kc, kd, ks, kparam = jax.random.split(key, 5)
    params = init_params(kparam)
    kp = kernel_params(params)

    x = jax.random.normal(kx, (B, N_CHANNELS, T), dtype=jnp.float32)
    labels = jax.random.randint(kc, (B,), 0, N_CLASSES)
    class_label = jax.nn.one_hot(labels, N_CLASSES, dtype=jnp.float32)           # (B, n_classes)
    diffusion_step = jax.random.uniform(kd, (B, 1), dtype=jnp.float32, minval=0.0, maxval=50.0)
    spectrogram = jax.random.normal(ks, (B, N_CHANNELS, FREQ, T_SPEC), dtype=jnp.float32)

    out = diffeeg_forward(kp, x, class_label, diffusion_step, spectrogram)
    out = jax.block_until_ready(out)

    ref = reference_forward(params, x, class_label, diffusion_step, spectrogram)
    np.testing.assert_allclose(np.asarray(out), np.asarray(ref), atol=2e-3, rtol=2e-3)
    print("KERNEL_OK")
</pallas_src>

<mosaic_0001>
module attributes {stable_mosaic.version = 11 : i64} {
  func.func @diffeeg_kernel(%arg0: i32, %arg1: memref<96x4xf32, #tpu.memory_space<vmem>>, %arg2: memref<2x32xf32, #tpu.memory_space<vmem>>, %arg3: memref<2x4xf32, #tpu.memory_space<vmem>>, %arg4: memref<18x4xf32, #tpu.memory_space<vmem>>, %arg5: memref<3x34x18xf32, #tpu.memory_space<vmem>>, %arg6: memref<3x4x16xf32, #tpu.memory_space<vmem>>, %arg7: memref<1x16xf32, #tpu.memory_space<vmem>>, %arg8: memref<3x96x34xf32, #tpu.memory_space<vmem>>, %arg9: memref<3x16x32xf32, #tpu.memory_space<vmem>>, %arg10: memref<1x32xf32, #tpu.memory_space<vmem>>, %arg11: memref<32x32xf32, #tpu.memory_space<vmem>>, %arg12: memref<96x2xf32, #tpu.memory_space<vmem>>, %arg13: memref<104x32xf32, #tpu.memory_space<vmem>>, %arg14: memref<4x32xf32, #tpu.memory_space<vmem>>, %arg15: memref<4x160x32xf32, #tpu.memory_space<vmem>>, %arg16: memref<4x3x32xf32, #tpu.memory_space<vmem>>, %arg17: memref<32x4xf32, #tpu.memory_space<vmem>>, %arg18: memref<1x4xf32, #tpu.memory_space<vmem>>, %arg19: memref<96x4xf32, #tpu.memory_space<vmem>>, %arg20: memref<112x32xf32, #tpu.memory_space<vmem>>) attributes {dimension_semantics = [#tpu.dimension_semantics<arbitrary>], iteration_bounds = array<i64: 1>, scalar_prefetch = 0 : i64, scratch_operands = 1 : i64, tpu.core_type = #tpu.core_type<tc>, window_params = [{pipeline_mode = #tpu.pipeline_mode<synchronous>, transform_indices = @transform_0, window_bounds = array<i64: 96, 4>}, {pipeline_mode = #tpu.pipeline_mode<synchronous>, transform_indices = @transform_1, window_bounds = array<i64: 2, 32>}, {pipeline_mode = #tpu.pipeline_mode<synchronous>, transform_indices = @transform_2, window_bounds = array<i64: 2, 4>}, {pipeline_mode = #tpu.pipeline_mode<synchronous>, transform_indices = @transform_3, window_bounds = array<i64: 18, 4>}, {pipeline_mode = #tpu.pipeline_mode<synchronous>, transform_indices = @transform_4, window_bounds = array<i64: 3, 34, 18>}, {pipeline_mode = #tpu.pipeline_mode<synchronous>, transform_indices = @transform_5, window_bounds = array<i64: 3, 4, 16>}, {pipeline_mode = #tpu.pipeline_mode<synchronous>, transform_indices = @transform_6, window_bounds = array<i64: 1, 16>}, {pipeline_mode = #tpu.pipeline_mode<synchronous>, transform_indices = @transform_7, window_bounds = array<i64: 3, 96, 34>}, {pipeline_mode = #tpu.pipeline_mode<synchronous>, transform_indices = @transform_8, window_bounds = array<i64: 3, 16, 32>}, {pipeline_mode = #tpu.pipeline_mode<synchronous>, transform_indices = @transform_9, window_bounds = array<i64: 1, 32>}, {pipeline_mode = #tpu.pipeline_mode<synchronous>, transform_indices = @transform_10, window_bounds = array<i64: 32, 32>}, {pipeline_mode = #tpu.pipeline_mode<synchronous>, transform_indices = @transform_11, window_bounds = array<i64: 96, 2>}, {pipeline_mode = #tpu.pipeline_mode<synchronous>, transform_indices = @transform_12, window_bounds = array<i64: 104, 32>}, {pipeline_mode = #tpu.pipeline_mode<synchronous>, transform_indices = @transform_13, window_bounds = array<i64: 4, 32>}, {pipeline_mode = #tpu.pipeline_mode<synchronous>, transform_indices = @transform_14, window_bounds = array<i64: 4, 160, 32>}, {pipeline_mode = #tpu.pipeline_mode<synchronous>, transform_indices = @transform_15, window_bounds = array<i64: 4, 3, 32>}, {pipeline_mode = #tpu.pipeline_mode<synchronous>, transform_indices = @transform_16, window_bounds = array<i64: 32, 4>}, {pipeline_mode = #tpu.pipeline_mode<synchronous>, transform_indices = @transform_17, window_bounds = array<i64: 1, 4>}, {pipeline_mode = #tpu.pipeline_mode<synchronous>, transform_indices = @transform_18, window_bounds = array<i64: 96, 4>}]} {
    %c0 = arith.constant 0 : index
    %c0_0 = arith.constant 0 : index
    %0 = vector.load %arg4[%c0, %c0_0] : memref<18x4xf32, #tpu.memory_space<vmem>>, vector<18x4xf32>
    %c0_1 = arith.constant 0 : index
    %c0_2 = arith.constant 0 : index
    %c0_3 = arith.constant 0 : index
    %1 = vector.load %arg6[%c0_1, %c0_2, %c0_3] : memref<3x4x16xf32, #tpu.memory_space<vmem>>, vector<1x4x16xf32>
    %2 = vector.shape_cast %1 : vector<1x4x16xf32> to vector<4x16xf32>
    %cst = arith.constant dense<0.000000e+00> : vector<18x16xf32>
    %3 = tpu.matmul %0, %2, %cst {dimension_numbers = #tpu.dot_dimension_numbers<[1], [0], [0], [1], [0, 0, 1, 1], [], []>} : vector<18x4xf32>, vector<4x16xf32>, vector<18x16xf32> -> vector<18x16xf32>
    %c0_4 = arith.constant 0 : index
    %c0_5 = arith.constant 0 : index
    %c0_6 = arith.constant 0 : index
    %4 = vector.load %arg5[%c0_4, %c0_5, %c0_6] : memref<3x34x18xf32, #tpu.memory_space<vmem>>, vector<1x34x18xf32>
    %5 = vector.shape_cast %4 : vector<1x34x18xf32> to vector<34x18xf32>
    %cst_7 = arith.constant dense<0.000000e+00> : vector<34x16xf32>
    %6 = tpu.matmul %5, %3, %cst_7 {dimension_numbers = #tpu.dot_dimension_numbers<[1], [0], [0], [1], [0, 0, 1, 1], [], []>} : vector<34x18xf32>, vector<18x16xf32>, vector<34x16xf32> -> vector<34x16xf32>
    %c1 = arith.constant 1 : index
    %c0_8 = arith.constant 0 : index
    %c0_9 = arith.constant 0 : index
    %7 = vector.load %arg6[%c1, %c0_8, %c0_9] : memref<3x4x16xf32, #tpu.memory_space<vmem>>, vector<1x4x16xf32>
    %8 = vector.shape_cast %7 : vector<1x4x16xf32> to vector<4x16xf32>
    %cst_10 = arith.constant dense<0.000000e+00> : vector<18x16xf32>
    %9 = tpu.matmul %0, %8, %cst_10 {dimension_numbers = #tpu.dot_dimension_numbers<[1], [0], [0], [1], [0, 0, 1, 1], [], []>} : vector<18x4xf32>, vector<4x16xf32>, vector<18x16xf32> -> vector<18x16xf32>
    %c1_11 = arith.constant 1 : index
    %c0_12 = arith.constant 0 : index
    %c0_13 = arith.constant 0 : index
    %10 = vector.load %arg5[%c1_11, %c0_12, %c0_13] : memref<3x34x18xf32, #tpu.memory_space<vmem>>, vector<1x34x18xf32>
    %11 = vector.shape_cast %10 : vector<1x34x18xf32> to vector<34x18xf32>
    %cst_14 = arith.constant dense<0.000000e+00> : vector<34x16xf32>
    %12 = tpu.matmul %11, %9, %cst_14 {dimension_numbers = #tpu.dot_dimension_numbers<[1], [0], [0], [1], [0, 0, 1, 1], [], []>} : vector<34x18xf32>, vector<18x16xf32>, vector<34x16xf32> -> vector<34x16xf32>
    %13 = arith.addf %6, %12 : vector<34x16xf32>
    %c2 = arith.constant 2 : index
    %c0_15 = arith.constant 0 : index
    %c0_16 = arith.constant 0 : index
    %14 = vector.load %arg6[%c2, %c0_15, %c0_16] : memref<3x4x16xf32, #tpu.memory_space<vmem>>, vector<1x4x16xf32>
    %15 = vector.shape_cast %14 : vector<1x4x16xf32> to vector<4x16xf32>
    %cst_17 = arith.constant dense<0.000000e+00> : vector<18x16xf32>
    %16 = tpu.matmul %0, %15, %cst_17 {dimension_numbers = #tpu.dot_dimension_numbers<[1], [0], [0], [1], [0, 0, 1, 1], [], []>} : vector<18x4xf32>, vector<4x16xf32>, vector<18x16xf32> -> vector<18x16xf32>
    %c2_18 = arith.constant 2 : index
    %c0_19 = arith.constant 0 : index
    %c0_20 = arith.constant 0 : index
    %17 = vector.load %arg5[%c2_18, %c0_19, %c0_20] : memref<3x34x18xf32, #tpu.memory_space<vmem>>, vector<1x34x18xf32>
    %18 = vector.shape_cast %17 : vector<1x34x18xf32> to vector<34x18xf32>
    %cst_21 = arith.constant dense<0.000000e+00> : vector<34x16xf32>
    %19 = tpu.matmul %18, %16, %cst_21 {dimension_numbers = #tpu.dot_dimension_numbers<[1], [0], [0], [1], [0, 0, 1, 1], [], []>} : vector<34x18xf32>, vector<18x16xf32>, vector<34x16xf32> -> vector<34x16xf32>
    %20 = arith.addf %13, %19 : vector<34x16xf32>
    %c0_22 = arith.constant 0 : index
    %c0_23 = arith.constant 0 : index
    %21 = vector.load %arg7[%c0_22, %c0_23] : memref<1x16xf32, #tpu.memory_space<vmem>>, vector<1x16xf32>
    %22 = vector.broadcast %21 : vector<1x16xf32> to vector<34x16xf32>
    %23 = arith.addf %20, %22 : vector<34x16xf32>
    %cst_24 = arith.constant 0.000000e+00 : f32
    %24 = vector.broadcast %cst_24 : f32 to vector<34x16xf32>
    %25 = arith.maximumf %23, %24 : vector<34x16xf32>
    %c0_25 = arith.constant 0 : index
    %c0_26 = arith.constant 0 : index
    %c0_27 = arith.constant 0 : index
    %26 = vector.load %arg9[%c0_25, %c0_26, %c0_27] : memref<3x16x32xf32, #tpu.memory_space<vmem>>, vector<1x16x32xf32>
    %27 = vector.shape_cast %26 : vector<1x16x32xf32> to vector<16x32xf32>
    %cst_28 = arith.constant dense<0.000000e+00> : vector<34x32xf32>
    %28 = tpu.matmul %25, %27, %cst_28 {dimension_numbers = #tpu.dot_dimension_numbers<[1], [0], [0], [1], [0, 0, 1, 1], [], []>} : vector<34x16xf32>, vector<16x32xf32>, vector<34x32xf32> -> vector<34x32xf32>
    %c0_29 = arith.constant 0 : index
    %c0_30 = arith.constant 0 : index
    %c0_31 = arith.constant 0 : index
    %29 = vector.load %arg8[%c0_29, %c0_30, %c0_31] : memref<3x96x34xf32, #tpu.memory_space<vmem>>, vector<1x96x34xf32>
    %30 = vector.shape_cast %29 : vector<1x96x34xf32> to vector<96x34xf32>
    %cst_32 = arith.constant dense<0.000000e+00> : vector<96x32xf32>
    %31 = tpu.matmul %30, %28, %cst_32 {dimension_numbers = #tpu.dot_dimension_numbers<[1], [0], [0], [1], [0, 0, 1, 1], [], []>} : vector<96x34xf32>, vector<34x32xf32>, vector<96x32xf32> -> vector<96x32xf32>
    %c1_33 = arith.constant 1 : index
    %c0_34 = arith.constant 0 : index
    %c0_35 = arith.constant 0 : index
    %32 = vector.load %arg9[%c1_33, %c0_34, %c0_35] : memref<3x16x32xf32, #tpu.memory_space<vmem>>, vector<1x16x32xf32>
    %33 = vector.shape_cast %32 : vector<1x16x32xf32> to vector<16x32xf32>
    %cst_36 = arith.constant dense<0.000000e+00> : vector<34x32xf32>
    %34 = tpu.matmul %25, %33, %cst_36 {dimension_numbers = #tpu.dot_dimension_numbers<[1], [0], [0], [1], [0, 0, 1, 1], [], []>} : vector<34x16xf32>, vector<16x32xf32>, vector<34x32xf32> -> vector<34x32xf32>
    %c1_37 = arith.constant 1 : index
    %c0_38 = arith.constant 0 : index
    %c0_39 = arith.constant 0 : index
    %35 = vector.load %arg8[%c1_37, %c0_38, %c0_39] : memref<3x96x34xf32, #tpu.memory_space<vmem>>, vector<1x96x34xf32>
    %36 = vector.shape_cast %35 : vector<1x96x34xf32> to vector<96x34xf32>
    %cst_40 = arith.constant dense<0.000000e+00> : vector<96x32xf32>
    %37 = tpu.matmul %36, %34, %cst_40 {dimension_numbers = #tpu.dot_dimension_numbers<[1], [0], [0], [1], [0, 0, 1, 1], [], []>} : vector<96x34xf32>, vector<34x32xf32>, vector<96x32xf32> -> vector<96x32xf32>
    %38 = arith.addf %31, %37 : vector<96x32xf32>
    %c2_41 = arith.constant 2 : index
    %c0_42 = arith.constant 0 : index
    %c0_43 = arith.constant 0 : index
    %39 = vector.load %arg9[%c2_41, %c0_42, %c0_43] : memref<3x16x32xf32, #tpu.memory_space<vmem>>, vector<1x16x32xf32>
    %40 = vector.shape_cast %39 : vector<1x16x32xf32> to vector<16x32xf32>
    %cst_44 = arith.constant dense<0.000000e+00> : vector<34x32xf32>
    %41 = tpu.matmul %25, %40, %cst_44 {dimension_numbers = #tpu.dot_dimension_numbers<[1], [0], [0], [1], [0, 0, 1, 1], [], []>} : vector<34x16xf32>, vector<16x32xf32>, vector<34x32xf32> -> vector<34x32xf32>
    %c2_45 = arith.constant 2 : index
    %c0_46 = arith.constant 0 : index
    %c0_47 = arith.constant 0 : index
    %42 = vector.load %arg8[%c2_45, %c0_46, %c0_47] : memref<3x96x34xf32, #tpu.memory_space<vmem>>, vector<1x96x34xf32>
    %43 = vector.shape_cast %42 : vector<1x96x34xf32> to vector<96x34xf32>
    %cst_48 = arith.constant dense<0.000000e+00> : vector<96x32xf32>
    %44 = tpu.matmul %43, %41, %cst_48 {dimension_numbers = #tpu.dot_dimension_numbers<[1], [0], [0], [1], [0, 0, 1, 1], [], []>} : vector<96x34xf32>, vector<34x32xf32>, vector<96x32xf32> -> vector<96x32xf32>
    %45 = arith.addf %38, %44 : vector<96x32xf32>
    %c0_49 = arith.constant 0 : index
    %c0_50 = arith.constant 0 : index
    %46 = vector.load %arg10[%c0_49, %c0_50] : memref<1x32xf32, #tpu.memory_space<vmem>>, vector<1x32xf32>
    %47 = vector.broadcast %46 : vector<1x32xf32> to vector<96x32xf32>
    %48 = arith.addf %45, %47 : vector<96x32xf32>
    %cst_51 = arith.constant 0.000000e+00 : f32
    %49 = vector.broadcast %cst_51 : f32 to vector<96x32xf32>
    %50 = arith.maximumf %48, %49 : vector<96x32xf32>
    %c0_52 = arith.constant 0 : index
    %c0_53 = arith.constant 0 : index
    %51 = vector.load %arg11[%c0_52, %c0_53] : memref<32x32xf32, #tpu.memory_space<vmem>>, vector<32x32xf32>
    %cst_54 = arith.constant dense<0.000000e+00> : vector<96x32xf32>
    %52 = tpu.matmul %50, %51, %cst_54 {dimension_numbers = #tpu.dot_dimension_numbers<[1], [0], [0], [1], [0, 0, 1, 1], [], []>} : vector<96x32xf32>, vector<32x32xf32>, vector<96x32xf32> -> vector<96x32xf32>
    %c0_55 = arith.constant 0 : index
    %c0_56 = arith.constant 0 : index
    %53 = vector.load %arg2[%c0_55, %c0_56] : memref<2x32xf32, #tpu.memory_space<vmem>>, vector<2x32xf32>
    %c0_57 = arith.constant 0 : index
    %c0_58 = arith.constant 0 : index
    %54 = vector.load %arg13[%c0_57, %c0_58] : memref<104x32xf32, #tpu.memory_space<vmem>>, vector<32x32xf32>
    %cst_59 = arith.constant dense<0.000000e+00> : vector<2x32xf32>
    %55 = tpu.matmul %53, %54, %cst_59 {dimension_numbers = #tpu.dot_dimension_numbers<[1], [0], [0], [1], [0, 0, 1, 1], [], []>} : vector<2x32xf32>, vector<32x32xf32>, vector<2x32xf32> -> vector<2x32xf32>
    %c0_60 = arith.constant 0 : index
    %c0_61 = arith.constant 0 : index
    %56 = vector.load %arg14[%c0_60, %c0_61] : memref<4x32xf32, #tpu.memory_space<vmem>>, vector<1x32xf32>
    %57 = vector.broadcast %56 : vector<1x32xf32> to vector<2x32xf32>
    %58 = arith.addf %55, %57 : vector<2x32xf32>
    %cst_62 = arith.constant 0.000000e+00 : f32
    %59 = vector.broadcast %cst_62 : f32 to vector<2x32xf32>
    %60 = arith.maximumf %58, %59 : vector<2x32xf32>
    %c32 = arith.constant 32 : index
    %c0_63 = arith.constant 0 : index
    %61 = vector.load %arg13[%c32, %c0_63] : memref<104x32xf32, #tpu.memory_space<vmem>>, vector<32x32xf32>
    %cst_64 = arith.constant dense<0.000000e+00> : vector<2x32xf32>
    %62 = tpu.matmul %60, %61, %cst_64 {dimension_numbers = #tpu.dot_dimension_numbers<[1], [0], [0], [1], [0, 0, 1, 1], [], []>} : vector<2x32xf32>, vector<32x32xf32>, vector<2x32xf32> -> vector<2x32xf32>
    %c1_65 = arith.constant 1 : index
    %c0_66 = arith.constant 0 : index
    %63 = vector.load %arg14[%c1_65, %c0_66] : memref<4x32xf32, #tpu.memory_space<vmem>>, vector<1x32xf32>
    %64 = vector.broadcast %63 : vector<1x32xf32> to vector<2x32xf32>
    %65 = arith.addf %62, %64 : vector<2x32xf32>
    %cst_67 = arith.constant 0.000000e+00 : f32
    %66 = vector.broadcast %cst_67 : f32 to vector<2x32xf32>
    %67 = arith.maximumf %65, %66 : vector<2x32xf32>
    %c64 = arith.constant 64 : index
    %c0_68 = arith.constant 0 : index
    %68 = vector.load %arg13[%c64, %c0_68] : memref<104x32xf32, #tpu.memory_space<vmem>>, vector<32x32xf32>
    %cst_69 = arith.constant dense<0.000000e+00> : vector<2x32xf32>
    %69 = tpu.matmul %67, %68, %cst_69 {dimension_numbers = #tpu.dot_dimension_numbers<[1], [0], [0], [1], [0, 0, 1, 1], [], []>} : vector<2x32xf32>, vector<32x32xf32>, vector<2x32xf32> -> vector<2x32xf32>
    %c2_70 = arith.constant 2 : index
    %c0_71 = arith.constant 0 : index
    %70 = vector.load %arg14[%c2_70, %c0_71] : memref<4x32xf32, #tpu.memory_space<vmem>>, vector<1x32xf32>
    %71 = vector.broadcast %70 : vector<1x32xf32> to vector<2x32xf32>
    %72 = arith.addf %69, %71 : vector<2x32xf32>
    %c0_72 = arith.constant 0 : index
    %c0_73 = arith.constant 0 : index
    %73 = vector.load %arg3[%c0_72, %c0_73] : memref<2x4xf32, #tpu.memory_space<vmem>>, vector<2x4xf32>
    %c96 = arith.constant 96 : index
    %c0_74 = arith.constant 0 : index
    %74 = vector.load %arg13[%c96, %c0_74] : memref<104x32xf32, #tpu.memory_space<vmem>>, vector<4x32xf32>
    %cst_75 = arith.constant dense<0.000000e+00> : vector<2x32xf32>
    %75 = tpu.matmul %73, %74, %cst_75 {dimension_numbers = #tpu.dot_dimension_numbers<[1], [0], [0], [1], [0, 0, 1, 1], [], []>} : vector<2x4xf32>, vector<4x32xf32>, vector<2x32xf32> -> vector<2x32xf32>
    %c0_76 = arith.constant 0 : index
    %c0_77 = arith.constant 0 : index
    %76 = vector.load %arg12[%c0_76, %c0_77] : memref<96x2xf32, #tpu.memory_space<vmem>>, vector<96x2xf32>
    %77 = arith.addf %72, %75 : vector<2x32xf32>
    %cst_78 = arith.constant dense<0.000000e+00> : vector<96x32xf32>
    %78 = tpu.matmul %76, %77, %cst_78 {dimension_numbers = #tpu.dot_dimension_numbers<[1], [0], [0], [1], [0, 0, 1, 1], [], []>} : vector<96x2xf32>, vector<2x32xf32>, vector<96x32xf32> -> vector<96x32xf32>
    %c0_79 = arith.constant 0 : index
    %c0_80 = arith.constant 0 : index
    %79 = vector.load %arg1[%c0_79, %c0_80] : memref<96x4xf32, #tpu.memory_space<vmem>>, vector<96x4xf32>
    %c100 = arith.constant 100 : index
    %c0_81 = arith.constant 0 : index
    %80 = vector.load %arg13[%c100, %c0_81] : memref<104x32xf32, #tpu.memory_space<vmem>>, vector<4x32xf32>
    %cst_82 = arith.constant dense<0.000000e+00> : vector<96x32xf32>
    %81 = tpu.matmul %79, %80, %cst_82 {dimension_numbers = #tpu.dot_dimension_numbers<[1], [0], [0], [1], [0, 0, 1, 1], [], []>} : vector<96x4xf32>, vector<4x32xf32>, vector<96x32xf32> -> vector<96x32xf32>
    %c3 = arith.constant 3 : index
    %c0_83 = arith.constant 0 : index
    %82 = vector.load %arg14[%c3, %c0_83] : memref<4x32xf32, #tpu.memory_space<vmem>>, vector<1x32xf32>
    %83 = vector.broadcast %82 : vector<1x32xf32> to vector<96x32xf32>
    %84 = arith.addf %81, %83 : vector<96x32xf32>
    %85 = arith.addf %84, %78 : vector<96x32xf32>
    %86 = arith.addf %85, %52 : vector<96x32xf32>
    %cst_84 = arith.constant 0.000000e+00 : f32
    %87 = vector.broadcast %cst_84 : f32 to vector<112x32xf32>
    %c0_85 = arith.constant 0 : index
    %c0_86 = arith.constant 0 : index
    %88 = vector.load %arg20[%c0_85, %c0_86] : memref<112x32xf32, #tpu.memory_space<vmem>>, vector<112x32xf32>
    tpu.vector_store %arg20[%c0_85, %c0_86], %87 {strides = array<i32>} : memref<112x32xf32, #tpu.memory_space<vmem>>, vector<112x32xf32>,
    %c0_87 = arith.constant 0 : index
    %c0_88 = arith.constant 0 : index
    %c0_89 = arith.constant 0 : index
    %89 = vector.load %arg15[%c0_87, %c0_88, %c0_89] : memref<4x160x32xf32, #tpu.memory_space<vmem>>, vector<1x160x32xf32>
    %90 = vector.shape_cast %89 : vector<1x160x32xf32> to vector<160x32xf32>
    %c0_90 = arith.constant 0 : index
    %c0_91 = arith.constant 0 : index
    %c0_92 = arith.constant 0 : index
    %91 = vector.load %arg16[%c0_90, %c0_91, %c0_92] : memref<4x3x32xf32, #tpu.memory_space<vmem>>, vector<1x3x32xf32>
    %92 = vector.shape_cast %91 : vector<1x3x32xf32> to vector<3x32xf32>
    %93 = vector.extract_strided_slice %90 {offsets = [0, 0], sizes = [32, 32], strides = [1, 1]} : vector<160x32xf32> to vector<32x32xf32>
    %cst_93 = arith.constant dense<0.000000e+00> : vector<96x32xf32>
    %94 = tpu.matmul %86, %93, %cst_93 {dimension_numbers = #tpu.dot_dimension_numbers<[1], [0], [0], [1], [0, 0, 1, 1], [], []>} : vector<96x32xf32>, vector<32x32xf32>, vector<96x32xf32> -> vector<96x32xf32>
    %95 = vector.extract_strided_slice %92 {offsets = [0, 0], sizes = [1, 32], strides = [1, 1]} : vector<3x32xf32> to vector<1x32xf32>
    %96 = vector.broadcast %95 : vector<1x32xf32> to vector<96x32xf32>
    %97 = arith.addf %94, %96 : vector<96x32xf32>
    %98 = math.tanh %97 : vector<96x32xf32>
    %99 = vector.extract_strided_slice %98 {offsets = [0, 0], sizes = [33, 32], strides = [1, 1]} : vector<96x32xf32> to vector<33x32xf32>
    %c8 = arith.constant 8 : index
    %c0_94 = arith.constant 0 : index
    %100 = vector.load %arg20[%c8, %c0_94] : memref<112x32xf32, #tpu.memory_space<vmem>>, vector<33x32xf32>
    tpu.vector_store %arg20[%c8, %c0_94], %99 {strides = array<i32>} : memref<112x32xf32, #tpu.memory_space<vmem>>, vector<33x32xf32>,
    %101 = vector.extract_strided_slice %98 {offsets = [48, 0], sizes = [33, 32], strides = [1, 1]} : vector<96x32xf32> to vector<33x32xf32>
    %c56 = arith.constant 56 : index
    %c0_95 = arith.constant 0 : index
    %102 = vector.load %arg20[%c56, %c0_95] : memref<112x32xf32, #tpu.memory_space<vmem>>, vector<33x32xf32>
    tpu.vector_store %arg20[%c56, %c0_95], %101 {strides = array<i32>} : memref<112x32xf32, #tpu.memory_space<vmem>>, vector<33x32xf32>,
    %c7 = arith.constant 7 : index
    %c0_96 = arith.constant 0 : index
    %103 = vector.load %arg20[%c7, %c0_96] : memref<112x32xf32, #tpu.memory_space<vmem>>, vector<96x32xf32>
    %c9 = arith.constant 9 : index
    %c0_97 = arith.constant 0 : index
    %104 = vector.load %arg20[%c9, %c0_97] : memref<112x32xf32, #tpu.memory_space<vmem>>, vector<96x32xf32>
    %105 = vector.extract_strided_slice %90 {offsets = [32, 0], sizes = [32, 32], strides = [1, 1]} : vector<160x32xf32> to vector<32x32xf32>
    %cst_98 = arith.constant dense<0.000000e+00> : vector<96x32xf32>
    %106 = tpu.matmul %103, %105, %cst_98 {dimension_numbers = #tpu.dot_dimension_numbers<[1], [0], [0], [1], [0, 0, 1, 1], [], []>} : vector<96x32xf32>, vector<32x32xf32>, vector<96x32xf32> -> vector<96x32xf32>
    %107 = vector.extract_strided_slice %90 {offsets = [64, 0], sizes = [32, 32], strides = [1, 1]} : vector<160x32xf32> to vector<32x32xf32>
    %cst_99 = arith.constant dense<0.000000e+00> : vector<96x32xf32>
    %108 = tpu.matmul %98, %107, %cst_99 {dimension_numbers = #tpu.dot_dimension_numbers<[1], [0], [0], [1], [0, 0, 1, 1], [], []>} : vector<96x32xf32>, vector<32x32xf32>, vector<96x32xf32> -> vector<96x32xf32>
    %109 = arith.addf %106, %108 : vector<96x32xf32>
    %110 = vector.extract_strided_slice %90 {offsets = [96, 0], sizes = [32, 32], strides = [1, 1]} : vector<160x32xf32> to vector<32x32xf32>
    %cst_100 = arith.constant dense<0.000000e+00> : vector<96x32xf32>
    %111 = tpu.matmul %104, %110, %cst_100 {dimension_numbers = #tpu.dot_dimension_numbers<[1], [0], [0], [1], [0, 0, 1, 1], [], []>} : vector<96x32xf32>, vector<32x32xf32>, vector<96x32xf32> -> vector<96x32xf32>
    %112 = arith.addf %109, %111 : vector<96x32xf32>
    %113 = vector.extract_strided_slice %92 {offsets = [1, 0], sizes = [1, 32], strides = [1, 1]} : vector<3x32xf32> to vector<1x32xf32>
    %114 = vector.broadcast %113 : vector<1x32xf32> to vector<96x32xf32>
    %115 = arith.addf %112, %114 : vector<96x32xf32>
    %cst_101 = arith.constant 5.000000e-01 : f32
    %116 = vector.broadcast %cst_101 : f32 to vector<96x32xf32>
    %117 = arith.mulf %116, %115 : vector<96x32xf32>
    %118 = math.tanh %117 : vector<96x32xf32>
    %cst_102 = arith.constant 1.000000e+00 : f32
    %119 = vector.broadcast %cst_102 : f32 to vector<96x32xf32>
    %120 = arith.addf %118, %119 : vector<96x32xf32>
    %cst_103 = arith.constant 5.000000e-01 : f32
    %121 = vector.broadcast %cst_103 : f32 to vector<96x32xf32>
    %122 = arith.mulf %121, %120 : vector<96x32xf32>
    %123 = vector.extract_strided_slice %90 {offsets = [128, 0], sizes = [32, 32], strides = [1, 1]} : vector<160x32xf32> to vector<32x32xf32>
    %cst_104 = arith.constant dense<0.000000e+00> : vector<96x32xf32>
    %124 = tpu.matmul %122, %123, %cst_104 {dimension_numbers = #tpu.dot_dimension_numbers<[1], [0], [0], [1], [0, 0, 1, 1], [], []>} : vector<96x32xf32>, vector<32x32xf32>, vector<96x32xf32> -> vector<96x32xf32>
    %125 = vector.extract_strided_slice %92 {offsets = [2, 0], sizes = [1, 32], strides = [1, 1]} : vector<3x32xf32> to vector<1x32xf32>
    %126 = vector.broadcast %125 : vector<1x32xf32> to vector<96x32xf32>
    %127 = arith.addf %124, %126 : vector<96x32xf32>
    %c1_105 = arith.constant 1 : index
    %c0_106 = arith.constant 0 : index
    %c0_107 = arith.constant 0 : index
    %128 = vector.load %arg15[%c1_105, %c0_106, %c0_107] : memref<4x160x32xf32, #tpu.memory_space<vmem>>, vector<1x160x32xf32>
    %129 = vector.shape_cast %128 : vector<1x160x32xf32> to vector<160x32xf32>
    %c1_108 = arith.constant 1 : index
    %c0_109 = arith.constant 0 : index
    %c0_110 = arith.constant 0 : index
    %130 = vector.load %arg16[%c1_108, %c0_109, %c0_110] : memref<4x3x32xf32, #tpu.memory_space<vmem>>, vector<1x3x32xf32>
    %131 = vector.shape_cast %130 : vector<1x3x32xf32> to vector<3x32xf32>
    %132 = vector.extract_strided_slice %129 {offsets = [0, 0], sizes = [32, 32], strides = [1, 1]} : vector<160x32xf32> to vector<32x32xf32>
    %cst_111 = arith.constant dense<0.000000e+00> : vector<96x32xf32>
    %133 = tpu.matmul %127, %132, %cst_111 {dimension_numbers = #tpu.dot_dimension_numbers<[1], [0], [0], [1], [0, 0, 1, 1], [], []>} : vector<96x32xf32>, vector<32x32xf32>, vector<96x32xf32> -> vector<96x32xf32>
    %134 = vector.extract_strided_slice %131 {offsets = [0, 0], sizes = [1, 32], strides = [1, 1]} : vector<3x32xf32> to vector<1x32xf32>
    %135 = vector.broadcast %134 : vector<1x32xf32> to vector<96x32xf32>
    %136 = arith.addf %133, %135 : vector<96x32xf32>
    %137 = math.tanh %136 : vector<96x32xf32>
    %138 = vector.extract_strided_slice %137 {offsets = [0, 0], sizes = [33, 32], strides = [1, 1]} : vector<96x32xf32> to vector<33x32xf32>
    %c8_112 = arith.constant 8 : index
    %c0_113 = arith.constant 0 : index
    %139 = vector.load %arg20[%c8_112, %c0_113] : memref<112x32xf32, #tpu.memory_space<vmem>>, vector<33x32xf32>
    tpu.vector_store %arg20[%c8_112, %c0_113], %138 {strides = array<i32>} : memref<112x32xf32, #tpu.memory_space<vmem>>, vector<33x32xf32>,
    %140 = vector.extract_strided_slice %137 {offsets = [48, 0], sizes = [33, 32], strides = [1, 1]} : vector<96x32xf32> to vector<33x32xf32>
    %c56_114 = arith.constant 56 : index
    %c0_115 = arith.constant 0 : index
    %141 = vector.load %arg20[%c56_114, %c0_115] : memref<112x32xf32, #tpu.memory_space<vmem>>, vector<33x32xf32>
    tpu.vector_store %arg20[%c56_114, %c0_115], %140 {strides = array<i32>} : memref<112x32xf32, #tpu.memory_space<vmem>>, vector<33x32xf32>,
    %c6 = arith.constant 6 : index
    %c0_116 = arith.constant 0 : index
    %142 = vector.load %arg20[%c6, %c0_116] : memref<112x32xf32, #tpu.memory_space<vmem>>, vector<96x32xf32>
    %c10 = arith.constant 10 : index
    %c0_117 = arith.constant 0 : index
    %143 = vector.load %arg20[%c10, %c0_117] : memref<112x32xf32, #tpu.memory_space<vmem>>, vector<96x32xf32>
    %144 = vector.extract_strided_slice %129 {offsets = [32, 0], sizes = [32, 32], strides = [1, 1]} : vector<160x32xf32> to vector<32x32xf32>
    %cst_118 = arith.constant dense<0.000000e+00> : vector<96x32xf32>
    %145 = tpu.matmul %142, %144, %cst_118 {dimension_numbers = #tpu.dot_dimension_numbers<[1], [0], [0], [1], [0, 0, 1, 1], [], []>} : vector<96x32xf32>, vector<32x32xf32>, vector<96x32xf32> -> vector<96x32xf32>
    %146 = vector.extract_strided_slice %129 {offsets = [64, 0], sizes = [32, 32], strides = [1, 1]} : vector<160x32xf32> to vector<32x32xf32>
    %cst_119 = arith.constant dense<0.000000e+00> : vector<96x32xf32>
    %147 = tpu.matmul %137, %146, %cst_119 {dimension_numbers = #tpu.dot_dimension_numbers<[1], [0], [0], [1], [0, 0, 1, 1], [], []>} : vector<96x32xf32>, vector<32x32xf32>, vector<96x32xf32> -> vector<96x32xf32>
    %148 = arith.addf %145, %147 : vector<96x32xf32>
    %149 = vector.extract_strided_slice %129 {offsets = [96, 0], sizes = [32, 32], strides = [1, 1]} : vector<160x32xf32> to vector<32x32xf32>
    %cst_120 = arith.constant dense<0.000000e+00> : vector<96x32xf32>
    %150 = tpu.matmul %143, %149, %cst_120 {dimension_numbers = #tpu.dot_dimension_numbers<[1], [0], [0], [1], [0, 0, 1, 1], [], []>} : vector<96x32xf32>, vector<32x32xf32>, vector<96x32xf32> -> vector<96x32xf32>
    %151 = arith.addf %148, %150 : vector<96x32xf32>
    %152 = vector.extract_strided_slice %131 {offsets = [1, 0], sizes = [1, 32], strides = [1, 1]} : vector<3x32xf32> to vector<1x32xf32>
    %153 = vector.broadcast %152 : vector<1x32xf32> to vector<96x32xf32>
    %154 = arith.addf %151, %153 : vector<96x32xf32>
    %cst_121 = arith.constant 5.000000e-01 : f32
    %155 = vector.broadcast %cst_121 : f32 to vector<96x32xf32>
    %156 = arith.mulf %155, %154 : vector<96x32xf32>
    %157 = math.tanh %156 : vector<96x32xf32>
    %cst_122 = arith.constant 1.000000e+00 : f32
    %158 = vector.broadcast %cst_122 : f32 to vector<96x32xf32>
    %159 = arith.addf %157, %158 : vector<96x32xf32>
    %cst_123 = arith.constant 5.000000e-01 : f32
    %160 = vector.broadcast %cst_123 : f32 to vector<96x32xf32>
    %161 = arith.mulf %160, %159 : vector<96x32xf32>
    %162 = vector.extract_strided_slice %129 {offsets = [128, 0], sizes = [32, 32], strides = [1, 1]} : vector<160x32xf32> to vector<32x32xf32>
    %cst_124 = arith.constant dense<0.000000e+00> : vector<96x32xf32>
    %163 = tpu.matmul %161, %162, %cst_124 {dimension_numbers = #tpu.dot_dimension_numbers<[1], [0], [0], [1], [0, 0, 1, 1], [], []>} : vector<96x32xf32>, vector<32x32xf32>, vector<96x32xf32> -> vector<96x32xf32>
    %164 = vector.extract_strided_slice %131 {offsets = [2, 0], sizes = [1, 32], strides = [1, 1]} : vector<3x32xf32> to vector<1x32xf32>
    %165 = vector.broadcast %164 : vector<1x32xf32> to vector<96x32xf32>
    %166 = arith.addf %163, %165 : vector<96x32xf32>
    %167 = arith.addf %127, %166 : vector<96x32xf32>
    %c2_125 = arith.constant 2 : index
    %c0_126 = arith.constant 0 : index
    %c0_127 = arith.constant 0 : index
    %168 = vector.load %arg15[%c2_125, %c0_126, %c0_127] : memref<4x160x32xf32, #tpu.memory_space<vmem>>, vector<1x160x32xf32>
    %169 = vector.shape_cast %168 : vector<1x160x32xf32> to vector<160x32xf32>
    %c2_128 = arith.constant 2 : index
    %c0_129 = arith.constant 0 : index
    %c0_130 = arith.constant 0 : index
    %170 = vector.load %arg16[%c2_128, %c0_129, %c0_130] : memref<4x3x32xf32, #tpu.memory_space<vmem>>, vector<1x3x32xf32>
    %171 = vector.shape_cast %170 : vector<1x3x32xf32> to vector<3x32xf32>
    %172 = vector.extract_strided_slice %169 {offsets = [0, 0], sizes = [32, 32], strides = [1, 1]} : vector<160x32xf32> to vector<32x32xf32>
    %cst_131 = arith.constant dense<0.000000e+00> : vector<96x32xf32>
    %173 = tpu.matmul %166, %172, %cst_131 {dimension_numbers = #tpu.dot_dimension_numbers<[1], [0], [0], [1], [0, 0, 1, 1], [], []>} : vector<96x32xf32>, vector<32x32xf32>, vector<96x32xf32> -> vector<96x32xf32>
    %174 = vector.extract_strided_slice %171 {offsets = [0, 0], sizes = [1, 32], strides = [1, 1]} : vector<3x32xf32> to vector<1x32xf32>
    %175 = vector.broadcast %174 : vector<1x32xf32> to vector<96x32xf32>
    %176 = arith.addf %173, %175 : vector<96x32xf32>
    %177 = math.tanh %176 : vector<96x32xf32>
    %178 = vector.extract_strided_slice %177 {offsets = [0, 0], sizes = [33, 32], strides = [1, 1]} : vector<96x32xf32> to vector<33x32xf32>
    %c8_132 = arith.constant 8 : index
    %c0_133 = arith.constant 0 : index
    %179 = vector.load %arg20[%c8_132, %c0_133] : memref<112x32xf32, #tpu.memory_space<vmem>>, vector<33x32xf32>
    tpu.vector_store %arg20[%c8_132, %c0_133], %178 {strides = array<i32>} : memref<112x32xf32, #tpu.memory_space<vmem>>, vector<33x32xf32>,
    %180 = vector.extract_strided_slice %177 {offsets = [48, 0], sizes = [33, 32], strides = [1, 1]} : vector<96x32xf32> to vector<33x32xf32>
    %c56_134 = arith.constant 56 : index
    %c0_135 = arith.constant 0 : index
    %181 = vector.load %arg20[%c56_134, %c0_135] : memref<112x32xf32, #tpu.memory_space<vmem>>, vector<33x32xf32>
    tpu.vector_store %arg20[%c56_134, %c0_135], %180 {strides = array<i32>} : memref<112x32xf32, #tpu.memory_space<vmem>>, vector<33x32xf32>,
    %c4 = arith.constant 4 : index
    %c0_136 = arith.constant 0 : index
    %182 = vector.load %arg20[%c4, %c0_136] : memref<112x32xf32, #tpu.memory_space<vmem>>, vector<96x32xf32>
    %c12 = arith.constant 12 : index
    %c0_137 = arith.constant 0 : index
    %183 = vector.load %arg20[%c12, %c0_137] : memref<112x32xf32, #tpu.memory_space<vmem>>, vector<96x32xf32>
    %184 = vector.extract_strided_slice %169 {offsets = [32, 0], sizes = [32, 32], strides = [1, 1]} : vector<160x32xf32> to vector<32x32xf32>
    %cst_138 = arith.constant dense<0.000000e+00> : vector<96x32xf32>
    %185 = tpu.matmul %182, %184, %cst_138 {dimension_numbers = #tpu.dot_dimension_numbers<[1], [0], [0], [1], [0, 0, 1, 1], [], []>} : vector<96x32xf32>, vector<32x32xf32>, vector<96x32xf32> -> vector<96x32xf32>
    %186 = vector.extract_strided_slice %169 {offsets = [64, 0], sizes = [32, 32], strides = [1, 1]} : vector<160x32xf32> to vector<32x32xf32>
    %cst_139 = arith.constant dense<0.000000e+00> : vector<96x32xf32>
    %187 = tpu.matmul %177, %186, %cst_139 {dimension_numbers = #tpu.dot_dimension_numbers<[1], [0], [0], [1], [0, 0, 1, 1], [], []>} : vector<96x32xf32>, vector<32x32xf32>, vector<96x32xf32> -> vector<96x32xf32>
    %188 = arith.addf %185, %187 : vector<96x32xf32>
    %189 = vector.extract_strided_slice %169 {offsets = [96, 0], sizes = [32, 32], strides = [1, 1]} : vector<160x32xf32> to vector<32x32xf32>
    %cst_140 = arith.constant dense<0.000000e+00> : vector<96x32xf32>
    %190 = tpu.matmul %183, %189, %cst_140 {dimension_numbers = #tpu.dot_dimension_numbers<[1], [0], [0], [1], [0, 0, 1, 1], [], []>} : vector<96x32xf32>, vector<32x32xf32>, vector<96x32xf32> -> vector<96x32xf32>
    %191 = arith.addf %188, %190 : vector<96x32xf32>
    %192 = vector.extract_strided_slice %171 {offsets = [1, 0], sizes = [1, 32], strides = [1, 1]} : vector<3x32xf32> to vector<1x32xf32>
    %193 = vector.broadcast %192 : vector<1x32xf32> to vector<96x32xf32>
    %194 = arith.addf %191, %193 : vector<96x32xf32>
    %cst_141 = arith.constant 5.000000e-01 : f32
    %195 = vector.broadcast %cst_141 : f32 to vector<96x32xf32>
    %196 = arith.mulf %195, %194 : vector<96x32xf32>
    %197 = math.tanh %196 : vector<96x32xf32>
    %cst_142 = arith.constant 1.000000e+00 : f32
    %198 = vector.broadcast %cst_142 : f32 to vector<96x32xf32>
    %199 = arith.addf %197, %198 : vector<96x32xf32>
    %cst_143 = arith.constant 5.000000e-01 : f32
    %200 = vector.broadcast %cst_143 : f32 to vector<96x32xf32>
    %201 = arith.mulf %200, %199 : vector<96x32xf32>
    %202 = vector.extract_strided_slice %169 {offsets = [128, 0], sizes = [32, 32], strides = [1, 1]} : vector<160x32xf32> to vector<32x32xf32>
    %cst_144 = arith.constant dense<0.000000e+00> : vector<96x32xf32>
    %203 = tpu.matmul %201, %202, %cst_144 {dimension_numbers = #tpu.dot_dimension_numbers<[1], [0], [0], [1], [0, 0, 1, 1], [], []>} : vector<96x32xf32>, vector<32x32xf32>, vector<96x32xf32> -> vector<96x32xf32>
    %204 = vector.extract_strided_slice %171 {offsets = [2, 0], sizes = [1, 32], strides = [1, 1]} : vector<3x32xf32> to vector<1x32xf32>
    %205 = vector.broadcast %204 : vector<1x32xf32> to vector<96x32xf32>
    %206 = arith.addf %203, %205 : vector<96x32xf32>
    %207 = arith.addf %167, %206 : vector<96x32xf32>
    %c3_145 = arith.constant 3 : index
    %c0_146 = arith.constant 0 : index
    %c0_147 = arith.constant 0 : index
    %208 = vector.load %arg15[%c3_145, %c0_146, %c0_147] : memref<4x160x32xf32, #tpu.memory_space<vmem>>, vector<1x160x32xf32>
    %209 = vector.shape_cast %208 : vector<1x160x32xf32> to vector<160x32xf32>
    %c3_148 = arith.constant 3 : index
    %c0_149 = arith.constant 0 : index
    %c0_150 = arith.constant 0 : index
    %210 = vector.load %arg16[%c3_148, %c0_149, %c0_150] : memref<4x3x32xf32, #tpu.memory_space<vmem>>, vector<1x3x32xf32>
    %211 = vector.shape_cast %210 : vector<1x3x32xf32> to vector<3x32xf32>
    %212 = vector.extract_strided_slice %209 {offsets = [0, 0], sizes = [32, 32], strides = [1, 1]} : vector<160x32xf32> to vector<32x32xf32>
    %cst_151 = arith.constant dense<0.000000e+00> : vector<96x32xf32>
    %213 = tpu.matmul %206, %212, %cst_151 {dimension_numbers = #tpu.dot_dimension_numbers<[1], [0], [0], [1], [0, 0, 1, 1], [], []>} : vector<96x32xf32>, vector<32x32xf32>, vector<96x32xf32> -> vector<96x32xf32>
    %214 = vector.extract_strided_slice %211 {offsets = [0, 0], sizes = [1, 32], strides = [1, 1]} : vector<3x32xf32> to vector<1x32xf32>
    %215 = vector.broadcast %214 : vector<1x32xf32> to vector<96x32xf32>
    %216 = arith.addf %213, %215 : vector<96x32xf32>
    %217 = math.tanh %216 : vector<96x32xf32>
    %218 = vector.extract_strided_slice %217 {offsets = [0, 0], sizes = [33, 32], strides = [1, 1]} : vector<96x32xf32> to vector<33x32xf32>
    %c8_152 = arith.constant 8 : index
    %c0_153 = arith.constant 0 : index
    %219 = vector.load %arg20[%c8_152, %c0_153] : memref<112x32xf32, #tpu.memory_space<vmem>>, vector<33x32xf32>
    tpu.vector_store %arg20[%c8_152, %c0_153], %218 {strides = array<i32>} : memref<112x32xf32, #tpu.memory_space<vmem>>, vector<33x32xf32>,
    %220 = vector.extract_strided_slice %217 {offsets = [48, 0], sizes = [33, 32], strides = [1, 1]} : vector<96x32xf32> to vector<33x32xf32>
    %c56_154 = arith.constant 56 : index
    %c0_155 = arith.constant 0 : index
    %221 = vector.load %arg20[%c56_154, %c0_155] : memref<112x32xf32, #tpu.memory_space<vmem>>, vector<33x32xf32>
    tpu.vector_store %arg20[%c56_154, %c0_155], %220 {strides = array<i32>} : memref<112x32xf32, #tpu.memory_space<vmem>>, vector<33x32xf32>,
    %c0_156 = arith.constant 0 : index
    %c0_157 = arith.constant 0 : index
    %222 = vector.load %arg20[%c0_156, %c0_157] : memref<112x32xf32, #tpu.memory_space<vmem>>, vector<96x32xf32>
    %c16 = arith.constant 16 : index
    %c0_158 = arith.constant 0 : index
    %223 = vector.load %arg20[%c16, %c0_158] : memref<112x32xf32, #tpu.memory_space<vmem>>, vector<96x32xf32>
    %224 = vector.extract_strided_slice %209 {offsets = [32, 0], sizes = [32, 32], strides = [1, 1]} : vector<160x32xf32> to vector<32x32xf32>
    %cst_159 = arith.constant dense<0.000000e+00> : vector<96x32xf32>
    %225 = tpu.matmul %222, %224, %cst_159 {dimension_numbers = #tpu.dot_dimension_numbers<[1], [0], [0], [1], [0, 0, 1, 1], [], []>} : vector<96x32xf32>, vector<32x32xf32>, vector<96x32xf32> -> vector<96x32xf32>
    %226 = vector.extract_strided_slice %209 {offsets = [64, 0], sizes = [32, 32], strides = [1, 1]} : vector<160x32xf32> to vector<32x32xf32>
    %cst_160 = arith.constant dense<0.000000e+00> : vector<96x32xf32>
    %227 = tpu.matmul %217, %226, %cst_160 {dimension_numbers = #tpu.dot_dimension_numbers<[1], [0], [0], [1], [0, 0, 1, 1], [], []>} : vector<96x32xf32>, vector<32x32xf32>, vector<96x32xf32> -> vector<96x32xf32>
    %228 = arith.addf %225, %227 : vector<96x32xf32>
    %229 = vector.extract_strided_slice %209 {offsets = [96, 0], sizes = [32, 32], strides = [1, 1]} : vector<160x32xf32> to vector<32x32xf32>
    %cst_161 = arith.constant dense<0.000000e+00> : vector<96x32xf32>
    %230 = tpu.matmul %223, %229, %cst_161 {dimension_numbers = #tpu.dot_dimension_numbers<[1], [0], [0], [1], [0, 0, 1, 1], [], []>} : vector<96x32xf32>, vector<32x32xf32>, vector<96x32xf32> -> vector<96x32xf32>
    %231 = arith.addf %228, %230 : vector<96x32xf32>
    %232 = vector.extract_strided_slice %211 {offsets = [1, 0], sizes = [1, 32], strides = [1, 1]} : vector<3x32xf32> to vector<1x32xf32>
    %233 = vector.broadcast %232 : vector<1x32xf32> to vector<96x32xf32>
    %234 = arith.addf %231, %233 : vector<96x32xf32>
    %cst_162 = arith.constant 5.000000e-01 : f32
    %235 = vector.broadcast %cst_162 : f32 to vector<96x32xf32>
    %236 = arith.mulf %235, %234 : vector<96x32xf32>
    %237 = math.tanh %236 : vector<96x32xf32>
    %cst_163 = arith.constant 1.000000e+00 : f32
    %238 = vector.broadcast %cst_163 : f32 to vector<96x32xf32>
    %239 = arith.addf %237, %238 : vector<96x32xf32>
    %cst_164 = arith.constant 5.000000e-01 : f32
    %240 = vector.broadcast %cst_164 : f32 to vector<96x32xf32>
    %241 = arith.mulf %240, %239 : vector<96x32xf32>
    %242 = vector.extract_strided_slice %209 {offsets = [128, 0], sizes = [32, 32], strides = [1, 1]} : vector<160x32xf32> to vector<32x32xf32>
    %cst_165 = arith.constant dense<0.000000e+00> : vector<96x32xf32>
    %243 = tpu.matmul %241, %242, %cst_165 {dimension_numbers = #tpu.dot_dimension_numbers<[1], [0], [0], [1], [0, 0, 1, 1], [], []>} : vector<96x32xf32>, vector<32x32xf32>, vector<96x32xf32> -> vector<96x32xf32>
    %244 = vector.extract_strided_slice %211 {offsets = [2, 0], sizes = [1, 32], strides = [1, 1]} : vector<3x32xf32> to vector<1x32xf32>
    %245 = vector.broadcast %244 : vector<1x32xf32> to vector<96x32xf32>
    %246 = arith.addf %243, %245 : vector<96x32xf32>
    %247 = arith.addf %207, %246 : vector<96x32xf32>
    %c0_166 = arith.constant 0 : index
    %c0_167 = arith.constant 0 : index
    %248 = vector.load %arg17[%c0_166, %c0_167] : memref<32x4xf32, #tpu.memory_space<vmem>>, vector<32x4xf32>
    %cst_168 = arith.constant dense<0.000000e+00> : vector<96x4xf32>
    %249 = tpu.matmul %247, %248, %cst_168 {dimension_numbers = #tpu.dot_dimension_numbers<[1], [0], [0], [1], [0, 0, 1, 1], [], []>} : vector<96x32xf32>, vector<32x4xf32>, vector<96x4xf32> -> vector<96x4xf32>
    %c0_169 = arith.constant 0 : index
    %c0_170 = arith.constant 0 : index
    %250 = vector.load %arg18[%c0_169, %c0_170] : memref<1x4xf32, #tpu.memory_space<vmem>>, vector<1x4xf32>
    %251 = vector.broadcast %250 : vector<1x4xf32> to vector<96x4xf32>
    %252 = arith.addf %249, %251 : vector<96x4xf32>
    %c0_171 = arith.constant 0 : index
    %c0_172 = arith.constant 0 : index
    %253 = vector.load %arg19[%c0_171, %c0_172] : memref<96x4xf32, #tpu.memory_space<vmem>>, vector<96x4xf32>
    tpu.vector_store %arg19[%c0_171, %c0_172], %252 {strides = array<i32>} : memref<96x4xf32, #tpu.memory_space<vmem>>, vector<96x4xf32>,
    return
  }
  func.func @transform_0(%arg0: i32) -> (i32, i32) {
    %c0_i32 = arith.constant 0 : i32
    %c0_i32_0 = arith.constant 0 : i32
    %c0_i32_1 = arith.constant 0 : i32
    return %c0_i32, %c0_i32_0 : i32, i32
  }
  func.func @transform_1(%arg0: i32) -> (i32, i32) {
    %c0_i32 = arith.constant 0 : i32
    %c0_i32_0 = arith.constant 0 : i32
    %c0_i32_1 = arith.constant 0 : i32
    return %c0_i32, %c0_i32_0 : i32, i32
  }
  func.func @transform_2(%arg0: i32) -> (i32, i32) {
    %c0_i32 = arith.constant 0 : i32
    %c0_i32_0 = arith.constant 0 : i32
    %c0_i32_1 = arith.constant 0 : i32
    return %c0_i32, %c0_i32_0 : i32, i32
  }
  func.func @transform_3(%arg0: i32) -> (i32, i32) {
    %c0_i32 = arith.constant 0 : i32
    %c0_i32_0 = arith.constant 0 : i32
    %c0_i32_1 = arith.constant 0 : i32
    return %c0_i32, %c0_i32_0 : i32, i32
  }
  func.func @transform_4(%arg0: i32) -> (i32, i32, i32) {
    %c0_i32 = arith.constant 0 : i32
    %c0_i32_0 = arith.constant 0 : i32
    %c0_i32_1 = arith.constant 0 : i32
    %c0_i32_2 = arith.constant 0 : i32
    return %c0_i32, %c0_i32_0, %c0_i32_1 : i32, i32, i32
  }
  func.func @transform_5(%arg0: i32) -> (i32, i32, i32) {
    %c0_i32 = arith.constant 0 : i32
    %c0_i32_0 = arith.constant 0 : i32
    %c0_i32_1 = arith.constant 0 : i32
    %c0_i32_2 = arith.constant 0 : i32
    return %c0_i32, %c0_i32_0, %c0_i32_1 : i32, i32, i32
  }
  func.func @transform_6(%arg0: i32) -> (i32, i32) {
    %c0_i32 = arith.constant 0 : i32
    %c0_i32_0 = arith.constant 0 : i32
    %c0_i32_1 = arith.constant 0 : i32
    return %c0_i32, %c0_i32_0 : i32, i32
  }
  func.func @transform_7(%arg0: i32) -> (i32, i32, i32) {
    %c0_i32 = arith.constant 0 : i32
    %c0_i32_0 = arith.constant 0 : i32
    %c0_i32_1 = arith.constant 0 : i32
    %c0_i32_2 = arith.constant 0 : i32
    return %c0_i32, %c0_i32_0, %c0_i32_1 : i32, i32, i32
  }
  func.func @transform_8(%arg0: i32) -> (i32, i32, i32) {
    %c0_i32 = arith.constant 0 : i32
    %c0_i32_0 = arith.constant 0 : i32
    %c0_i32_1 = arith.constant 0 : i32
    %c0_i32_2 = arith.constant 0 : i32
    return %c0_i32, %c0_i32_0, %c0_i32_1 : i32, i32, i32
  }
  func.func @transform_9(%arg0: i32) -> (i32, i32) {
    %c0_i32 = arith.constant 0 : i32
    %c0_i32_0 = arith.constant 0 : i32
    %c0_i32_1 = arith.constant 0 : i32
    return %c0_i32, %c0_i32_0 : i32, i32
  }
  func.func @transform_10(%arg0: i32) -> (i32, i32) {
    %c0_i32 = arith.constant 0 : i32
    %c0_i32_0 = arith.constant 0 : i32
    %c0_i32_1 = arith.constant 0 : i32
    return %c0_i32, %c0_i32_0 : i32, i32
  }
  func.func @transform_11(%arg0: i32) -> (i32, i32) {
    %c0_i32 = arith.constant 0 : i32
    %c0_i32_0 = arith.constant 0 : i32
    %c0_i32_1 = arith.constant 0 : i32
    return %c0_i32, %c0_i32_0 : i32, i32
  }
  func.func @transform_12(%arg0: i32) -> (i32, i32) {
    %c0_i32 = arith.constant 0 : i32
    %c0_i32_0 = arith.constant 0 : i32
    %c0_i32_1 = arith.constant 0 : i32
    return %c0_i32, %c0_i32_0 : i32, i32
  }
  func.func @transform_13(%arg0: i32) -> (i32, i32) {
    %c0_i32 = arith.constant 0 : i32
    %c0_i32_0 = arith.constant 0 : i32
    %c0_i32_1 = arith.constant 0 : i32
    return %c0_i32, %c0_i32_0 : i32, i32
  }
  func.func @transform_14(%arg0: i32) -> (i32, i32, i32) {
    %c0_i32 = arith.constant 0 : i32
    %c0_i32_0 = arith.constant 0 : i32
    %c0_i32_1 = arith.constant 0 : i32
    %c0_i32_2 = arith.constant 0 : i32
    return %c0_i32, %c0_i32_0, %c0_i32_1 : i32, i32, i32
  }
  func.func @transform_15(%arg0: i32) -> (i32, i32, i32) {
    %c0_i32 = arith.constant 0 : i32
    %c0_i32_0 = arith.constant 0 : i32
    %c0_i32_1 = arith.constant 0 : i32
    %c0_i32_2 = arith.constant 0 : i32
    return %c0_i32, %c0_i32_0, %c0_i32_1 : i32, i32, i32
  }
  func.func @transform_16(%arg0: i32) -> (i32, i32) {
    %c0_i32 = arith.constant 0 : i32
    %c0_i32_0 = arith.constant 0 : i32
    %c0_i32_1 = arith.constant 0 : i32
    return %c0_i32, %c0_i32_0 : i32, i32
  }
  func.func @transform_17(%arg0: i32) -> (i32, i32) {
    %c0_i32 = arith.constant 0 : i32
    %c0_i32_0 = arith.constant 0 : i32
    %c0_i32_1 = arith.constant 0 : i32
    return %c0_i32, %c0_i32_0 : i32, i32
  }
  func.func @transform_18(%arg0: i32) -> (i32, i32) {
    %c0_i32 = arith.constant 0 : i32
    %c0_i32_0 = arith.constant 0 : i32
    %c0_i32_1 = arith.constant 0 : i32
    return %c0_i32, %c0_i32_0 : i32, i32
  }
}

</mosaic_0001>

<bundles_post_ra>
// kernel: tpu_custom_call.1
= control target key start
LH: loop header
LB: loop body
LE: loop exit
PB: predicated region body
PF: predicated region fallthrough
CT: control target
= control target key end

     0   :  { %vm73_vm0 = vcmask 1043456   ;;  %vm63_vm1 = vcmask 31744   ;;  %v8501_v0 = vmov 0.0   ;;  %vm8502_vm2 = vmmov 0   ;;  %s10206_s5 = inlined_call_operand.vmem [shape: f32[3,4,16], index: 5, kind: input, shape index: {}]   ;;  %s10207_s3 = inlined_call_operand.vmem [shape: f32[18,4], index: 3, kind: input, shape index: {}]   ;;  %s10208_s4 = inlined_call_operand.vmem [shape: f32[3,34,18], index: 4, kind: input, shape index: {}]   ;;  %s10209_s8 = inlined_call_operand.vmem [shape: f32[3,16,32], index: 8, kind: input, shape index: {}]   ;;  %s10210_s6 = inlined_call_operand.vmem [shape: f32[1,16], index: 6, kind: input, shape index: {}]   ;;  %s10211_s7 = inlined_call_operand.vmem [shape: f32[3,96,34], index: 7, kind: input, shape index: {}]   ;;  %s10212_s12 = inlined_call_operand.vmem [shape: f32[104,32], index: 12, kind: input, shape index: {}]   ;;  %s10213_s1 = inlined_call_operand.vmem [shape: f32[2,32], index: 1, kind: input, shape index: {}]   ;;  %s10214_s10 = inlined_call_operand.vmem [shape: f32[32,32], index: 10, kind: input, shape index: {}]   ;;  %s10215_s9 = inlined_call_operand.vmem [shape: f32[1,32], index: 9, kind: input, shape index: {}]   ;;  %s10216_s13 = inlined_call_operand.vmem [shape: f32[4,32], index: 13, kind: input, shape index: {}]   ;;  %s10217_s2 = inlined_call_operand.vmem [shape: f32[2,4], index: 2, kind: input, shape index: {}]   ;;  %s10218_s0 = inlined_call_operand.vmem [shape: f32[96,4], index: 0, kind: input, shape index: {}]   ;;  %s10219_s11 = inlined_call_operand.vmem [shape: f32[96,2], index: 11, kind: input, shape index: {}]   ;;  %s10220_s14 = inlined_call_operand.vmem [shape: f32[4,160,32], index: 14, kind: input, shape index: {}]   ;;  %s10221_s15 = inlined_call_operand.vmem [shape: f32[4,3,32], index: 15, kind: input, shape index: {}]   ;;  %s10222_s16 = inlined_call_operand.vmem [shape: f32[32,4], index: 16, kind: input, shape index: {}]   ;;  %s10223_s17 = inlined_call_operand.vmem [shape: f32[1,4], index: 17, kind: input, shape index: {}]   ;;  %s10224_s18 = inlined_call_operand.vmem [shape: f32[96,4], index: 18, kind: output, shape index: {}]  }
   0x1   :  { %10228 = sst [smem:[#allocation3_spill]] %s10206_s5  ;;  %7425 = vmatprep.subr.mxu1 %v8501_v0  ;;  %7427 = vmatprep.mubr.msk.f32.mxu1 %vm8502_vm2, %v8501_v0  ;;  %vm269_vm3 = vcmask 1041408   ;;  %vm253_vm4 = vcmask 146432   ;;  %vm694_vm5 = vcmask 130048   ;;  %vm918_vm6 = vcmask 277504  }
   0x2   :  { %10229 = sst [smem:[#allocation4_spill]] %s10207_s3  ;;  %7414 = vmatprep.subr.mxu0 %v8501_v0  ;;  %7416 = vmatprep.mubr.msk.f32.mxu0 %vm8502_vm2, %v8501_v0  ;;  %vm1564_vm7 = vcmask 261120   ;;  %vm2066_vm8 = vcmask 15360   ;;  %vm2653_vm9 = vcmask 253952  }
   0x3   :  { %10230 = sst [smem:[#allocation5_spill]] %s10208_s4  ;;  %2437 = vst.msk [vmem:[#allocation2] sm:$0xff] %vm1564_vm7, %v8501_v0  ;;  %2438 = vst.msk [vmem:[#allocation2 + $0x8] sm:$0xff] %vm1564_vm7, %v8501_v0 }
   0x4   :  { %s10231_s29 = sld [smem:[#allocation3_spill]]  ;;  %2439 = vst.msk [vmem:[#allocation2 + $0x10] sm:$0xff] %vm1564_vm7, %v8501_v0  ;;  %2440 = vst.msk [vmem:[#allocation2 + $0x18] sm:$0xff] %vm1564_vm7, %v8501_v0 }
   0x5   :  { %s10232_s19 = sld [smem:[#allocation4_spill]]  ;;  %2441 = vst.msk [vmem:[#allocation2 + $0x20] sm:$0xff] %vm1564_vm7, %v8501_v0  ;;  %2442 = vst.msk [vmem:[#allocation2 + $0x28] sm:$0xff] %vm1564_vm7, %v8501_v0 }
   0x6   :  { %s10233_s26 = sld [smem:[#allocation5_spill]]  ;;  %2443 = vst.msk [vmem:[#allocation2 + $0x30] sm:$0xff] %vm1564_vm7, %v8501_v0  ;;  %2444 = vst.msk [vmem:[#allocation2 + $0x38] sm:$0xff] %vm1564_vm7, %v8501_v0 }
   0x7   :  { %2445 = vst.msk [vmem:[#allocation2 + $0x40] sm:$0xff] %vm1564_vm7, %v8501_v0  ;;  %2446 = vst.msk [vmem:[#allocation2 + $0x48] sm:$0xff] %vm1564_vm7, %v8501_v0 }
   0x8   :  { %2447 = vst.msk [vmem:[#allocation2 + $0x50] sm:$0xff] %vm1564_vm7, %v8501_v0  ;;  %2448 = vst.msk [vmem:[#allocation2 + $0x58] sm:$0xff] %vm1564_vm7, %v8501_v0 }
   0x9   :  { %2449 = vst.msk [vmem:[#allocation2 + $0x60] sm:$0xff] %vm1564_vm7, %v8501_v0  ;;  %2450 = vst.msk [vmem:[#allocation2 + $0x68] sm:$0xff] %vm1564_vm7, %v8501_v0 }
   0xa   :  { %v6426_v1 = vld [vmem:[%s10231_s29 + $0x4] sm:$0xf]  ;;  %v62_v3 = vld [vmem:[%s10231_s29] sm:$0xf]  ;;  %v6448_v20 = vld [vmem:[%s10231_s29 + $0x8] sm:$0xf] }
   0xb   :  { %v8607_v2 = vld [vmem:[%s10232_s19] sm:$0xff]  ;;  %7426 = vmatpush3.msk.msra.mxu1 %vm73_vm0, %v6426_v1  ;;  %7415 = vmatpush3.msk.msra.mxu0 %vm73_vm0, %v62_v3  ;;  %v8622_v4 = vld [vmem:[%s10232_s19 + $0x8] sm:$0xff]  ;;  %v8639_v5 = vld [vmem:[%s10232_s19 + $0x10] sm:$0x3] }
   0xc   :  { %7428 = vmatmul.mubr.msk.f32.vlgmr.msra.gmra.mxu1 %vm63_vm1, %v8607_v2  ;;  %7417 = vmatmul.mubr.msk.f32.vlgmr.msra.gmra.mxu0 %vm63_vm1, %v8607_v2  ;;  %v6431_v17 = vld [vmem:[%s10233_s26 + $0x28] sm:$0xff]  ;;  %v6433_v18 = vld [vmem:[%s10233_s26 + $0x38] sm:$0xff]  ;;  %v6432_v21 = vld [vmem:[%s10233_s26 + $0x30] sm:$0xff] }
   0xd   :  { %7430 = vmatprep.mubr.msk.f32.mxu1 %vm8502_vm2, %v8501_v0  ;;  %7436 = vmatprep.subr.mxu0 %v8501_v0  ;;  %v6434_v22 = vld [vmem:[%s10233_s26 + $0x40] sm:$0xff]  ;;  %v6435_v23 = vld [vmem:[%s10233_s26 + $0x48] sm:$0x3]  ;;  %v159_v26 = vld [vmem:[%s10233_s26 + $0x10] sm:$0xff] }
   0xe   :  { %7419 = vmatprep.mubr.msk.f32.mxu0 %vm8502_vm2, %v8501_v0  ;;  %8301 = vmatprep.subr.mxu1 %v8501_v0  ;;  %v157_v24 = vld [vmem:[%s10233_s26] sm:$0xff]  ;;  %v158_v25 = vld [vmem:[%s10233_s26 + $0x8] sm:$0xff]  ;;  %v160_v27 = vld [vmem:[%s10233_s26 + $0x18] sm:$0xff] }
   0xf   :  { %v161_v28 = vld [vmem:[%s10233_s26 + $0x20] sm:$0x3]  ;;  %v6453_v51 = vld [vmem:[%s10233_s26 + $0x50] sm:$0xff]  ;;  %v6454_v55 = vld [vmem:[%s10233_s26 + $0x58] sm:$0xff] }
  0x10   :  { %7431 = vmatmul.mubr.msk.f32.gmra.mxu1 %vm63_vm1, %v8622_v4  ;;  %7420 = vmatmul.mubr.msk.f32.gmra.mxu0 %vm63_vm1, %v8622_v4  ;;  %v6455_v59 = vld [vmem:[%s10233_s26 + $0x60] sm:$0xff]  ;;  %v6456_v63 = vld [vmem:[%s10233_s26 + $0x68] sm:$0xff]  ;;  %v6457_v1 = vld [vmem:[%s10233_s26 + $0x70] sm:$0x3] }
  0x11   :  { %7433 = vmatprep.mubr.msk.f32.mxu1 %vm8502_vm2, %v8501_v0  ;;  %7422 = vmatprep.mubr.msk.f32.mxu0 %vm8502_vm2, %v8501_v0  ;;  %v693_v3 = vld [vmem:[%s10209_s8 + $0x8] sm:$0xff] }
  0x14   :  { %7434 = vmatmul.mubr.msk.f32.gmra.mxu1 %vm63_vm1, %v8639_v5  ;;  %7423 = vmatmul.mubr.msk.f32.gmra.mxu0 %vm63_vm1, %v8639_v5 }
  0x15   :  { %7448 = vmatprep.mubr.msk.f32.mxu1 %vm8502_vm2, %v8501_v0  ;;  %7442 = vmatprep.mubr.msk.f32.mxu0 %vm8502_vm2, %v8501_v0 }
  0xcc   :  { %v233_v6 = vpop.f32.mrf.mxu1  ;;  %v143_v8 = vpop.f32.mrf.mxu0 }
  0xce   :  { %v7429_v7 = vpop.f32.mrf.mxu1  ;;  %v7418_v10 = vpop.f32.mrf.mxu0 }
  0xcf   :  { %v6464_v7 = vld [vmem:[%s10210_s6] ss:$0 sm:$0xff] }
  0xd0   :  { %v238_v9 = vpop.f32.mrf.mxu1  ;;  %v148_v12 = vpop.f32.mrf.mxu0 }
  0xd2   :  { %v7432_v11 = vpop.f32.mrf.mxu1  ;;  %v7421_v14 = vpop.f32.mrf.mxu0 }
  0xd4   :  { %v243_v13 = vpop.f32.mrf.mxu1  ;;  %v153_v16 = vpop.f32.mrf.mxu0 }
  0xd5   :  { %7437 = vmatpush3.msk.msra.mxu0 %vm269_vm3, %v243_v13  ;;  %8304 = vmatpush3.msk.msra.mxu1 %vm269_vm3, %v243_v13 }
  0xd6   :  { %v7435_v15 = vpop.f32.mrf.mxu1  ;;  %7438 = vmatprep.subr.mxu0 %v8501_v0  ;;  %8302 = vmatprep.subr.mxu1 %v8501_v0  ;;  %v7424_v19 = vpop.f32.mrf.mxu0 }
  0xd7   :  { %7439 = vmatpush3.msra.mxu0 %v238_v9  ;;  %8305 = vmatpush3.msra.mxu1 %v238_v9 }
  0xd8   :  { %7440 = vmatprep.subr.mxu0 %v8501_v0  ;;  %8303 = vmatprep.subr.mxu1 %v8501_v0 }
  0xd9   :  { %7441 = vmatpush3.msra.mxu0 %v233_v6  ;;  %8306 = vmatpush3.msra.mxu1 %v233_v6 }
  0xda   :  { %7443 = vmatmul.mubr.msk.f32.vlgmr.msra.gmra.mxu0 %vm253_vm4, %v6431_v17  ;;  %7449 = vmatmul.mubr.msk.f32.vlgmr.msra.gmra.mxu1 %vm253_vm4, %v6433_v18 }
  0xdb   :  { %7445 = vmatprep.mubr.msk.f32.mxu0 %vm8502_vm2, %v8501_v0  ;;  %7451 = vmatprep.mubr.msk.f32.mxu1 %vm8502_vm2, %v8501_v0 }
  0xdc   :  { %7457 = vmatprep.subr.mxu1 %v8501_v0  ;;  %7478 = vmatprep.subr.mxu0 %v8501_v0 }
  0xdd   :  { %7458 = vmatpush3.msk.msra.mxu1 %vm269_vm3, %v153_v16  ;;  %7479 = vmatpush3.msk.msra.mxu0 %vm73_vm0, %v6448_v20 }
  0xde   :  { %7446 = vmatmul.mubr.msk.f32.gmra.mxu0 %vm253_vm4, %v6432_v21  ;;  %7452 = vmatmul.mubr.msk.f32.gmra.mxu1 %vm253_vm4, %v6434_v22 }
  0xdf   :  { %7454 = vmatprep.mubr.msk.f32.mxu1 %vm8502_vm2, %v8501_v0  ;;  %7480 = vmatprep.mubr.msk.f32.mxu0 %vm8502_vm2, %v8501_v0 }
  0xe0   :  { %7459 = vmatprep.subr.mxu1 %v8501_v0  ;;  %7510 = vmatprep.subr.mxu0 %v8501_v0 }
  0xe1   :  { %7460 = vmatpush3.msra.mxu1 %v148_v12 }
  0xe2   :  { %7455 = vmatmul.mubr.msk.f32.gmra.mxu1 %vm253_vm4, %v6435_v23  ;;  %7481 = vmatmul.mubr.msk.f32.vlgmr.msra.gmra.mxu0 %vm63_vm1, %v8607_v2  ;;  %v6471_v2 = vld [vmem:[%s10209_s8 + $0x18] sm:$0xff] }
  0xe3   :  { %7461 = vmatprep.subr.mxu1 %v8501_v0  ;;  %7463 = vmatprep.mubr.msk.f32.mxu1 %vm8502_vm2, %v8501_v0 }
  0xe4   :  { %7462 = vmatpush3.msra.mxu1 %v143_v8  ;;  %7483 = vmatprep.mubr.msk.f32.mxu0 %vm8502_vm2, %v8501_v0 }
  0xe5   :  { %7489 = vmatprep.subr.mxu1 %v8501_v0  ;;  %7511 = vmatpush3.msra.mxu0 %v693_v3  ;;  %v6483_v3 = vld [vmem:[%s10211_s7 + $0x90] sm:$0xff] }
  0xe6   :  { %7464 = vmatmul.mubr.msk.f32.vlgmr.msra.gmra.mxu1 %vm253_vm4, %v157_v24  ;;  %7484 = vmatmul.mubr.msk.f32.gmra.mxu0 %vm63_vm1, %v8622_v4  ;;  %v692_v4 = vld [vmem:[%s10209_s8] sm:$0xff] }
  0xe7   :  { %7466 = vmatprep.mubr.msk.f32.mxu1 %vm8502_vm2, %v8501_v0  ;;  %7486 = vmatprep.mubr.msk.f32.mxu0 %vm8502_vm2, %v8501_v0 }
  0xe8   :  { %7512 = vmatprep.subr.mxu0 %v8501_v0 }
  0xe9   :  { %7513 = vmatpush3.msra.mxu0 %v692_v4  ;;  %v806_v4 = vld [vmem:[%s10211_s7 + $0x30] sm:$0xff] }
  0xea   :  { %7467 = vmatmul.mubr.msk.f32.gmra.mxu1 %vm253_vm4, %v158_v25  ;;  %7487 = vmatmul.mubr.msk.f32.gmra.mxu0 %vm63_vm1, %v8639_v5  ;;  %v6470_v5 = vld [vmem:[%s10209_s8 + $0x10] sm:$0xff] }
  0xeb   :  { %7469 = vmatprep.mubr.msk.f32.mxu1 %vm8502_vm2, %v8501_v0  ;;  %7514 = vmatprep.mubr.msk.f32.mxu0 %vm8502_vm2, %v8501_v0 }
  0xee   :  { %7470 = vmatmul.mubr.msk.f32.gmra.mxu1 %vm253_vm4, %v159_v26 }
  0xef   :  { %7472 = vmatprep.mubr.msk.f32.mxu1 %vm8502_vm2, %v8501_v0 }
  0xf2   :  { %7473 = vmatmul.mubr.msk.f32.gmra.mxu1 %vm253_vm4, %v160_v27 }
  0xf3   :  { %7475 = vmatprep.mubr.msk.f32.mxu1 %vm8502_vm2, %v8501_v0 }
  0xf6   :  { %7476 = vmatmul.mubr.msk.f32.gmra.mxu1 %vm253_vm4, %v161_v28 }
  0xf7   :  { %7495 = vmatprep.mubr.msk.f32.mxu1 %vm8502_vm2, %v8501_v0 }
 0x19a   :  { %v339_v29 = vpop.f32.mrf.mxu0  ;;  %v349_v30 = vpop.f32.mrf.mxu1 }
 0x19c   :  { %v7444_v31 = vpop.f32.mrf.mxu0  ;;  %v7450_v32 = vpop.f32.mrf.mxu1 }
 0x19d   :  { %v6477_v32 = vld [vmem:[%s10211_s7 + $0x60] sm:$0xff] }
 0x19e   :  { %v344_v33 = vpop.f32.mrf.mxu0  ;;  %v354_v34 = vpop.f32.mrf.mxu1 }
 0x1a0   :  { %v7447_v35 = vpop.f32.mrf.mxu0  ;;  %v7453_v36 = vpop.f32.mrf.mxu1 }
 0x1a2   :  { %v359_v37 = vpop.f32.mrf.mxu1  ;;  %v542_v38 = vpop.f32.mrf.mxu0 }
 0x1a4   :  { %v7456_v39 = vpop.f32.mrf.mxu1  ;;  %v7482_v40 = vpop.f32.mrf.mxu0 }
 0x1a6   :  { %v447_v41 = vpop.f32.mrf.mxu1  ;;  %v547_v42 = vpop.f32.mrf.mxu0 }
 0x1a7   :  { %v448_v43 = vadd.f32 %v447_v41, %v339_v29 }
 0x1a8   :  { %v7465_v44 = vpop.f32.mrf.mxu1  ;;  %v7485_v45 = vpop.f32.mrf.mxu0 }
 0x1aa   :  { %v452_v46 = vpop.f32.mrf.mxu1  ;;  %v552_v47 = vpop.f32.mrf.mxu0 }
 0x1ab   :  { %v453_v48 = vadd.f32 %v452_v46, %v344_v33  ;;  %7490 = vmatpush3.msk.msra.mxu1 %vm269_vm3, %v552_v47  ;;  %v800_v33 = vld [vmem:[%s10211_s7] sm:$0xff] }
 0x1ac   :  { %v7488_v49 = vpop.f32.mrf.mxu0  ;;  %7491 = vmatprep.subr.mxu1 %v8501_v0  ;;  %v7468_v50 = vpop.f32.mrf.mxu1 }
 0x1ad   :  { %7492 = vmatpush3.msra.mxu1 %v547_v42 }
 0x1ae   :  { %7493 = vmatprep.subr.mxu1 %v8501_v0  ;;  %v457_v52 = vpop.f32.mrf.mxu1 }
 0x1af   :  { %7494 = vmatpush3.msra.mxu1 %v542_v38  ;;  %v458_v53 = vadd.f32 %v457_v52, %v349_v30 }
 0x1b0   :  { %7496 = vmatmul.mubr.msk.f32.vlgmr.msra.gmra.mxu1 %vm253_vm4, %v6453_v51  ;;  %v7471_v54 = vpop.f32.mrf.mxu1  ;;  %7529 = vmatprep.subr.mxu1 %v8501_v0 }
 0x1b1   :  { %7498 = vmatprep.mubr.msk.f32.mxu1 %vm8502_vm2, %v8501_v0  ;;  %7530 = vmatpush3.msra.mxu1 %v6471_v2  ;;  %v6478_v54 = vld [vmem:[%s10211_s7 + $0x68] sm:$0xff] }
 0x1b2   :  { %v462_v56 = vpop.f32.mrf.mxu1  ;;  %7531 = vmatprep.subr.mxu1 %v8501_v0  ;;  %v805_v2 = vld [vmem:[%s10211_s7 + $0x28] sm:$0xff] }
 0x1b3   :  { %v463_v57 = vadd.f32 %v462_v56, %v354_v34  ;;  %7532 = vmatpush3.msra.mxu1 %v6470_v5  ;;  %v6479_v56 = vld [vmem:[%s10211_s7 + $0x70] sm:$0xff]  ;;  %v6484_v5 = vld [vmem:[%s10211_s7 + $0x98] sm:$0xff] }
 0x1b4   :  { %7499 = vmatmul.mubr.msk.f32.gmra.mxu1 %vm253_vm4, %v6454_v55  ;;  %v7474_v58 = vpop.f32.mrf.mxu1  ;;  %v801_v55 = vld [vmem:[%s10211_s7 + $0x8] sm:$0xff] }
 0x1b5   :  { %7501 = vmatprep.mubr.msk.f32.mxu1 %vm8502_vm2, %v8501_v0  ;;  %v6516_v58 = vld [vmem:[%s10209_s8 + $0x28] sm:$0xff] }
 0x1b6   :  { %v467_v60 = vpop.f32.mrf.mxu1 }
 0x1b7   :  { %v468_v61 = vadd.f32 %v467_v60, %v359_v37  ;;  %v803_v60 = vld [vmem:[%s10211_s7 + $0x18] sm:$0xff] }
 0x1b8   :  { %7502 = vmatmul.mubr.msk.f32.gmra.mxu1 %vm253_vm4, %v6455_v59  ;;  %v7477_v62 = vpop.f32.mrf.mxu1  ;;  %v6480_v59 = vld [vmem:[%s10211_s7 + $0x78] sm:$0xff] }
 0x1b9   :  { %7504 = vmatprep.mubr.msk.f32.mxu1 %vm8502_vm2, %v8501_v0  ;;  %v804_v62 = vld [vmem:[%s10211_s7 + $0x20] sm:$0xff] }
 0x1bc   :  { %7505 = vmatmul.mubr.msk.f32.gmra.mxu1 %vm253_vm4, %v6456_v63  ;;  %v6515_v63 = vld [vmem:[%s10209_s8 + $0x20] sm:$0xff] }
 0x1bd   :  { %7507 = vmatprep.mubr.msk.f32.mxu1 %vm8502_vm2, %v8501_v0 }
 0x1c0   :  { %7508 = vmatmul.mubr.msk.f32.gmra.mxu1 %vm253_vm4, %v6457_v1  ;;  %v6482_v1 = vld [vmem:[%s10211_s7 + $0x88] sm:$0xff] }
 0x1c1   :  { %7533 = vmatprep.mubr.msk.f32.mxu1 %vm8502_vm2, %v8501_v0 }
 0x270   :  { %v646_v6 = vpop.f32.mrf.mxu1 }
 0x271   :  { %v670_v8 = vadd.f32 %v646_v6, %v448_v43  ;;  %v807_v6 = vld [vmem:[%s10211_s7 + $0x38] sm:$0xff] }
 0x272   :  { %v7497_v9 = vpop.f32.mrf.mxu1 }
 0x273   :  { %v682_v10 = vadd.f32 %v6464_v7, %v670_v8  ;;  %v808_v8 = vld [vmem:[%s10211_s7 + $0x40] sm:$0xff]  ;;  %v6486_v9 = vld [vmem:[%s10211_s7 + $0xa8] sm:$0xff] }
 0x274   :  { %v651_v11 = vpop.f32.mrf.mxu1 }
 0x275   :  { %v8793_v12 = vmax.f32 %v682_v10, 0.0  ;;  %v671_v13 = vadd.f32 %v651_v11, %v453_v48  ;;  %v809_v10 = vld [vmem:[%s10211_s7 + $0x48] sm:$0xff]  ;;  %v6487_v11 = vld [vmem:[%s10211_s7 + $0xb0] sm:$0xff] }
 0x276   :  { %v7500_v14 = vpop.f32.mrf.mxu1 }
 0x277   :  { %v683_v15 = vadd.f32 %v6464_v7, %v671_v13  ;;  %7515 = vmatmul.mubr.msk.f32.vlgmr.msra.gmra.mxu0 %vm694_vm5, %v8793_v12  ;;  %7534 = vmatmul.mubr.msk.f32.vlgmr.msra.gmra.mxu1 %vm694_vm5, %v8793_v12  ;;  %v810_v13 = vld [vmem:[%s10211_s7 + $0x50] sm:$0xff]  ;;  %v6488_v14 = vld [vmem:[%s10211_s7 + $0xb8] sm:$0xff] }
 0x278   :  { %v656_v16 = vpop.f32.mrf.mxu1  ;;  %7517 = vmatprep.mubr.msk.f32.mxu0 %vm8502_vm2, %v8501_v0  ;;  %7536 = vmatprep.mubr.msk.f32.mxu1 %vm8502_vm2, %v8501_v0 }
 0x279   :  { %v8803_v17 = vmax.f32 %v683_v15, 0.0  ;;  %v672_v18 = vadd.f32 %v656_v16, %v458_v53  ;;  %v811_v15 = vld [vmem:[%s10211_s7 + $0x58] sm:$0xff] }
 0x27a   :  { %v7503_v19 = vpop.f32.mrf.mxu1 }
 0x27b   :  { %v684_v20 = vadd.f32 %v6464_v7, %v672_v18  ;;  %7518 = vmatmul.mubr.msk.f32.gmra.mxu0 %vm694_vm5, %v8803_v17  ;;  %7537 = vmatmul.mubr.msk.f32.gmra.mxu1 %vm694_vm5, %v8803_v17 }
 0x27c   :  { %v661_v21 = vpop.f32.mrf.mxu1  ;;  %7520 = vmatprep.mubr.msk.f32.mxu0 %vm8502_vm2, %v8501_v0  ;;  %7539 = vmatprep.mubr.msk.f32.mxu1 %vm8502_vm2, %v8501_v0 }
 0x27d   :  { %v8813_v22 = vmax.f32 %v684_v20, 0.0  ;;  %v673_v23 = vadd.f32 %v661_v21, %v463_v57  ;;  %v802_v57 = vld [vmem:[%s10211_s7 + $0x10] sm:$0xff] }
 0x27e   :  { %v7506_v24 = vpop.f32.mrf.mxu1 }
 0x27f   :  { %v685_v25 = vadd.f32 %v6464_v7, %v673_v23  ;;  %7521 = vmatmul.mubr.msk.f32.gmra.mxu0 %vm694_vm5, %v8813_v22  ;;  %7540 = vmatmul.mubr.msk.f32.gmra.mxu1 %vm694_vm5, %v8813_v22 }
 0x280   :  { %v666_v26 = vpop.f32.mrf.mxu1  ;;  %7523 = vmatprep.mubr.msk.f32.mxu0 %vm8502_vm2, %v8501_v0  ;;  %7542 = vmatprep.mubr.msk.f32.mxu1 %vm8502_vm2, %v8501_v0 }
 0x281   :  { %v8823_v27 = vmax.f32 %v685_v25, 0.0  ;;  %v674_v28 = vadd.f32 %v666_v26, %v468_v61  ;;  %v6481_v61 = vld [vmem:[%s10211_s7 + $0x80] sm:$0xff] }
 0x282   :  { %v7509_v29 = vpop.f32.mrf.mxu1 }
 0x283   :  { %v686_v30 = vadd.f32 %v6464_v7, %v674_v28  ;;  %7524 = vmatmul.mubr.msk.f32.gmra.mxu0 %vm694_vm5, %v8823_v27  ;;  %7543 = vmatmul.mubr.msk.f32.gmra.mxu1 %vm694_vm5, %v8823_v27  ;;  %v6485_v7 = vld [vmem:[%s10211_s7 + $0xa0] sm:$0xff] }
 0x284   :  { %7526 = vmatprep.mubr.msk.f32.mxu0 %vm8502_vm2, %v8501_v0  ;;  %7545 = vmatprep.mubr.msk.f32.mxu1 %vm8502_vm2, %v8501_v0 }
 0x285   :  { %v8833_v31 = vmax.f32 %v686_v30, 0.0 }
 0x287   :  { %7527 = vmatmul.mubr.msk.f32.gmra.mxu0 %vm694_vm5, %v8833_v31  ;;  %7546 = vmatmul.mubr.msk.f32.gmra.mxu1 %vm694_vm5, %v8833_v31 }
 0x288   :  { %7558 = vmatprep.mubr.msk.f32.mxu0 %vm918_vm6, %v6477_v32  ;;  %7586 = vmatprep.mubr.msk.f32.mxu1 %vm918_vm6, %v800_v33 }
 0x337   :  { %v776_v34 = vpop.f32.mrf.mxu0  ;;  %v881_v35 = vpop.f32.mrf.mxu1 }
 0x339   :  { %v7516_v36 = vpop.f32.mrf.mxu0  ;;  %v7535_v37 = vpop.f32.mrf.mxu1 }
 0x33b   :  { %v781_v38 = vpop.f32.mrf.mxu0  ;;  %v886_v39 = vpop.f32.mrf.mxu1 }
 0x33d   :  { %v7519_v40 = vpop.f32.mrf.mxu0  ;;  %v7538_v41 = vpop.f32.mrf.mxu1 }
 0x33e   :  { %v1730_v40 = vld [vmem:[%s10212_s12 + $0x18] sm:$0xff]  ;;  %v1729_v41 = vld [vmem:[%s10212_s12 + $0x10] sm:$0xff] }
 0x33f   :  { %v786_v42 = vpop.f32.mrf.mxu0  ;;  %v891_v43 = vpop.f32.mrf.mxu1 }
 0x341   :  { %v7522_v44 = vpop.f32.mrf.mxu0  ;;  %v7541_v45 = vpop.f32.mrf.mxu1 }
 0x342   :  { %v1728_v44 = vld [vmem:[%s10212_s12 + $0x8] sm:$0xff]  ;;  %v1727_v45 = vld [vmem:[%s10212_s12] sm:$0xff] }
 0x343   :  { %v791_v46 = vpop.f32.mrf.mxu0  ;;  %v896_v47 = vpop.f32.mrf.mxu1 }
 0x345   :  { %v7525_v48 = vpop.f32.mrf.mxu0  ;;  %v7544_v49 = vpop.f32.mrf.mxu1 }
 0x346   :  { %v6529_v48 = vld [vmem:[%s10211_s7 + $0xf8] sm:$0xff]  ;;  %v6530_v49 = vld [vmem:[%s10211_s7 + $0x100] sm:$0xff] }
 0x347   :  { %v796_v50 = vpop.f32.mrf.mxu0  ;;  %v901_v51 = vpop.f32.mrf.mxu1 }
 0x348   :  { %7548 = vmatprep.subr.msk.mxu0 %vm269_vm3, %v901_v51  ;;  %7576 = vmatprep.subr.msk.mxu1 %vm269_vm3, %v796_v50 }
 0x349   :  { %v7528_v52 = vpop.f32.mrf.mxu0  ;;  %v7547_v53 = vpop.f32.mrf.mxu1  ;;  %7549 = vmatpush3.msk.msra.mxu0 %vm269_vm3, %v901_v51  ;;  %7577 = vmatpush3.msk.msra.mxu1 %vm269_vm3, %v796_v50  ;;  %v6531_v50 = vld [vmem:[%s10211_s7 + $0x108] sm:$0xff]  ;;  %v6532_v51 = vld [vmem:[%s10211_s7 + $0x110] sm:$0xff] }
 0x34a   :  { %7550 = vmatprep.subr.mxu0 %v896_v47  ;;  %7578 = vmatprep.subr.mxu1 %v791_v46  ;;  %v6533_v52 = vld [vmem:[%s10211_s7 + $0x118] sm:$0xff]  ;;  %v1726_v53 = vld [vmem:[%s10213_s1] sm:$0x3] }
 0x34b   :  { %7551 = vmatpush3.msra.mxu0 %v896_v47  ;;  %7579 = vmatpush3.msra.mxu1 %v791_v46  ;;  %v6527_v46 = vld [vmem:[%s10211_s7 + $0xe8] sm:$0xff]  ;;  %v6528_v47 = vld [vmem:[%s10211_s7 + $0xf0] sm:$0xff] }
 0x34c   :  { %7552 = vmatprep.subr.mxu0 %v891_v43  ;;  %7580 = vmatprep.subr.mxu1 %v786_v42 }
 0x34d   :  { %7553 = vmatpush3.msra.mxu0 %v891_v43  ;;  %7581 = vmatpush3.msra.mxu1 %v786_v42  ;;  %v6525_v42 = vld [vmem:[%s10211_s7 + $0xd8] sm:$0xff]  ;;  %v6526_v43 = vld [vmem:[%s10211_s7 + $0xe0] sm:$0xff] }
 0x34e   :  { %7554 = vmatprep.subr.mxu0 %v886_v39  ;;  %7582 = vmatprep.subr.mxu1 %v781_v38 }
 0x34f   :  { %7555 = vmatpush3.msra.mxu0 %v886_v39  ;;  %7583 = vmatpush3.msra.mxu1 %v781_v38  ;;  %v6523_v38 = vld [vmem:[%s10211_s7 + $0xc8] sm:$0xff]  ;;  %v6524_v39 = vld [vmem:[%s10211_s7 + $0xd0] sm:$0xff] }
 0x350   :  { %7556 = vmatprep.subr.mxu0 %v881_v35  ;;  %7584 = vmatprep.subr.mxu1 %v776_v34 }
 0x351   :  { %7557 = vmatpush3.msra.mxu0 %v881_v35  ;;  %7585 = vmatpush3.msra.mxu1 %v776_v34 }
 0x352   :  { %7559 = vmatmul.mubr.msk.f32.vlgmr.msra.gmra.mxu0 %vm918_vm6, %v6478_v54  ;;  %7587 = vmatmul.mubr.msk.f32.vlgmr.msra.gmra.mxu1 %vm918_vm6, %v801_v55  ;;  %v1563_v54 = vld [vmem:[%s10214_s10 + $0x18] sm:$0xff]  ;;  %v1562_v55 = vld [vmem:[%s10214_s10 + $0x10] sm:$0xff] }
 0x353   :  { %7561 = vmatprep.mubr.msk.f32.mxu0 %vm918_vm6, %v6479_v56  ;;  %7589 = vmatprep.mubr.msk.f32.mxu1 %vm918_vm6, %v802_v57  ;;  %v1561_v56 = vld [vmem:[%s10214_s10 + $0x8] sm:$0xff]  ;;  %v1560_v57 = vld [vmem:[%s10214_s10] sm:$0xff] }
 0x354   :  { %7604 = vmatprep.subr.mxu0 %v8501_v0 }
 0x355   :  { %7605 = vmatpush3.msra.mxu0 %v6516_v58  ;;  %v1813_v58 = vld [vmem:[%s10212_s12 + $0x38] sm:$0xff] }
 0x356   :  { %7562 = vmatmul.mubr.msk.f32.gmra.mxu0 %vm918_vm6, %v6480_v59  ;;  %7590 = vmatmul.mubr.msk.f32.gmra.mxu1 %vm918_vm6, %v803_v60  ;;  %v1812_v59 = vld [vmem:[%s10212_s12 + $0x30] sm:$0xff]  ;;  %v1811_v60 = vld [vmem:[%s10212_s12 + $0x28] sm:$0xff] }
 0x357   :  { %7564 = vmatprep.mubr.msk.f32.mxu0 %vm918_vm6, %v6481_v61  ;;  %7592 = vmatprep.mubr.msk.f32.mxu1 %vm918_vm6, %v804_v62  ;;  %v1810_v61 = vld [vmem:[%s10212_s12 + $0x20] sm:$0xff] }
 0x358   :  { %7606 = vmatprep.subr.mxu0 %v8501_v0 }
 0x359   :  { %7607 = vmatpush3.msra.mxu0 %v6515_v63 }
 0x35a   :  { %7565 = vmatmul.mubr.msk.f32.gmra.mxu0 %vm918_vm6, %v6482_v1  ;;  %7593 = vmatmul.mubr.msk.f32.gmra.mxu1 %vm918_vm6, %v805_v2 }
 0x35b   :  { %7567 = vmatprep.mubr.msk.f32.mxu0 %vm918_vm6, %v6483_v3  ;;  %7595 = vmatprep.mubr.msk.f32.mxu1 %vm918_vm6, %v806_v4 }
 0x35c   :  { %7651 = vmatprep.subr.mxu0 %v1563_v54 }
 0x35e   :  { %7568 = vmatmul.mubr.msk.f32.gmra.mxu0 %vm918_vm6, %v6484_v5  ;;  %7596 = vmatmul.mubr.msk.f32.gmra.mxu1 %vm918_vm6, %v807_v6 }
 0x35f   :  { %7570 = vmatprep.mubr.msk.f32.mxu0 %vm918_vm6, %v6485_v7  ;;  %7598 = vmatprep.mubr.msk.f32.mxu1 %vm918_vm6, %v808_v8 }
 0x362   :  { %7571 = vmatmul.mubr.msk.f32.gmra.mxu0 %vm918_vm6, %v6486_v9  ;;  %7599 = vmatmul.mubr.msk.f32.gmra.mxu1 %vm918_vm6, %v809_v10 }
 0x363   :  { %7573 = vmatprep.mubr.msk.f32.mxu0 %vm918_vm6, %v6487_v11  ;;  %7601 = vmatprep.mubr.msk.f32.mxu1 %vm918_vm6, %v810_v13 }
 0x366   :  { %7574 = vmatmul.mubr.msk.f32.gmra.mxu0 %vm918_vm6, %v6488_v14  ;;  %7602 = vmatmul.mubr.msk.f32.gmra.mxu1 %vm918_vm6, %v811_v15 }
 0x367   :  { %7608 = vmatprep.mubr.msk.f32.mxu0 %vm8502_vm2, %v8501_v0 }
 0x36a   :  { %7609 = vmatmul.mubr.msk.f32.vlgmr.msra.gmra.mxu0 %vm694_vm5, %v8793_v12  ;;  %v6522_v12 = vld [vmem:[%s10211_s7 + $0xc0] sm:$0xff] }
 0x36b   :  { %7611 = vmatprep.mubr.msk.f32.mxu0 %vm8502_vm2, %v8501_v0  ;;  %7633 = vmatprep.mubr.msk.f32.mxu1 %vm918_vm6, %v6522_v12  ;;  %v9128_v12 = vld [vmem:[%s10215_s9] ss:$0 sm:$0xff] }
 0x36c   :  { %7652 = vmatpush3.msra.mxu0 %v1563_v54 }
 0x36d   :  { %7653 = vmatprep.subr.mxu0 %v1562_v55 }
 0x36e   :  { %7612 = vmatmul.mubr.msk.f32.gmra.mxu0 %vm694_vm5, %v8803_v17 }
 0x36f   :  { %7614 = vmatprep.mubr.msk.f32.mxu0 %vm8502_vm2, %v8501_v0  ;;  %7654 = vmatpush3.msra.mxu0 %v1562_v55 }
 0x370   :  { %7655 = vmatprep.subr.mxu0 %v1561_v56 }
 0x371   :  { %7656 = vmatpush3.msra.mxu0 %v1561_v56 }
 0x372   :  { %7615 = vmatmul.mubr.msk.f32.gmra.mxu0 %vm694_vm5, %v8813_v22  ;;  %7657 = vmatprep.subr.mxu0 %v1560_v57 }
 0x373   :  { %7617 = vmatprep.mubr.msk.f32.mxu0 %vm8502_vm2, %v8501_v0  ;;  %7658 = vmatpush3.msra.mxu0 %v1560_v57 }
 0x374   :  { %7699 = vmatprep.subr.mxu0 %v8501_v0 }
 0x376   :  { %7618 = vmatmul.mubr.msk.f32.gmra.mxu0 %vm694_vm5, %v8823_v27 }
 0x377   :  { %7620 = vmatprep.mubr.msk.f32.mxu0 %vm8502_vm2, %v8501_v0 }
 0x37a   :  { %7621 = vmatmul.mubr.msk.f32.gmra.mxu0 %vm694_vm5, %v8833_v31 }
 0x412   :  { %v8999_v16 = vpop.f32.mrf.mxu0  ;;  %v7588_v62 = vpop.f32.mrf.mxu1 }
 0x413   :  { %v1194_v11 = vadd.f32 %v7588_v62, %v8999_v16 }
 0x414   :  { %v9001_v17 = vpop.f32.mrf.mxu0  ;;  %v1188_v63 = vpop.f32.mrf.mxu1 }
 0x415   :  { %v1189_v14 = vadd.f32 %v1188_v63, %v9001_v17 }
 0x416   :  { %v9003_v18 = vpop.f32.mrf.mxu0  ;;  %v7591_v1 = vpop.f32.mrf.mxu1 }
 0x418   :  { %v9005_v19 = vpop.f32.mrf.mxu0  ;;  %v1198_v2 = vpop.f32.mrf.mxu1 }
 0x41a   :  { %v9007_v20 = vpop.f32.mrf.mxu0  ;;  %v7594_v3 = vpop.f32.mrf.mxu1 }
 0x41b   :  { %v1214_v17 = vadd.f32 %v7594_v3, %v9007_v20 }
 0x41c   :  { %v9009_v21 = vpop.f32.mrf.mxu0  ;;  %v1208_v4 = vpop.f32.mrf.mxu1 }
 0x41e   :  { %v9011_v22 = vpop.f32.mrf.mxu0  ;;  %v7597_v5 = vpop.f32.mrf.mxu1 }
 0x420   :  { %v9013_v23 = vpop.f32.mrf.mxu0  ;;  %v1218_v6 = vpop.f32.mrf.mxu1 }
 0x422   :  { %v9015_v24 = vpop.f32.mrf.mxu0  ;;  %v7600_v7 = vpop.f32.mrf.mxu1 }
 0x424   :  { %v9017_v25 = vpop.f32.mrf.mxu0  ;;  %v1228_v8 = vpop.f32.mrf.mxu1 }
 0x425   :  { %v1229_v56 = vadd.f32 %v1228_v8, %v9017_v25 }
 0x426   :  { %v9019_v26 = vpop.f32.mrf.mxu0  ;;  %v7603_v9 = vpop.f32.mrf.mxu1 }
 0x428   :  { %v9021_v27 = vpop.f32.mrf.mxu0  ;;  %v1238_v10 = vpop.f32.mrf.mxu1 }
 0x42a   :  { %v1316_v28 = vpop.f32.mrf.mxu0 }
 0x42c   :  { %v7610_v29 = vpop.f32.mrf.mxu0 }
 0x42d   :  { %v1204_v29 = vadd.f32 %v7591_v1, %v9003_v18  ;;  %v1209_v18 = vadd.f32 %v1208_v4, %v9009_v21  ;;  %v1239_v1 = vadd.f32 %v1238_v10, %v9021_v27 }
 0x42e   :  { %v1321_v30 = vpop.f32.mrf.mxu0 }
 0x430   :  { %v7613_v31 = vpop.f32.mrf.mxu0 }
 0x432   :  { %v1326_v32 = vpop.f32.mrf.mxu0 }
 0x434   :  { %v7616_v33 = vpop.f32.mrf.mxu0 }
 0x435   :  { %v1199_v33 = vadd.f32 %v1198_v2, %v9005_v19 }
 0x436   :  { %v1331_v34 = vpop.f32.mrf.mxu0 }
 0x438   :  { %v7619_v35 = vpop.f32.mrf.mxu0 }
 0x43a   :  { %v1336_v36 = vpop.f32.mrf.mxu0 }
 0x43b   :  { %7623 = vmatprep.subr.msk.mxu1 %vm269_vm3, %v1336_v36 }
 0x43c   :  { %v7622_v37 = vpop.f32.mrf.mxu0  ;;  %7624 = vmatpush3.msk.msra.mxu1 %vm269_vm3, %v1336_v36 }
 0x43d   :  { %7625 = vmatprep.subr.mxu1 %v1331_v34 }
 0x43e   :  { %7626 = vmatpush3.msra.mxu1 %v1331_v34 }
 0x43f   :  { %7627 = vmatprep.subr.mxu1 %v1326_v32 }
 0x440   :  { %7628 = vmatpush3.msra.mxu1 %v1326_v32 }
 0x441   :  { %7629 = vmatprep.subr.mxu1 %v1321_v30 }
 0x442   :  { %7630 = vmatpush3.msra.mxu1 %v1321_v30 }
 0x443   :  { %7631 = vmatprep.subr.mxu1 %v1316_v28 }
 0x444   :  { %7632 = vmatpush3.msra.mxu1 %v1316_v28 }
 0x445   :  { %7634 = vmatmul.mubr.msk.f32.vlgmr.msra.gmra.mxu1 %vm918_vm6, %v6523_v38  ;;  %7677 = vmatprep.subr.mxu1 %v8501_v0 }
 0x446   :  { %7636 = vmatprep.mubr.msk.f32.mxu1 %vm918_vm6, %v6524_v39  ;;  %7678 = vmatpush3.msra.mxu1 %v1730_v40 }
 0x447   :  { %7679 = vmatprep.subr.mxu1 %v8501_v0 }
 0x448   :  { %7680 = vmatpush3.msra.mxu1 %v1729_v41 }
 0x449   :  { %7637 = vmatmul.mubr.msk.f32.gmra.mxu1 %vm918_vm6, %v6525_v42  ;;  %7681 = vmatprep.subr.mxu1 %v8501_v0 }
 0x44a   :  { %7639 = vmatprep.mubr.msk.f32.mxu1 %vm918_vm6, %v6526_v43  ;;  %7682 = vmatpush3.msra.mxu1 %v1728_v44  ;;  %v1224_v43 = vadd.f32 %v7597_v5, %v9011_v22 }
 0x44b   :  { %7683 = vmatprep.subr.mxu1 %v8501_v0 }
 0x44c   :  { %7684 = vmatpush3.msra.mxu1 %v1727_v45 }
 0x44d   :  { %7640 = vmatmul.mubr.msk.f32.gmra.mxu1 %vm918_vm6, %v6527_v46  ;;  %7688 = vmatprep.subr.mxu1 %v8501_v0 }
 0x44e   :  { %7642 = vmatprep.mubr.msk.f32.mxu1 %vm918_vm6, %v6528_v47 }
 0x451   :  { %7643 = vmatmul.mubr.msk.f32.gmra.mxu1 %vm918_vm6, %v6529_v48  ;;  %v1219_v48 = vadd.f32 %v1218_v6, %v9013_v23 }
 0x452   :  { %7645 = vmatprep.mubr.msk.f32.mxu1 %vm918_vm6, %v6530_v49 }
 0x455   :  { %7646 = vmatmul.mubr.msk.f32.gmra.mxu1 %vm918_vm6, %v6531_v50 }
 0x456   :  { %7648 = vmatprep.mubr.msk.f32.mxu1 %vm918_vm6, %v6532_v51  ;;  %v1234_v51 = vadd.f32 %v7600_v7, %v9015_v24 }
 0x459   :  { %7649 = vmatmul.mubr.msk.f32.gmra.mxu1 %vm918_vm6, %v6533_v52 }
 0x45a   :  { %7685 = vmatprep.mubr.msk.f32.mxu1 %vm8502_vm2, %v8501_v0 }
 0x45d   :  { %7686 = vmatmul.mubr.msk.f32.vlgmr.msra.gmra.mxu1 %vm1564_vm7, %v1726_v53 }
 0x45e   :  { %7696 = vmatprep.mubr.msk.f32.mxu1 %vm8502_vm2, %v8501_v0  ;;  %7689 = vmatpush3.msra.mxu1 %v1813_v58 }
 0x45f   :  { %7690 = vmatprep.subr.mxu1 %v8501_v0 }
 0x460   :  { %7691 = vmatpush3.msra.mxu1 %v1812_v59  ;;  %v1244_v59 = vadd.f32 %v7603_v9, %v9019_v26  ;;  %v6560_v26 = vld [vmem:[%s10216_s13] ss:$0 sm:$0xff] }
 0x461   :  { %7692 = vmatprep.subr.mxu1 %v8501_v0 }
 0x462   :  { %7693 = vmatpush3.msra.mxu1 %v1811_v60 }
 0x463   :  { %7694 = vmatprep.subr.mxu1 %v8501_v0 }
 0x464   :  { %7695 = vmatpush3.msra.mxu1 %v1810_v61 }
 0x465   :  { %7710 = vmatprep.subr.mxu1 %v8501_v0 }
 0x505   :  { %v7635_v13 = vpop.f32.mrf.mxu1 }
 0x506   :  { %v1518_v15 = vadd.f32 %v7635_v13, %v1194_v11 }
 0x507   :  { %v1458_v28 = vpop.f32.mrf.mxu1 }
 0x508   :  { %v1517_v30 = vadd.f32 %v1458_v28, %v1189_v14  ;;  %v1537_v31 = vadd.f32 %v9128_v12, %v1518_v15  ;;  %v1896_v15 = vld [vmem:[%s10212_s12 + $0x58] sm:$0xff]  ;;  %v1894_v28 = vld [vmem:[%s10212_s12 + $0x48] sm:$0xff] }
 0x509   :  { %v7638_v32 = vpop.f32.mrf.mxu1 }
 0x50a   :  { %v1536_v16 = vadd.f32 %v9128_v12, %v1517_v30  ;;  %v1520_v34 = vadd.f32 %v7638_v32, %v1204_v29  ;;  %v1549_v38 = vmax.f32 %v1537_v31, 0.0  ;;  %v1893_v29 = vld [vmem:[%s10212_s12 + $0x40] sm:$0xff] }
 0x50b   :  { %v1468_v35 = vpop.f32.mrf.mxu1  ;;  %v1976_v30 = vld [vmem:[%s10212_s12 + $0x60] sm:$0xf] }
 0x50c   :  { %v1548_v36 = vmax.f32 %v1536_v16, 0.0  ;;  %v1519_v37 = vadd.f32 %v1468_v35, %v1199_v33  ;;  %v1539_v39 = vadd.f32 %v9128_v12, %v1520_v34  ;;  %v1975_v31 = vld [vmem:[%s10217_s2] sm:$0x3] }
 0x50d   :  { %v7641_v40 = vpop.f32.mrf.mxu1 }
 0x50e   :  { %v1538_v41 = vadd.f32 %v9128_v12, %v1519_v37  ;;  %v1522_v42 = vadd.f32 %v7641_v40, %v1214_v17  ;;  %7659 = vmatprep.mubr.msk.f32.mxu0 %vm1564_vm7, %v1548_v36  ;;  %v1551_v45 = vmax.f32 %v1539_v39, 0.0  ;;  %v2243_v17 = vld [vmem:[%s10212_s12 + $0x64] sm:$0xf]  ;;  %v2232_v37 = vld [vmem:[%s10218_s0 + $0x8] sm:$0xff]  ;;  %v2233_v40 = vld [vmem:[%s10218_s0 + $0x10] sm:$0xff] }
 0x50f   :  { %v1478_v19 = vpop.f32.mrf.mxu1  ;;  %7660 = vmatmul.mubr.msk.f32.vlgmr.msra.gmra.mxu0 %vm1564_vm7, %v1549_v38  ;;  %v2231_v36 = vld [vmem:[%s10218_s0] sm:$0xff] }
 0x510   :  { %v1550_v44 = vmax.f32 %v1538_v41, 0.0  ;;  %v1521_v20 = vadd.f32 %v1478_v19, %v1209_v18  ;;  %v1541_v46 = vadd.f32 %v9128_v12, %v1522_v42  ;;  %7700 = vmatpush3.msra.mxu0 %v1896_v15  ;;  %v2053_v39 = vld [vmem:[%s10219_s11] sm:$0xff]  ;;  %v2234_v18 = vld [vmem:[%s10218_s0 + $0x18] sm:$0xff]  ;;  %v2236_v42 = vld [vmem:[%s10218_s0 + $0x28] sm:$0xff] }
 0x511   :  { %v7644_v47 = vpop.f32.mrf.mxu1  ;;  %7701 = vmatprep.subr.mxu0 %v8501_v0  ;;  %v2235_v41 = vld [vmem:[%s10218_s0 + $0x20] sm:$0xff]  ;;  %v2237_v19 = vld [vmem:[%s10218_s0 + $0x30] sm:$0xff] }
 0x512   :  { %v1540_v21 = vadd.f32 %v9128_v12, %v1521_v20  ;;  %v1524_v49 = vadd.f32 %v7644_v47, %v1224_v43  ;;  %7662 = vmatprep.mubr.msk.f32.mxu0 %vm1564_vm7, %v1550_v44  ;;  %v1553_v53 = vmax.f32 %v1541_v46, 0.0  ;;  %v2238_v43 = vld [vmem:[%s10218_s0 + $0x38] sm:$0xff]  ;;  %v2239_v44 = vld [vmem:[%s10218_s0 + $0x40] sm:$0xff]  ;;  %v2240_v20 = vld [vmem:[%s10218_s0 + $0x48] sm:$0xff] }
 0x513   :  { %v1488_v50 = vpop.f32.mrf.mxu1  ;;  %7663 = vmatmul.mubr.msk.f32.gmra.mxu0 %vm1564_vm7, %v1551_v45  ;;  %v2241_v45 = vld [vmem:[%s10218_s0 + $0x50] sm:$0xff]  ;;  %v2242_v46 = vld [vmem:[%s10218_s0 + $0x58] sm:$0xff] }
 0x514   :  { %v1552_v52 = vmax.f32 %v1540_v21, 0.0  ;;  %v1523_v22 = vadd.f32 %v1488_v50, %v1219_v48  ;;  %v1543_v54 = vadd.f32 %v9128_v12, %v1524_v49 }
 0x515   :  { %v7647_v55 = vpop.f32.mrf.mxu1 }
 0x516   :  { %v1542_v23 = vadd.f32 %v9128_v12, %v1523_v22  ;;  %v1526_v57 = vadd.f32 %v7647_v55, %v1234_v51  ;;  %7665 = vmatprep.mubr.msk.f32.mxu0 %vm1564_vm7, %v1552_v52  ;;  %v1555_v61 = vmax.f32 %v1543_v54, 0.0 }
 0x517   :  { %v1498_v58 = vpop.f32.mrf.mxu1  ;;  %7666 = vmatmul.mubr.msk.f32.gmra.mxu0 %vm1564_vm7, %v1553_v53 }
 0x518   :  { %v1554_v60 = vmax.f32 %v1542_v23, 0.0  ;;  %v1525_v24 = vadd.f32 %v1498_v58, %v1229_v56  ;;  %v1545_v62 = vadd.f32 %v9128_v12, %v1526_v57  ;;  %v6564_v23 = vld [vmem:[%s10216_s13 + $0x2] ss:$0 sm:$0xff] }
 0x519   :  { %v7650_v63 = vpop.f32.mrf.mxu1 }
 0x51a   :  { %v1544_v25 = vadd.f32 %v9128_v12, %v1525_v24  ;;  %v1528_v2 = vadd.f32 %v7650_v63, %v1244_v59  ;;  %7668 = vmatprep.mubr.msk.f32.mxu0 %vm1564_vm7, %v1554_v60  ;;  %v1557_v6 = vmax.f32 %v1545_v62, 0.0  ;;  %v2054_v24 = vld [vmem:[%s10219_s11 + $0x8] sm:$0xff]  ;;  %v2055_v62 = vld [vmem:[%s10219_s11 + $0x10] sm:$0xff]  ;;  %v2056_v63 = vld [vmem:[%s10219_s11 + $0x18] sm:$0xff] }
 0x51b   :  { %v1508_v3 = vpop.f32.mrf.mxu1  ;;  %7669 = vmatmul.mubr.msk.f32.gmra.mxu0 %vm1564_vm7, %v1555_v61  ;;  %v2454_v61 = vld [vmem:[%s10220_s14 + $0x18] sm:$0xff] }
 0x51c   :  { %v1556_v4 = vmax.f32 %v1544_v25, 0.0  ;;  %v1527_v5 = vadd.f32 %v1508_v3, %v1239_v1  ;;  %v1547_v7 = vadd.f32 %v9128_v12, %v1528_v2  ;;  %v2057_v1 = vld [vmem:[%s10219_s11 + $0x20] sm:$0xff]  ;;  %v2058_v25 = vld [vmem:[%s10219_s11 + $0x28] sm:$0xff]  ;;  %v2059_v2 = vld [vmem:[%s10219_s11 + $0x30] sm:$0xff] }
 0x51d   :  { %v1805_v8 = vpop.f32.mrf.mxu1  ;;  %v2060_v3 = vld [vmem:[%s10219_s11 + $0x38] sm:$0xff] }
 0x51e   :  { %v1546_v27 = vadd.f32 %v9128_v12, %v1527_v5  ;;  %v1806_v9 = vadd.f32 %v6560_v26, %v1805_v8  ;;  %7671 = vmatprep.mubr.msk.f32.mxu0 %vm1564_vm7, %v1556_v4  ;;  %v1559_v14 = vmax.f32 %v1547_v7, 0.0  ;;  %v1895_v12 = vld [vmem:[%s10212_s12 + $0x50] sm:$0xff]  ;;  %v2061_v26 = vld [vmem:[%s10219_s11 + $0x40] sm:$0xff]  ;;  %v2062_v4 = vld [vmem:[%s10219_s11 + $0x48] sm:$0xff] }
 0x51f   :  { %7672 = vmatmul.mubr.msk.f32.gmra.mxu0 %vm1564_vm7, %v1557_v6  ;;  %v7687_v10 = vpop.f32.mrf.mxu1  ;;  %v2063_v5 = vld [vmem:[%s10219_s11 + $0x50] sm:$0xff]  ;;  %v2064_v6 = vld [vmem:[%s10219_s11 + $0x58] sm:$0xff]  ;;  %v2452_v8 = vld [vmem:[%s10220_s14 + $0x8] sm:$0xff] }
 0x520   :  { %v1558_v11 = vmax.f32 %v1546_v27, 0.0  ;;  %v1809_v13 = vmax.f32 %v1806_v9, 0.0  ;;  %7702 = vmatpush3.msra.mxu0 %v1895_v12  ;;  %v2453_v7 = vld [vmem:[%s10220_s14 + $0x10] sm:$0xff]  ;;  %v2451_v27 = vld [vmem:[%s10220_s14] sm:$0xff] }
 0x521   :  { %7703 = vmatprep.subr.mxu0 %v8501_v0  ;;  %v6581_v12 = vld [vmem:[%s10216_s13 + $0x3] ss:$0 sm:$0xff] }
 0x522   :  { %7674 = vmatprep.mubr.msk.f32.mxu0 %vm1564_vm7, %v1558_v11  ;;  %7697 = vmatmul.mubr.msk.f32.vlgmr.msra.gmra.mxu1 %vm1564_vm7, %v1809_v13 }
 0x523   :  { %7675 = vmatmul.mubr.msk.f32.gmra.mxu0 %vm1564_vm7, %v1559_v14  ;;  %7712 = vmatprep.mubr.msk.f32.mxu1 %vm8502_vm2, %v8501_v0 }
 0x524   :  { %7707 = vmatprep.mubr.msk.f32.mxu0 %vm8502_vm2, %v8501_v0  ;;  %7704 = vmatpush3.msra.mxu0 %v1894_v28 }
 0x525   :  { %7705 = vmatprep.subr.mxu0 %v8501_v0  ;;  %7711 = vmatpush3.msk.msra.mxu1 %vm73_vm0, %v1976_v30  ;;  %v6562_v0 = vld [vmem:[%s10216_s13 + $0x1] ss:$0 sm:$0xff] }
 0x526   :  { %7706 = vmatpush3.msra.mxu0 %v1893_v29  ;;  %7713 = vmatmul.mubr.msk.f32.vlgmr.msra.gmra.mxu1 %vm63_vm1, %v1975_v31 }
 0x527   :  { %7735 = vmatprep.subr.msk.mxu1 %vm73_vm0, %v2243_v17  ;;  %7737 = vmatprep.mubr.msk.f32.mxu1 %vm63_vm1, %v2231_v36 }
 0x528   :  { %7736 = vmatpush3.msk.msra.mxu1 %vm73_vm0, %v2243_v17 }
 0x52a   :  { %7738 = vmatmul.mubr.msk.f32.vlgmr.msra.gmra.mxu1 %vm63_vm1, %v2232_v37 }
 0x52b   :  { %7740 = vmatprep.mubr.msk.f32.mxu1 %vm63_vm1, %v2233_v40 }
 0x52e   :  { %7741 = vmatmul.mubr.msk.f32.gmra.mxu1 %vm63_vm1, %v2234_v18 }
 0x52f   :  { %7743 = vmatprep.mubr.msk.f32.mxu1 %vm63_vm1, %v2235_v41 }
 0x532   :  { %7744 = vmatmul.mubr.msk.f32.gmra.mxu1 %vm63_vm1, %v2236_v42 }
 0x533   :  { %7746 = vmatprep.mubr.msk.f32.mxu1 %vm63_vm1, %v2237_v19 }
 0x536   :  { %7747 = vmatmul.mubr.msk.f32.gmra.mxu1 %vm63_vm1, %v2238_v43 }
 0x537   :  { %7749 = vmatprep.mubr.msk.f32.mxu1 %vm63_vm1, %v2239_v44 }
 0x53a   :  { %7750 = vmatmul.mubr.msk.f32.gmra.mxu1 %vm63_vm1, %v2240_v20 }
 0x53b   :  { %7752 = vmatprep.mubr.msk.f32.mxu1 %vm63_vm1, %v2241_v45 }
 0x53e   :  { %7753 = vmatmul.mubr.msk.f32.gmra.mxu1 %vm63_vm1, %v2242_v46 }
 0x5cf   :  { %v9256_v47 = vpop.f32.mrf.mxu0 }
 0x5d1   :  { %v9258_v48 = vpop.f32.mrf.mxu0 }
 0x5d3   :  { %v9260_v21 = vpop.f32.mrf.mxu0 }
 0x5d5   :  { %v9262_v49 = vpop.f32.mrf.mxu0 }
 0x5d7   :  { %v9264_v50 = vpop.f32.mrf.mxu0 }
 0x5d9   :  { %v9266_v51 = vpop.f32.mrf.mxu0 }
 0x5db   :  { %v9268_v52 = vpop.f32.mrf.mxu0 }
 0x5dd   :  { %v9270_v22 = vpop.f32.mrf.mxu0 }
 0x5df   :  { %v9272_v53 = vpop.f32.mrf.mxu0 }
 0x5e1   :  { %v9274_v54 = vpop.f32.mrf.mxu0 }
 0x5e2   :  { %v1888_v32 = vpop.f32.mrf.mxu1 }
 0x5e3   :  { %v1889_v33 = vadd.f32 %v6562_v0, %v1888_v32  ;;  %v9276_v55 = vpop.f32.mrf.mxu0 }
 0x5e4   :  { %v7698_v16 = vpop.f32.mrf.mxu1 }
 0x5e5   :  { %v1892_v34 = vmax.f32 %v1889_v33, 0.0  ;;  %v9278_v56 = vpop.f32.mrf.mxu0 }
 0x5e6   :  { %v2049_v35 = vpop.f32.mrf.mxu1 }
 0x5e7   :  { %7708 = vmatmul.mubr.msk.f32.vlgmr.msra.gmra.mxu0 %vm1564_vm7, %v1892_v34 }
 0x5e8   :  { %v7714_v38 = vpop.f32.mrf.mxu1  ;;  %7717 = vmatprep.mubr.msk.f32.mxu0 %vm2066_vm8, %v2053_v39 }
 0x5ea   :  { %v7739_v9 = vpop.f32.mrf.mxu1 }
 0x5eb   :  { %v2360_v28 = vadd.f32 %v7739_v9, %v6581_v12 }
 0x5ec   :  { %v2354_v10 = vpop.f32.mrf.mxu1 }
 0x5ed   :  { %v2355_v31 = vadd.f32 %v6581_v12, %v2354_v10  ;;  %v2458_v10 = vld [vmem:[%s10220_s14 + $0x38] sm:$0xff] }
 0x5ee   :  { %v7742_v11 = vpop.f32.mrf.mxu1 }
 0x5ef   :  { %v2370_v33 = vadd.f32 %v7742_v11, %v6581_v12  ;;  %v2457_v11 = vld [vmem:[%s10220_s14 + $0x30] sm:$0xff] }
 0x5f0   :  { %v2364_v13 = vpop.f32.mrf.mxu1 }
 0x5f1   :  { %v2365_v36 = vadd.f32 %v6581_v12, %v2364_v13  ;;  %v2456_v13 = vld [vmem:[%s10220_s14 + $0x28] sm:$0xff] }
 0x5f2   :  { %v7745_v14 = vpop.f32.mrf.mxu1 }
 0x5f3   :  { %v2380_v40 = vadd.f32 %v7745_v14, %v6581_v12  ;;  %v2455_v14 = vld [vmem:[%s10220_s14 + $0x20] sm:$0xff] }
 0x5f4   :  { %v2374_v15 = vpop.f32.mrf.mxu1 }
 0x5f5   :  { %v2375_v43 = vadd.f32 %v6581_v12, %v2374_v15  ;;  %v2466_v15 = vld [vmem:[%s10220_s14 + $0x78] sm:$0xff] }
 0x5f6   :  { %v7748_v29 = vpop.f32.mrf.mxu1 }
 0x5f7   :  { %v2390_v46 = vadd.f32 %v7748_v29, %v6581_v12 }
 0x5f8   :  { %v2384_v16 = vpop.f32.mrf.mxu1 }
 0x5fa   :  { %v7751_v18 = vpop.f32.mrf.mxu1 }
 0x6a7   :  { %v1971_v57 = vpop.f32.mrf.mxu0 }
 0x6a8   :  { %v1972_v58 = vadd.f32 %v6564_v23, %v1971_v57 }
 0x6a9   :  { %v7709_v59 = vpop.f32.mrf.mxu0 }
 0x6aa   :  { %v2065_v60 = vadd.f32 %v2049_v35, %v1972_v58  ;;  %v2385_v58 = vadd.f32 %v6581_v12, %v2384_v16 }
 0x6ac   :  { %7715 = vmatprep.subr.msk.mxu0 %vm269_vm3, %v2065_v60 }
 0x6ad   :  { %7716 = vmatpush3.msk.msra.mxu0 %vm269_vm3, %v2065_v60 }
 0x6ae   :  { %7718 = vmatmul.mubr.msk.f32.vlgmr.msra.gmra.mxu0 %vm2066_vm8, %v2054_v24  ;;  %7755 = vmatprep.subr.mxu0 %v2454_v61  ;;  %v2400_v24 = vadd.f32 %v7751_v18, %v6581_v12 }
 0x6af   :  { %7720 = vmatprep.mubr.msk.f32.mxu0 %vm2066_vm8, %v2055_v62  ;;  %7756 = vmatpush3.msra.mxu0 %v2454_v61 }
 0x6b0   :  { %7757 = vmatprep.subr.mxu0 %v2453_v7 }
 0x6b1   :  { %7758 = vmatpush3.msra.mxu0 %v2453_v7 }
 0x6b2   :  { %7721 = vmatmul.mubr.msk.f32.gmra.mxu0 %vm2066_vm8, %v2056_v63  ;;  %7759 = vmatprep.subr.mxu0 %v2452_v8 }
 0x6b3   :  { %7723 = vmatprep.mubr.msk.f32.mxu0 %vm2066_vm8, %v2057_v1  ;;  %7760 = vmatpush3.msra.mxu0 %v2452_v8 }
 0x6b4   :  { %7761 = vmatprep.subr.mxu0 %v2451_v27 }
 0x6b5   :  { %7762 = vmatpush3.msra.mxu0 %v2451_v27 }
 0x6b6   :  { %7724 = vmatmul.mubr.msk.f32.gmra.mxu0 %vm2066_vm8, %v2058_v25  ;;  %7807 = vmatprep.subr.mxu0 %v2458_v10 }
 0x6b7   :  { %7726 = vmatprep.mubr.msk.f32.mxu0 %vm2066_vm8, %v2059_v2 }
 0x6ba   :  { %7727 = vmatmul.mubr.msk.f32.gmra.mxu0 %vm2066_vm8, %v2060_v3 }
 0x6bb   :  { %7729 = vmatprep.mubr.msk.f32.mxu0 %vm2066_vm8, %v2061_v26 }
 0x6be   :  { %7730 = vmatmul.mubr.msk.f32.gmra.mxu0 %vm2066_vm8, %v2062_v4 }
 0x6bf   :  { %7732 = vmatprep.mubr.msk.f32.mxu0 %vm2066_vm8, %v2063_v5 }
 0x6c2   :  { %7733 = vmatmul.mubr.msk.f32.gmra.mxu0 %vm2066_vm8, %v2064_v6 }
 0x76e   :  { %v7719_v30 = vpop.f32.mrf.mxu0 }
 0x76f   :  { %v2414_v0 = vadd.f32 %v7719_v30, %v2360_v28  ;;  %v9403_v30 = vld [vmem:[%s10221_s15] sm:$0x7] }
 0x770   :  { %v2172_v32 = vpop.f32.mrf.mxu0 }
 0x771   :  { %v2413_v34 = vadd.f32 %v2355_v31, %v2172_v32  ;;  %v2426_v37 = vadd.f32 %v9256_v47, %v2414_v0 }
 0x772   :  { %v7722_v35 = vpop.f32.mrf.mxu0 }
 0x773   :  { %v2425_v17 = vadd.f32 %v2413_v34, %v9258_v48  ;;  %v2416_v38 = vadd.f32 %v7722_v35, %v2370_v33  ;;  %v2394_v48 = vpop.f32.mrf.mxu1 }
 0x774   :  { %v2182_v39 = vpop.f32.mrf.mxu0  ;;  %v2395_v1 = vadd.f32 %v6581_v12, %v2394_v48 }
 0x775   :  { %v2415_v41 = vadd.f32 %v2365_v36, %v2182_v39  ;;  %7763 = vmatprep.mubr.msk.f32.mxu0 %vm1564_vm7, %v2425_v17  ;;  %v2428_v44 = vadd.f32 %v9260_v21, %v2416_v38  ;;  %v7754_v61 = vpop.f32.mrf.mxu1 }
 0x776   :  { %v7725_v42 = vpop.f32.mrf.mxu0  ;;  %7764 = vmatmul.mubr.msk.f32.vlgmr.msra.gmra.mxu0 %vm1564_vm7, %v2426_v37  ;;  %v2410_v3 = vadd.f32 %v7754_v61, %v6581_v12  ;;  %v2463_v61 = vld [vmem:[%s10220_s14 + $0x60] sm:$0xff] }
 0x777   :  { %v2427_v19 = vadd.f32 %v2415_v41, %v9262_v49  ;;  %v2418_v20 = vadd.f32 %v7725_v42, %v2380_v40  ;;  %v2404_v26 = vpop.f32.mrf.mxu1  ;;  %7808 = vmatpush3.msra.mxu0 %v2458_v10  ;;  %v2676_v10 = vld [vmem:[#allocation2 + $0x29] sm:$0xff] }
 0x778   :  { %v2192_v45 = vpop.f32.mrf.mxu0  ;;  %v2405_v6 = vadd.f32 %v6581_v12, %v2404_v26  ;;  %7809 = vmatprep.subr.mxu0 %v2457_v11  ;;  %v2472_v12 = vlaneseq }
 0x779   :  { %v2417_v47 = vadd.f32 %v2375_v43, %v2192_v45  ;;  %7766 = vmatprep.mubr.msk.f32.mxu0 %vm1564_vm7, %v2427_v19  ;;  %v2430_v59 = vadd.f32 %v9264_v50, %v2418_v20  ;;  %7810 = vmatpush3.msra.mxu0 %v2457_v11 }
 0x77a   :  { %v7728_v23 = vpop.f32.mrf.mxu0  ;;  %7767 = vmatmul.mubr.msk.f32.gmra.mxu0 %vm1564_vm7, %v2428_v44  ;;  %7811 = vmatprep.subr.mxu0 %v2456_v13  ;;  %v9395_v28 = vshrl.u32 %v2472_v12, 7 }
 0x77b   :  { %v2429_v57 = vadd.f32 %v2417_v47, %v9266_v51  ;;  %v2420_v60 = vadd.f32 %v7728_v23, %v2390_v46  ;;  %7812 = vmatpush3.msra.mxu0 %v2456_v13  ;;  %v2465_v47 = vld [vmem:[%s10220_s14 + $0x70] sm:$0xff] }
 0x77c   :  { %v2202_v49 = vpop.f32.mrf.mxu0  ;;  %7813 = vmatprep.subr.mxu0 %v2455_v14  ;;  %v9398_v29 = vsub.s32 0, %v9395_v28 }
 0x77d   :  { %v2419_v21 = vadd.f32 %v2385_v58, %v2202_v49  ;;  %7769 = vmatprep.mubr.msk.f32.mxu0 %vm1564_vm7, %v2429_v57  ;;  %v2432_v25 = vadd.f32 %v9268_v52, %v2420_v60  ;;  %7814 = vmatpush3.msra.mxu0 %v2455_v14  ;;  %v2464_v58 = vld [vmem:[%s10220_s14 + $0x68] sm:$0xff] }
 0x77e   :  { %v7731_v62 = vpop.f32.mrf.mxu0  ;;  %7770 = vmatmul.mubr.msk.f32.gmra.mxu0 %vm1564_vm7, %v2430_v59  ;;  %v2475_v31 = vrot.slane %v9403_v30, %v9398_v29 }
 0x77f   :  { %v2431_v63 = vadd.f32 %v2419_v21, %v9270_v22  ;;  %v2422_v2 = vadd.f32 %v7731_v62, %v2400_v24 }
 0x780   :  { %v2212_v51 = vpop.f32.mrf.mxu0 }
 0x781   :  { %v2421_v50 = vadd.f32 %v2395_v1, %v2212_v51  ;;  %7772 = vmatprep.mubr.msk.f32.mxu0 %vm1564_vm7, %v2431_v63  ;;  %v2434_v7 = vadd.f32 %v9272_v53, %v2422_v2  ;;  %v2461_v53 = vld [vmem:[%s10220_s14 + $0x50] sm:$0xff] }
 0x782   :  { %v7734_v4 = vpop.f32.mrf.mxu0  ;;  %7773 = vmatmul.mubr.msk.f32.gmra.mxu0 %vm1564_vm7, %v2432_v25 }
 0x783   :  { %v2433_v5 = vadd.f32 %v2421_v50, %v9274_v54  ;;  %v2424_v8 = vadd.f32 %v7734_v4, %v2410_v3  ;;  %v2462_v54 = vld [vmem:[%s10220_s14 + $0x58] sm:$0xff]  ;;  %v2665_v50 = vld [vmem:[#allocation2 + $0x2f] sm:$0xff] }
 0x784   :  { %v2222_v22 = vpop.f32.mrf.mxu0  ;;  %7781 = vmatprep.subr.mxu1 %v2462_v54 }
 0x785   :  { %v2423_v27 = vadd.f32 %v2405_v6, %v2222_v22  ;;  %7775 = vmatprep.mubr.msk.f32.mxu0 %vm1564_vm7, %v2433_v5  ;;  %v2436_v9 = vadd.f32 %v9276_v55, %v2424_v8  ;;  %7782 = vmatpush3.msra.mxu1 %v2462_v54  ;;  %v2460_v55 = vld [vmem:[%s10220_s14 + $0x48] sm:$0xff] }
 0x786   :  { %7776 = vmatmul.mubr.msk.f32.gmra.mxu0 %vm1564_vm7, %v2434_v7  ;;  %7783 = vmatprep.subr.mxu1 %v2461_v53 }
 0x787   :  { %v2435_v52 = vadd.f32 %v2423_v27, %v9278_v56  ;;  %7784 = vmatpush3.msra.mxu1 %v2461_v53  ;;  %v2459_v56 = vld [vmem:[%s10220_s14 + $0x40] sm:$0xff] }
 0x788   :  { %7785 = vmatprep.subr.mxu1 %v2460_v55 }
 0x789   :  { %7778 = vmatprep.mubr.msk.f32.mxu0 %vm1564_vm7, %v2435_v52  ;;  %7786 = vmatpush3.msra.mxu1 %v2460_v55  ;;  %v2671_v55 = vld [vmem:[#allocation2 + $0x5f] sm:$0xff] }
 0x78a   :  { %7779 = vmatmul.mubr.msk.f32.gmra.mxu0 %vm1564_vm7, %v2436_v9  ;;  %7787 = vmatprep.subr.mxu1 %v2459_v56 }
 0x78b   :  { %7788 = vmatpush3.msra.mxu1 %v2459_v56 }
 0x78c   :  { %7833 = vmatprep.subr.mxu1 %v2466_v15 }
 0x836   :  { %v7765_v0 = vpop.f32.mrf.mxu0 }
 0x837   :  { %v2584_v32 = vadd.f32 %v7765_v0, %v2475_v31 }
 0x838   :  { %v2578_v33 = vpop.f32.mrf.mxu0 }
 0x839   :  { %8309 = vtanh.f32 %v2584_v32  ;;  %v2579_v16 = vadd.f32 %v2578_v33, %v2475_v31  ;;  %v2683_v32 = vld [vmem:[#allocation2 + $0x61] sm:$0xff]  ;;  %v2470_v33 = vld [vmem:[%s10220_s14 + $0x98] sm:$0xff] }
 0x83a   :  { %v7768_v34 = vpop.f32.mrf.mxu0  ;;  %7859 = vmatprep.subr.mxu0 %v2470_v33 }
 0x83b   :  { %8311 = vtanh.f32 %v2579_v16  ;;  %v2594_v35 = vadd.f32 %v7768_v34, %v2475_v31  ;;  %v2469_v16 = vld [vmem:[%s10220_s14 + $0x90] sm:$0xff]  ;;  %v2468_v34 = vld [vmem:[%s10220_s14 + $0x88] sm:$0xff] }
 0x83c   :  { %v2588_v17 = vpop.f32.mrf.mxu0 }
 0x83d   :  { %8313 = vtanh.f32 %v2594_v35  ;;  %v2589_v36 = vadd.f32 %v2588_v17, %v2475_v31  ;;  %v2467_v35 = vld [vmem:[%s10220_s14 + $0x80] sm:$0xff]  ;;  %v6658_v17 = vld [vmem:[%s10220_s14 + $0xb8] sm:$0xff] }
 0x83e   :  { %v7771_v37 = vpop.f32.mrf.mxu0 }
 0x83f   :  { %8315 = vtanh.f32 %v2589_v36  ;;  %v2604_v38 = vadd.f32 %v7771_v37, %v2475_v31 }
 0x840   :  { %v2598_v39 = vpop.f32.mrf.mxu0 }
 0x841   :  { %v2599_v40 = vadd.f32 %v2598_v39, %v2475_v31 }
 0x842   :  { %v7774_v18 = vpop.f32.mrf.mxu0 }
 0x843   :  { %8317 = vtanh.f32 %v2599_v40  ;;  %v2614_v41 = vadd.f32 %v7774_v18, %v2475_v31 }
 0x844   :  { %8319 = vtanh.f32 %v2604_v38  ;;  %v2608_v42 = vpop.f32.mrf.mxu0 }
 0x845   :  { %8321 = vtanh.f32 %v2614_v41  ;;  %v2609_v19 = vadd.f32 %v2608_v42, %v2475_v31 }
 0x846   :  { %v8310_v43 = vpop.eup %8309  ;;  %v7777_v44 = vpop.f32.mrf.mxu0 }
 0x847   :  { %2650 = vst.msk [vmem:[#allocation2 + $0x10] sm:$0xff] %vm1564_vm7, %v8310_v43  ;;  %8323 = vtanh.f32 %v2609_v19  ;;  %v2624_v20 = vadd.f32 %v7777_v44, %v2475_v31 }
 0x848   :  { %v8312_v45 = vpop.eup %8311  ;;  %v2618_v46 = vpop.f32.mrf.mxu0 }
 0x849   :  { %2649 = vst.msk [vmem:[#allocation2 + $0x8] sm:$0xff] %vm1564_vm7, %v8312_v45  ;;  %8325 = vtanh.f32 %v2624_v20  ;;  %v2619_v48 = vadd.f32 %v2618_v46, %v2475_v31  ;;  %7789 = vmatprep.mubr.msk.f32.mxu1 %vm1564_vm7, %v8312_v45 }
 0x84a   :  { %v8314_v23 = vpop.eup %8313  ;;  %v7780_v57 = vpop.f32.mrf.mxu0  ;;  %7790 = vmatmul.mubr.msk.f32.vlgmr.msra.gmra.mxu1 %vm1564_vm7, %v8310_v43 }
 0x84b   :  { %2652 = vst.msk [vmem:[#allocation2 + $0x20] sm:$0xff] %vm1564_vm7, %v8314_v23  ;;  %8327 = vtanh.f32 %v2619_v48  ;;  %7834 = vmatpush3.msra.mxu1 %v2466_v15  ;;  %v2634_v60 = vadd.f32 %v7780_v57, %v2475_v31 }
 0x84c   :  { %v8316_v59 = vpop.eup %8315  ;;  %v2628_v49 = vpop.f32.mrf.mxu0  ;;  %7835 = vmatprep.subr.mxu1 %v2465_v47 }
 0x84d   :  { %2651 = vst.msk [vmem:[#allocation2 + $0x18] sm:$0xff] %vm1564_vm7, %v8316_v59  ;;  %v2629_v24 = vadd.f32 %v2628_v49, %v2475_v31  ;;  %7792 = vmatprep.mubr.msk.f32.mxu1 %vm1564_vm7, %v8316_v59  ;;  %7836 = vmatpush3.msra.mxu1 %v2465_v47  ;;  %v2682_v31 = vld [vmem:[#allocation2 + $0x59] sm:$0xff] }
 0x84e   :  { %7793 = vmatmul.mubr.msk.f32.gmra.mxu1 %vm1564_vm7, %v8314_v23  ;;  %7837 = vmatprep.subr.mxu1 %v2464_v58  ;;  %v9478_v23 = vsub.s32 1, %v9395_v28 }
 0x84f   :  { %8329 = vtanh.f32 %v2629_v24  ;;  %7838 = vmatpush3.msra.mxu1 %v2464_v58 }
 0x850   :  { %v8318_v21 = vpop.eup %8317  ;;  %8331 = vtanh.f32 %v2634_v60  ;;  %v2660_v62 = vld [vmem:[#allocation2 + $0x7] sm:$0xff]  ;;  %v2661_v63 = vld [vmem:[#allocation2 + $0xf] sm:$0xff]  ;;  %7839 = vmatprep.subr.mxu1 %v2463_v61  ;;  %v9486_v49 = vrot.slane %v9403_v30, %v9478_v23 }
 0x851   :  { %v8320_v1 = vpop.eup %8319  ;;  %2654 = vst.msk [vmem:[#allocation2 + $0x28] sm:$0x1] %vm2653_vm9, %v8318_v21  ;;  %7795 = vmatprep.mubr.msk.f32.mxu1 %vm1564_vm7, %v8318_v21  ;;  %7815 = vmatprep.mubr.msk.f32.mxu0 %vm1564_vm7, %v2660_v62  ;;  %v2672_v27 = vld [vmem:[#allocation2 + $0x9] sm:$0xff] }
 0x852   :  { %v8322_v25 = vpop.eup %8321  ;;  %7796 = vmatmul.mubr.msk.f32.gmra.mxu1 %vm1564_vm7, %v8320_v1  ;;  %7816 = vmatmul.mubr.msk.f32.vlgmr.msra.gmra.mxu0 %vm1564_vm7, %v2661_v63 }
 0x853   :  { %2656 = vst.msk [vmem:[#allocation2 + $0x40] sm:$0xff] %vm1564_vm7, %v8322_v25  ;;  %7840 = vmatpush3.msra.mxu1 %v2463_v61  ;;  %7860 = vmatpush3.msra.mxu0 %v2470_v33 }
 0x854   :  { %v8324_v2 = vpop.eup %8323  ;;  %v2662_v51 = vld [vmem:[#allocation2 + $0x17] sm:$0xff]  ;;  %v2663_v3 = vld [vmem:[#allocation2 + $0x1f] sm:$0xff]  ;;  %7861 = vmatprep.subr.mxu0 %v2469_v16  ;;  %7885 = vmatprep.subr.mxu1 %v6658_v17 }
 0x855   :  { %2655 = vst.msk [vmem:[#allocation2 + $0x38] sm:$0xff] %vm1564_vm7, %v8324_v2  ;;  %7798 = vmatprep.mubr.msk.f32.mxu1 %vm1564_vm7, %v8324_v2  ;;  %7818 = vmatprep.mubr.msk.f32.mxu0 %vm1564_vm7, %v2662_v51  ;;  %v2673_v54 = vld [vmem:[#allocation2 + $0x11] sm:$0xff]  ;;  %v2674_v53 = vld [vmem:[#allocation2 + $0x19] sm:$0xff] }
 0x856   :  { %v8326_v26 = vpop.eup %8325  ;;  %7799 = vmatmul.mubr.msk.f32.gmra.mxu1 %vm1564_vm7, %v8322_v25  ;;  %7819 = vmatmul.mubr.msk.f32.gmra.mxu0 %vm1564_vm7, %v2663_v3 }
 0x857   :  { %2658 = vst.msk [vmem:[#allocation2 + $0x50] sm:$0xff] %vm1564_vm7, %v8326_v26  ;;  %7862 = vmatpush3.msra.mxu0 %v2469_v16 }
 0x858   :  { %v8328_v4 = vpop.eup %8327  ;;  %v2664_v5 = vld [vmem:[#allocation2 + $0x27] sm:$0xff]  ;;  %7863 = vmatprep.subr.mxu0 %v2468_v34 }
 0x859   :  { %2657 = vst.msk [vmem:[#allocation2 + $0x48] sm:$0xff] %vm1564_vm7, %v8328_v4  ;;  %7801 = vmatprep.mubr.msk.f32.mxu1 %vm1564_vm7, %v8328_v4  ;;  %7821 = vmatprep.mubr.msk.f32.mxu0 %vm1564_vm7, %v2664_v5  ;;  %v2675_v11 = vld [vmem:[#allocation2 + $0x21] sm:$0xff] }
 0x85a   :  { %7802 = vmatmul.mubr.msk.f32.gmra.mxu1 %vm1564_vm7, %v8326_v26  ;;  %7822 = vmatmul.mubr.msk.f32.gmra.mxu0 %vm1564_vm7, %v2665_v50 }
 0x85b   :  { %7864 = vmatpush3.msra.mxu0 %v2468_v34 }
 0x85c   :  { %v8330_v6 = vpop.eup %8329  ;;  %v2666_v7 = vld [vmem:[#allocation2 + $0x37] sm:$0xff]  ;;  %v2667_v8 = vld [vmem:[#allocation2 + $0x3f] sm:$0xff]  ;;  %7865 = vmatprep.subr.mxu0 %v2467_v35 }
 0x85d   :  { %v8332_v22 = vpop.eup %8331  ;;  %2659 = vst.msk [vmem:[#allocation2 + $0x58] sm:$0x1] %vm2653_vm9, %v8330_v6  ;;  %7804 = vmatprep.mubr.msk.f32.mxu1 %vm1564_vm7, %v8330_v6  ;;  %7824 = vmatprep.mubr.msk.f32.mxu0 %vm1564_vm7, %v2666_v7  ;;  %v2677_v13 = vld [vmem:[#allocation2 + $0x31] sm:$0xff]  ;;  %v2678_v14 = vld [vmem:[#allocation2 + $0x39] sm:$0xff] }
 0x85e   :  { %7805 = vmatmul.mubr.msk.f32.gmra.mxu1 %vm1564_vm7, %v8332_v22  ;;  %7825 = vmatmul.mubr.msk.f32.gmra.mxu0 %vm1564_vm7, %v2667_v8 }
 0x85f   :  { %7841 = vmatprep.mubr.msk.f32.mxu1 %vm1564_vm7, %v2672_v27  ;;  %7866 = vmatpush3.msra.mxu0 %v2467_v35 }
 0x860   :  { %v2668_v52 = vld [vmem:[#allocation2 + $0x47] sm:$0xff]  ;;  %v2669_v9 = vld [vmem:[#allocation2 + $0x4f] sm:$0xff] }
 0x861   :  { %7827 = vmatprep.mubr.msk.f32.mxu0 %vm1564_vm7, %v2668_v52  ;;  %v2679_v15 = vld [vmem:[#allocation2 + $0x41] sm:$0xff]  ;;  %v2680_v12 = vld [vmem:[#allocation2 + $0x49] sm:$0xff] }
 0x862   :  { %7828 = vmatmul.mubr.msk.f32.gmra.mxu0 %vm1564_vm7, %v2669_v9  ;;  %7842 = vmatmul.mubr.msk.f32.vlgmr.msra.gmra.mxu1 %vm1564_vm7, %v2673_v54 }
 0x863   :  { %7844 = vmatprep.mubr.msk.f32.mxu1 %vm1564_vm7, %v2674_v53  ;;  %7886 = vmatpush3.msra.mxu1 %v6658_v17 }
 0x864   :  { %v2670_v56 = vld [vmem:[#allocation2 + $0x57] sm:$0xff] }
 0x865   :  { %7830 = vmatprep.mubr.msk.f32.mxu0 %vm1564_vm7, %v2670_v56  ;;  %v2681_v0 = vld [vmem:[#allocation2 + $0x51] sm:$0xff] }
 0x866   :  { %7831 = vmatmul.mubr.msk.f32.gmra.mxu0 %vm1564_vm7, %v2671_v55  ;;  %7845 = vmatmul.mubr.msk.f32.gmra.mxu1 %vm1564_vm7, %v2675_v11 }
 0x867   :  { %7847 = vmatprep.mubr.msk.f32.mxu1 %vm1564_vm7, %v2676_v10 }
 0x86a   :  { %7848 = vmatmul.mubr.msk.f32.gmra.mxu1 %vm1564_vm7, %v2677_v13 }
 0x86b   :  { %7850 = vmatprep.mubr.msk.f32.mxu1 %vm1564_vm7, %v2678_v14 }
 0x86e   :  { %7851 = vmatmul.mubr.msk.f32.gmra.mxu1 %vm1564_vm7, %v2679_v15 }
 0x86f   :  { %7853 = vmatprep.mubr.msk.f32.mxu1 %vm1564_vm7, %v2680_v12 }
 0x872   :  { %7854 = vmatmul.mubr.msk.f32.gmra.mxu1 %vm1564_vm7, %v2681_v0 }
 0x873   :  { %7856 = vmatprep.mubr.msk.f32.mxu1 %vm1564_vm7, %v2682_v31 }
 0x876   :  { %7857 = vmatmul.mubr.msk.f32.gmra.mxu1 %vm1564_vm7, %v2683_v32 }
 0x90a   :  { %v7791_v36 = vpop.f32.mrf.mxu1 }
 0x90c   :  { %v2786_v37 = vpop.f32.mrf.mxu1 }
 0x90e   :  { %v7794_v38 = vpop.f32.mrf.mxu1 }
 0x910   :  { %v2796_v39 = vpop.f32.mrf.mxu1 }
 0x912   :  { %v7797_v40 = vpop.f32.mrf.mxu1  ;;  %v7817_v18 = vpop.f32.mrf.mxu0 }
 0x913   :  { %v2953_v59 = vadd.f32 %v7817_v18, %v7791_v36 }
 0x914   :  { %v2806_v41 = vpop.f32.mrf.mxu1  ;;  %v2947_v42 = vpop.f32.mrf.mxu0 }
 0x915   :  { %v2948_v61 = vadd.f32 %v2947_v42, %v2786_v37 }
 0x916   :  { %v7800_v19 = vpop.f32.mrf.mxu1  ;;  %v7820_v43 = vpop.f32.mrf.mxu0 }
 0x917   :  { %v2963_v63 = vadd.f32 %v7820_v43, %v7794_v38 }
 0x918   :  { %v2816_v44 = vpop.f32.mrf.mxu1  ;;  %v2957_v20 = vpop.f32.mrf.mxu0 }
 0x919   :  { %v2958_v4 = vadd.f32 %v2957_v20, %v2796_v39 }
 0x91a   :  { %v7803_v45 = vpop.f32.mrf.mxu1  ;;  %v7823_v46 = vpop.f32.mrf.mxu0 }
 0x91b   :  { %v2973_v6 = vadd.f32 %v7823_v46, %v7797_v40 }
 0x91c   :  { %v2826_v48 = vpop.f32.mrf.mxu1  ;;  %v2967_v47 = vpop.f32.mrf.mxu0 }
 0x91d   :  { %v2968_v9 = vadd.f32 %v2967_v47, %v2806_v41 }
 0x91e   :  { %v9480_v57 = vpop.f32.mrf.mxu1  ;;  %v7826_v60 = vpop.f32.mrf.mxu0 }
 0x91f   :  { %v2983_v10 = vadd.f32 %v7826_v60, %v7800_v19 }
 0x920   :  { %v9482_v58 = vpop.f32.mrf.mxu1  ;;  %v2977_v1 = vpop.f32.mrf.mxu0 }
 0x921   :  { %v2978_v31 = vadd.f32 %v2977_v1, %v2816_v44 }
 0x922   :  { %v7843_v24 = vpop.f32.mrf.mxu1  ;;  %v7829_v7 = vpop.f32.mrf.mxu0 }
 0x923   :  { %v3168_v21 = vadd.f32 %v7843_v24, %v2953_v59  ;;  %v2993_v16 = vadd.f32 %v7829_v7, %v7803_v45 }
 0x924   :  { %v3108_v62 = vpop.f32.mrf.mxu1  ;;  %v2987_v11 = vpop.f32.mrf.mxu0 }
 0x925   :  { %v3184_v25 = vadd.f32 %v9486_v49, %v3168_v21  ;;  %v3167_v2 = vadd.f32 %v3108_v62, %v2948_v61  ;;  %v2988_v38 = vadd.f32 %v2987_v11, %v2826_v48 }
 0x926   :  { %v7846_v51 = vpop.f32.mrf.mxu1  ;;  %v7832_v35 = vpop.f32.mrf.mxu0 }
 0x927   :  { %v3196_v3 = vmul.f32 0.5, %v3184_v25  ;;  %v3183_v26 = vadd.f32 %v9486_v49, %v3167_v2  ;;  %v3170_v50 = vadd.f32 %v7846_v51, %v2963_v63  ;;  %v3003_v46 = vadd.f32 %v7832_v35, %v9480_v57 }
 0x928   :  { %v3118_v5 = vpop.f32.mrf.mxu1  ;;  %v2997_v19 = vpop.f32.mrf.mxu0 }
 0x929   :  { %8333 = vtanh.f32 %v3196_v3  ;;  %v3195_v8 = vmul.f32 0.5, %v3183_v26  ;;  %v3186_v22 = vadd.f32 %v9486_v49, %v3170_v50  ;;  %v3169_v27 = vadd.f32 %v3118_v5, %v2958_v4 }
 0x92a   :  { %v7849_v52 = vpop.f32.mrf.mxu1  ;;  %v2998_v61 = vadd.f32 %v2997_v19, %v9482_v58 }
 0x92b   :  { %8335 = vtanh.f32 %v3195_v8  ;;  %v3198_v54 = vmul.f32 0.5, %v3186_v22  ;;  %v3172_v53 = vadd.f32 %v7849_v52, %v2973_v6  ;;  %v3185_v55 = vadd.f32 %v9486_v49, %v3169_v27 }
 0x92c   :  { %v3128_v56 = vpop.f32.mrf.mxu1 }
 0x92d   :  { %8337 = vtanh.f32 %v3198_v54  ;;  %v3188_v13 = vadd.f32 %v9486_v49, %v3172_v53  ;;  %v3171_v14 = vadd.f32 %v3128_v56, %v2968_v9  ;;  %v3197_v15 = vmul.f32 0.5, %v3185_v55 }
 0x92e   :  { %v7852_v12 = vpop.f32.mrf.mxu1 }
 0x92f   :  { %v3200_v0 = vmul.f32 0.5, %v3188_v13  ;;  %v3187_v32 = vadd.f32 %v9486_v49, %v3171_v14  ;;  %v3174_v33 = vadd.f32 %v7852_v12, %v2983_v10  ;;  %8339 = vtanh.f32 %v3197_v15 }
 0x930   :  { %v3138_v34 = vpop.f32.mrf.mxu1 }
 0x931   :  { %8341 = vtanh.f32 %v3200_v0  ;;  %v3199_v17 = vmul.f32 0.5, %v3187_v32  ;;  %v3190_v36 = vadd.f32 %v9486_v49, %v3174_v33  ;;  %v3173_v37 = vadd.f32 %v3138_v34, %v2978_v31 }
 0x932   :  { %v7855_v39 = vpop.f32.mrf.mxu1 }
 0x933   :  { %8343 = vtanh.f32 %v3199_v17  ;;  %v3202_v40 = vmul.f32 0.5, %v3190_v36  ;;  %v3189_v18 = vadd.f32 %v9486_v49, %v3173_v37  ;;  %v3176_v41 = vadd.f32 %v7855_v39, %v2993_v16  ;;  %v6657_v37 = vld [vmem:[%s10220_s14 + $0xb0] sm:$0xff]  ;;  %v6655_v39 = vld [vmem:[%s10220_s14 + $0xa0] sm:$0xff] }
 0x934   :  { %v3148_v42 = vpop.f32.mrf.mxu1  ;;  %7887 = vmatprep.subr.mxu1 %v6657_v37 }
 0x935   :  { %8345 = vtanh.f32 %v3202_v40  ;;  %v3201_v43 = vmul.f32 0.5, %v3189_v18  ;;  %v3192_v44 = vadd.f32 %v9486_v49, %v3176_v41  ;;  %v3175_v20 = vadd.f32 %v3148_v42, %v2988_v38  ;;  %7888 = vmatpush3.msra.mxu1 %v6657_v37  ;;  %v6656_v38 = vld [vmem:[%s10220_s14 + $0xa8] sm:$0xff] }
 0x936   :  { %v8334_v45 = vpop.eup %8333  ;;  %v7858_v47 = vpop.f32.mrf.mxu1  ;;  %7889 = vmatprep.subr.mxu1 %v6656_v38  ;;  %v9524_v40 = vsub.s32 2, %v9395_v28 }
 0x937   :  { %8347 = vtanh.f32 %v3201_v43  ;;  %v3204_v59 = vmul.f32 0.5, %v3192_v44  ;;  %v3191_v48 = vadd.f32 %v9486_v49, %v3175_v20  ;;  %v3220_v24 = vadd.f32 1.0, %v8334_v45  ;;  %7890 = vmatpush3.msra.mxu1 %v6656_v38 }
 0x938   :  { %v8336_v60 = vpop.eup %8335  ;;  %v3178_v21 = vadd.f32 %v7858_v47, %v3003_v46  ;;  %v3158_v62 = vpop.f32.mrf.mxu1  ;;  %7891 = vmatprep.subr.mxu1 %v6655_v39  ;;  %v3246_v18 = vrot.slane %v9403_v30, %v9524_v40 }
 0x939   :  { %v3219_v63 = vadd.f32 1.0, %v8336_v60  ;;  %8349 = vtanh.f32 %v3204_v59  ;;  %v3203_v1 = vmul.f32 0.5, %v3191_v48  ;;  %v3177_v51 = vadd.f32 %v3158_v62, %v2998_v61  ;;  %7892 = vmatpush3.msra.mxu1 %v6655_v39 }
 0x93a   :  { %v8338_v25 = vpop.eup %8337  ;;  %v3194_v2 = vadd.f32 %v9486_v49, %v3178_v21  ;;  %v3232_v3 = vmul.f32 0.5, %v3220_v24 }
 0x93b   :  { %8351 = vtanh.f32 %v3203_v1  ;;  %v3231_v57 = vmul.f32 0.5, %v3219_v63  ;;  %v3193_v50 = vadd.f32 %v9486_v49, %v3177_v51  ;;  %v3222_v5 = vadd.f32 1.0, %v8338_v25 }
 0x93c   :  { %v3206_v26 = vmul.f32 0.5, %v3194_v2  ;;  %v8340_v4 = vpop.eup %8339 }
 0x93d   :  { %7867 = vmatprep.mubr.msk.f32.mxu0 %vm1564_vm7, %v3231_v57  ;;  %v3221_v6 = vadd.f32 1.0, %v8340_v4  ;;  %v3205_v7 = vmul.f32 0.5, %v3193_v50  ;;  %v3234_v9 = vmul.f32 0.5, %v3222_v5  ;;  %v6664_v50 = vld [vmem:[%s10220_s14 + $0xe8] sm:$0xff]  ;;  %v6663_v4 = vld [vmem:[%s10220_s14 + $0xe0] sm:$0xff]  ;;  %v6662_v5 = vld [vmem:[%s10220_s14 + $0xd8] sm:$0xff] }
 0x93e   :  { %v8342_v58 = vpop.eup %8341  ;;  %8353 = vtanh.f32 %v3206_v26  ;;  %7868 = vmatmul.mubr.msk.f32.vlgmr.msra.gmra.mxu0 %vm1564_vm7, %v3232_v3  ;;  %v6666_v3 = vld [vmem:[%s10220_s14 + $0xf8] sm:$0xff]  ;;  %v6665_v26 = vld [vmem:[%s10220_s14 + $0xf0] sm:$0xff]  ;;  %7937 = vmatprep.subr.mxu1 %v6662_v5 }
 0x93f   :  { %8355 = vtanh.f32 %v3205_v7  ;;  %v3233_v22 = vmul.f32 0.5, %v3221_v6  ;;  %v3224_v27 = vadd.f32 1.0, %v8342_v58  ;;  %7911 = vmatprep.subr.mxu0 %v6666_v3  ;;  %v6661_v58 = vld [vmem:[%s10220_s14 + $0xd0] sm:$0xff]  ;;  %v6660_v6 = vld [vmem:[%s10220_s14 + $0xc8] sm:$0xff]  ;;  %v6659_v7 = vld [vmem:[%s10220_s14 + $0xc0] sm:$0xff] }
 0x940   :  { %v8344_v8 = vpop.eup %8343  ;;  %7912 = vmatpush3.msra.mxu0 %v6666_v3 }
 0x941   :  { %v3223_v52 = vadd.f32 1.0, %v8344_v8  ;;  %7870 = vmatprep.mubr.msk.f32.mxu0 %vm1564_vm7, %v3233_v22  ;;  %v3236_v10 = vmul.f32 0.5, %v3224_v27  ;;  %7913 = vmatprep.subr.mxu0 %v6665_v26  ;;  %v6670_v8 = vld [vmem:[%s10220_s14 + $0x118] sm:$0xff]  ;;  %v9606_v22 = vld [vmem:[%s10221_s15 + $0x4] sm:$0x7] }
 0x942   :  { %v8346_v54 = vpop.eup %8345  ;;  %7871 = vmatmul.mubr.msk.f32.gmra.mxu0 %vm1564_vm7, %v3234_v9  ;;  %v3434_v27 = vrot.slane %v9606_v22, %v9398_v29 }
 0x943   :  { %v3235_v49 = vmul.f32 0.5, %v3223_v52  ;;  %v3226_v55 = vadd.f32 1.0, %v8346_v54  ;;  %7914 = vmatpush3.msra.mxu0 %v6665_v26 }
 0x944   :  { %v8348_v53 = vpop.eup %8347  ;;  %7915 = vmatprep.subr.mxu0 %v6664_v50 }
 0x945   :  { %v3225_v56 = vadd.f32 1.0, %v8348_v53  ;;  %7873 = vmatprep.mubr.msk.f32.mxu0 %vm1564_vm7, %v3235_v49  ;;  %v3238_v31 = vmul.f32 0.5, %v3226_v55  ;;  %7916 = vmatpush3.msra.mxu0 %v6664_v50  ;;  %v3623_v50 = vld [vmem:[#allocation2 + $0x2e] sm:$0xff] }
 0x946   :  { %v8350_v11 = vpop.eup %8349  ;;  %7874 = vmatmul.mubr.msk.f32.gmra.mxu0 %vm1564_vm7, %v3236_v10  ;;  %7917 = vmatprep.subr.mxu0 %v6663_v4 }
 0x947   :  { %v3237_v13 = vmul.f32 0.5, %v3225_v56  ;;  %v3228_v15 = vadd.f32 1.0, %v8350_v11  ;;  %7918 = vmatpush3.msra.mxu0 %v6663_v4 }
 0x948   :  { %v8352_v14 = vpop.eup %8351  ;;  %7963 = vmatprep.subr.mxu0 %v6670_v8 }
 0x949   :  { %v3227_v12 = vadd.f32 1.0, %v8352_v14  ;;  %7876 = vmatprep.mubr.msk.f32.mxu0 %vm1564_vm7, %v3237_v13  ;;  %v3240_v34 = vmul.f32 0.5, %v3228_v15 }
 0x94a   :  { %7877 = vmatmul.mubr.msk.f32.gmra.mxu0 %vm1564_vm7, %v3238_v31 }
 0x94b   :  { %v8354_v0 = vpop.eup %8353  ;;  %v3239_v32 = vmul.f32 0.5, %v3227_v12 }
 0x94c   :  { %v8356_v33 = vpop.eup %8355  ;;  %v3230_v16 = vadd.f32 1.0, %v8354_v0 }
 0x94d   :  { %7879 = vmatprep.mubr.msk.f32.mxu0 %vm1564_vm7, %v3239_v32  ;;  %v3229_v35 = vadd.f32 1.0, %v8356_v33 }
 0x94e   :  { %7880 = vmatmul.mubr.msk.f32.gmra.mxu0 %vm1564_vm7, %v3240_v34  ;;  %v3242_v36 = vmul.f32 0.5, %v3230_v16 }
 0x94f   :  { %v3241_v17 = vmul.f32 0.5, %v3229_v35 }
 0x951   :  { %7882 = vmatprep.mubr.msk.f32.mxu0 %vm1564_vm7, %v3241_v17 }
 0x952   :  { %7883 = vmatmul.mubr.msk.f32.gmra.mxu0 %vm1564_vm7, %v3242_v36  ;;  %v6669_v36 = vld [vmem:[%s10220_s14 + $0x110] sm:$0xff] }
 0x9fe   :  { %v7869_v41 = vpop.f32.mrf.mxu0 }
 0x9ff   :  { %v9530_v43 = vadd.f32 %v7869_v41, %v3246_v18 }
 0xa00   :  { %v3349_v42 = vpop.f32.mrf.mxu0 }
 0xa01   :  { %v9528_v19 = vadd.f32 %v3349_v42, %v3246_v18 }
 0xa02   :  { %v7872_v44 = vpop.f32.mrf.mxu0 }
 0xa03   :  { %7893 = vmatprep.mubr.msk.f32.mxu1 %vm1564_vm7, %v9528_v19  ;;  %v9538_v28 = vadd.f32 %v7872_v44, %v3246_v18 }
 0xa04   :  { %7894 = vmatmul.mubr.msk.f32.vlgmr.msra.gmra.mxu1 %vm1564_vm7, %v9530_v43  ;;  %v3359_v20 = vpop.f32.mrf.mxu0 }
 0xa05   :  { %v9536_v45 = vadd.f32 %v3359_v20, %v3246_v18  ;;  %7938 = vmatpush3.msra.mxu1 %v6662_v5 }
 0xa06   :  { %v7875_v46 = vpop.f32.mrf.mxu0  ;;  %7939 = vmatprep.subr.mxu1 %v6661_v58 }
 0xa07   :  { %7896 = vmatprep.mubr.msk.f32.mxu1 %vm1564_vm7, %v9536_v45  ;;  %v9546_v59 = vadd.f32 %v7875_v46, %v3246_v18  ;;  %7940 = vmatpush3.msra.mxu1 %v6661_v58  ;;  %v6667_v46 = vld [vmem:[%s10220_s14 + $0x100] sm:$0xff] }
 0xa08   :  { %v3369_v30 = vpop.f32.mrf.mxu0  ;;  %7897 = vmatmul.mubr.msk.f32.gmra.mxu1 %vm1564_vm7, %v9538_v28  ;;  %7941 = vmatprep.subr.mxu1 %v6660_v6 }
 0xa09   :  { %v9544_v47 = vadd.f32 %v3369_v30, %v3246_v18  ;;  %7942 = vmatpush3.msra.mxu1 %v6660_v6 }
 0xa0a   :  { %v7878_v48 = vpop.f32.mrf.mxu0  ;;  %7943 = vmatprep.subr.mxu1 %v6659_v7 }
 0xa0b   :  { %7899 = vmatprep.mubr.msk.f32.mxu1 %vm1564_vm7, %v9544_v47  ;;  %v9554_v61 = vadd.f32 %v7878_v48, %v3246_v18  ;;  %7944 = vmatpush3.msra.mxu1 %v6659_v7 }
 0xa0c   :  { %v3379_v60 = vpop.f32.mrf.mxu0  ;;  %7900 = vmatmul.mubr.msk.f32.gmra.mxu1 %vm1564_vm7, %v9546_v59 }
 0xa0d   :  { %v9552_v24 = vadd.f32 %v3379_v60, %v3246_v18 }
 0xa0e   :  { %v7881_v21 = vpop.f32.mrf.mxu0 }
 0xa0f   :  { %7902 = vmatprep.mubr.msk.f32.mxu1 %vm1564_vm7, %v9552_v24  ;;  %v9562_v1 = vadd.f32 %v7881_v21, %v3246_v18 }
 0xa10   :  { %v3389_v62 = vpop.f32.mrf.mxu0  ;;  %7903 = vmatmul.mubr.msk.f32.gmra.mxu1 %vm1564_vm7, %v9554_v61 }
 0xa11   :  { %v9560_v63 = vadd.f32 %v3389_v62, %v3246_v18 }
 0xa12   :  { %v7884_v25 = vpop.f32.mrf.mxu0 }
 0xa13   :  { %7905 = vmatprep.mubr.msk.f32.mxu1 %vm1564_vm7, %v9560_v63  ;;  %v9570_v57 = vadd.f32 %v7884_v25, %v3246_v18 }
 0xa14   :  { %v3399_v2 = vpop.f32.mrf.mxu0  ;;  %7906 = vmatmul.mubr.msk.f32.gmra.mxu1 %vm1564_vm7, %v9562_v1 }
 0xa15   :  { %v9568_v51 = vadd.f32 %v3399_v2, %v3246_v18  ;;  %v6668_v18 = vld [vmem:[%s10220_s14 + $0x108] sm:$0xff] }
 0xa17   :  { %7908 = vmatprep.mubr.msk.f32.mxu1 %vm1564_vm7, %v9568_v51 }
 0xa18   :  { %7909 = vmatmul.mubr.msk.f32.gmra.mxu1 %vm1564_vm7, %v9570_v57 }
 0xac4   :  { %v7895_v52 = vpop.f32.mrf.mxu1 }
 0xac5   :  { %v3543_v9 = vadd.f32 %v7895_v52, %v3434_v27 }
 0xac6   :  { %v3537_v54 = vpop.f32.mrf.mxu1 }
 0xac7   :  { %8357 = vtanh.f32 %v3543_v9  ;;  %v3538_v49 = vadd.f32 %v3537_v54, %v3434_v27 }
 0xac8   :  { %v7898_v53 = vpop.f32.mrf.mxu1 }
 0xac9   :  { %8359 = vtanh.f32 %v3538_v49  ;;  %v3553_v55 = vadd.f32 %v7898_v53, %v3434_v27  ;;  %v3629_v53 = vld [vmem:[#allocation2 + $0x5e] sm:$0xff] }
 0xaca   :  { %v3547_v56 = vpop.f32.mrf.mxu1 }
 0xacb   :  { %8361 = vtanh.f32 %v3553_v55  ;;  %v3548_v10 = vadd.f32 %v3547_v56, %v3434_v27  ;;  %v3634_v56 = vld [vmem:[#allocation2 + $0x2a] sm:$0xff] }
 0xacc   :  { %v7901_v11 = vpop.f32.mrf.mxu1 }
 0xacd   :  { %8363 = vtanh.f32 %v3548_v10  ;;  %v3563_v13 = vadd.f32 %v7901_v11, %v3434_v27 }
 0xace   :  { %v3557_v14 = vpop.f32.mrf.mxu1 }
 0xacf   :  { %v3558_v15 = vadd.f32 %v3557_v14, %v3434_v27 }
 0xad0   :  { %v7904_v12 = vpop.f32.mrf.mxu1 }
 0xad1   :  { %8365 = vtanh.f32 %v3558_v15  ;;  %v3573_v31 = vadd.f32 %v7904_v12, %v3434_v27  ;;  %v3640_v12 = vld [vmem:[#allocation2 + $0x5a] sm:$0xff] }
 0xad2   :  { %8367 = vtanh.f32 %v3563_v13  ;;  %v3567_v0 = vpop.f32.mrf.mxu1 }
 0xad3   :  { %8369 = vtanh.f32 %v3573_v31  ;;  %v3568_v33 = vadd.f32 %v3567_v0, %v3434_v27  ;;  %v3641_v0 = vld [vmem:[#allocation2 + $0x62] sm:$0xff] }
 0xad4   :  { %v8358_v32 = vpop.eup %8357  ;;  %v7907_v16 = vpop.f32.mrf.mxu1 }
 0xad5   :  { %3609 = vst.msk [vmem:[#allocation2 + $0x10] sm:$0xff] %vm1564_vm7, %v8358_v32  ;;  %8371 = vtanh.f32 %v3568_v33  ;;  %v3583_v35 = vadd.f32 %v7907_v16, %v3434_v27  ;;  %v6673_v33 = vld [vmem:[%s10220_s14 + $0x130] sm:$0xff]  ;;  %v6672_v16 = vld [vmem:[%s10220_s14 + $0x128] sm:$0xff] }
 0xad6   :  { %v8360_v34 = vpop.eup %8359  ;;  %v3577_v17 = vpop.f32.mrf.mxu1 }
 0xad7   :  { %3608 = vst.msk [vmem:[#allocation2 + $0x8] sm:$0xff] %vm1564_vm7, %v8360_v34  ;;  %7919 = vmatprep.mubr.msk.f32.mxu0 %vm1564_vm7, %v8360_v34  ;;  %8373 = vtanh.f32 %v3583_v35  ;;  %v3578_v37 = vadd.f32 %v3577_v17, %v3434_v27  ;;  %v6671_v34 = vld [vmem:[%s10220_s14 + $0x120] sm:$0xff]  ;;  %v6739_v35 = vld [vmem:[%s10220_s14 + $0x158] sm:$0xff] }
 0xad8   :  { %7920 = vmatmul.mubr.msk.f32.vlgmr.msra.gmra.mxu0 %vm1564_vm7, %v8358_v32  ;;  %v8362_v38 = vpop.eup %8361  ;;  %v7910_v39 = vpop.f32.mrf.mxu1  ;;  %v6674_v32 = vld [vmem:[%s10220_s14 + $0x138] sm:$0xff] }
 0xad9   :  { %7964 = vmatpush3.msra.mxu0 %v6670_v8  ;;  %3611 = vst.msk [vmem:[#allocation2 + $0x20] sm:$0xff] %vm1564_vm7, %v8362_v38  ;;  %8375 = vtanh.f32 %v3578_v37  ;;  %v3593_v42 = vadd.f32 %v7910_v39, %v3434_v27  ;;  %7989 = vmatprep.subr.mxu1 %v6674_v32 }
 0xada   :  { %7965 = vmatprep.subr.mxu0 %v6669_v36  ;;  %v8364_v41 = vpop.eup %8363  ;;  %v3587_v44 = vpop.f32.mrf.mxu1 }
 0xadb   :  { %7966 = vmatpush3.msra.mxu0 %v6669_v36  ;;  %3610 = vst.msk [vmem:[#allocation2 + $0x18] sm:$0xff] %vm1564_vm7, %v8364_v41  ;;  %v3588_v20 = vadd.f32 %v3587_v44, %v3434_v27  ;;  %7922 = vmatprep.mubr.msk.f32.mxu0 %vm1564_vm7, %v8364_v41 }
 0xadc   :  { %7967 = vmatprep.subr.mxu0 %v6668_v18  ;;  %7923 = vmatmul.mubr.msk.f32.gmra.mxu0 %vm1564_vm7, %v8362_v38 }
 0xadd   :  { %8377 = vtanh.f32 %v3588_v20  ;;  %7968 = vmatpush3.msra.mxu0 %v6668_v18 }
 0xade   :  { %v3618_v30 = vld [vmem:[#allocation2 + $0x6] sm:$0xff]  ;;  %v3619_v48 = vld [vmem:[#allocation2 + $0xe] sm:$0xff]  ;;  %v8366_v60 = vpop.eup %8365  ;;  %8379 = vtanh.f32 %v3593_v42  ;;  %7969 = vmatprep.subr.mxu0 %v6667_v46 }
 0xadf   :  { %7945 = vmatprep.mubr.msk.f32.mxu1 %vm1564_vm7, %v3618_v30  ;;  %v8368_v21 = vpop.eup %8367  ;;  %3612 = vst.msk [vmem:[#allocation2 + $0x28] sm:$0x1] %vm2653_vm9, %v8366_v60  ;;  %7925 = vmatprep.mubr.msk.f32.mxu0 %vm1564_vm7, %v8366_v60  ;;  %v3630_v27 = vld [vmem:[#allocation2 + $0xa] sm:$0xff] }
 0xae0   :  { %7946 = vmatmul.mubr.msk.f32.vlgmr.msra.gmra.mxu1 %vm1564_vm7, %v3619_v48  ;;  %v8370_v62 = vpop.eup %8369  ;;  %7926 = vmatmul.mubr.msk.f32.gmra.mxu0 %vm1564_vm7, %v8368_v21 }
 0xae1   :  { %3614 = vst.msk [vmem:[#allocation2 + $0x40] sm:$0xff] %vm1564_vm7, %v8370_v62  ;;  %7970 = vmatpush3.msra.mxu0 %v6667_v46  ;;  %7990 = vmatpush3.msra.mxu1 %v6674_v32 }
 0xae2   :  { %v8372_v25 = vpop.eup %8371  ;;  %v3620_v2 = vld [vmem:[#allocation2 + $0x16] sm:$0xff]  ;;  %v3621_v3 = vld [vmem:[#allocation2 + $0x1e] sm:$0xff]  ;;  %7991 = vmatprep.subr.mxu1 %v6673_v33  ;;  %8015 = vmatprep.subr.mxu0 %v6739_v35 }
 0xae3   :  { %3613 = vst.msk [vmem:[#allocation2 + $0x38] sm:$0xff] %vm1564_vm7, %v8372_v25  ;;  %7928 = vmatprep.mubr.msk.f32.mxu0 %vm1564_vm7, %v8372_v25  ;;  %7948 = vmatprep.mubr.msk.f32.mxu1 %vm1564_vm7, %v3620_v2  ;;  %v3631_v54 = vld [vmem:[#allocation2 + $0x12] sm:$0xff]  ;;  %v3632_v49 = vld [vmem:[#allocation2 + $0x1a] sm:$0xff] }
 0xae4   :  { %v8374_v26 = vpop.eup %8373  ;;  %7929 = vmatmul.mubr.msk.f32.gmra.mxu0 %vm1564_vm7, %v8370_v62  ;;  %7949 = vmatmul.mubr.msk.f32.gmra.mxu1 %vm1564_vm7, %v3621_v3 }
 0xae5   :  { %3616 = vst.msk [vmem:[#allocation2 + $0x50] sm:$0xff] %vm1564_vm7, %v8374_v26  ;;  %7992 = vmatpush3.msra.mxu1 %v6673_v33 }
 0xae6   :  { %v8376_v4 = vpop.eup %8375  ;;  %v3622_v5 = vld [vmem:[#allocation2 + $0x26] sm:$0xff]  ;;  %7993 = vmatprep.subr.mxu1 %v6672_v16 }
 0xae7   :  { %3615 = vst.msk [vmem:[#allocation2 + $0x48] sm:$0xff] %vm1564_vm7, %v8376_v4  ;;  %7931 = vmatprep.mubr.msk.f32.mxu0 %vm1564_vm7, %v8376_v4  ;;  %7951 = vmatprep.mubr.msk.f32.mxu1 %vm1564_vm7, %v3622_v5  ;;  %v3633_v10 = vld [vmem:[#allocation2 + $0x22] sm:$0xff] }
 0xae8   :  { %7932 = vmatmul.mubr.msk.f32.gmra.mxu0 %vm1564_vm7, %v8374_v26  ;;  %7952 = vmatmul.mubr.msk.f32.gmra.mxu1 %vm1564_vm7, %v3623_v50  ;;  %v9686_v50 = vrot.slane %v9606_v22, %v9478_v23 }
 0xae9   :  { %7994 = vmatpush3.msra.mxu1 %v6672_v16 }
 0xaea   :  { %v8378_v58 = vpop.eup %8377  ;;  %v3624_v6 = vld [vmem:[#allocation2 + $0x36] sm:$0xff]  ;;  %v3625_v7 = vld [vmem:[#allocation2 + $0x3e] sm:$0xff]  ;;  %7995 = vmatprep.subr.mxu1 %v6671_v34 }
 0xaeb   :  { %v8380_v8 = vpop.eup %8379  ;;  %3617 = vst.msk [vmem:[#allocation2 + $0x58] sm:$0x1] %vm2653_vm9, %v8378_v58  ;;  %7934 = vmatprep.mubr.msk.f32.mxu0 %vm1564_vm7, %v8378_v58  ;;  %7954 = vmatprep.mubr.msk.f32.mxu1 %vm1564_vm7, %v3624_v6  ;;  %v3635_v11 = vld [vmem:[#allocation2 + $0x32] sm:$0xff]  ;;  %v3636_v13 = vld [vmem:[#allocation2 + $0x3a] sm:$0xff] }
 0xaec   :  { %7935 = vmatmul.mubr.msk.f32.gmra.mxu0 %vm1564_vm7, %v8380_v8  ;;  %7955 = vmatmul.mubr.msk.f32.gmra.mxu1 %vm1564_vm7, %v3625_v7 }
 0xaed   :  { %7971 = vmatprep.mubr.msk.f32.mxu0 %vm1564_vm7, %v3630_v27  ;;  %7996 = vmatpush3.msra.mxu1 %v6671_v34 }
 0xaee   :  { %v3626_v52 = vld [vmem:[#allocation2 + $0x46] sm:$0xff]  ;;  %v3627_v9 = vld [vmem:[#allocation2 + $0x4e] sm:$0xff] }
 0xaef   :  { %7957 = vmatprep.mubr.msk.f32.mxu1 %vm1564_vm7, %v3626_v52  ;;  %v3637_v14 = vld [vmem:[#allocation2 + $0x42] sm:$0xff]  ;;  %v3638_v15 = vld [vmem:[#allocation2 + $0x4a] sm:$0xff] }
 0xaf0   :  { %7958 = vmatmul.mubr.msk.f32.gmra.mxu1 %vm1564_vm7, %v3627_v9  ;;  %7972 = vmatmul.mubr.msk.f32.vlgmr.msra.gmra.mxu0 %vm1564_vm7, %v3631_v54 }
 0xaf1   :  { %7974 = vmatprep.mubr.msk.f32.mxu0 %vm1564_vm7, %v3632_v49  ;;  %8016 = vmatpush3.msra.mxu0 %v6739_v35 }
 0xaf2   :  { %v3628_v55 = vld [vmem:[#allocation2 + $0x56] sm:$0xff] }
 0xaf3   :  { %7960 = vmatprep.mubr.msk.f32.mxu1 %vm1564_vm7, %v3628_v55  ;;  %v3639_v31 = vld [vmem:[#allocation2 + $0x52] sm:$0xff] }
 0xaf4   :  { %7961 = vmatmul.mubr.msk.f32.gmra.mxu1 %vm1564_vm7, %v3629_v53  ;;  %7975 = vmatmul.mubr.msk.f32.gmra.mxu0 %vm1564_vm7, %v3633_v10 }
 0xaf5   :  { %7977 = vmatprep.mubr.msk.f32.mxu0 %vm1564_vm7, %v3634_v56 }
 0xaf8   :  { %7978 = vmatmul.mubr.msk.f32.gmra.mxu0 %vm1564_vm7, %v3635_v11 }
 0xaf9   :  { %7980 = vmatprep.mubr.msk.f32.mxu0 %vm1564_vm7, %v3636_v13 }
 0xafc   :  { %7981 = vmatmul.mubr.msk.f32.gmra.mxu0 %vm1564_vm7, %v3637_v14 }
 0xafd   :  { %7983 = vmatprep.mubr.msk.f32.mxu0 %vm1564_vm7, %v3638_v15 }
 0xb00   :  { %7984 = vmatmul.mubr.msk.f32.gmra.mxu0 %vm1564_vm7, %v3639_v31 }
 0xb01   :  { %7986 = vmatprep.mubr.msk.f32.mxu0 %vm1564_vm7, %v3640_v12 }
 0xb04   :  { %7987 = vmatmul.mubr.msk.f32.gmra.mxu0 %vm1564_vm7, %v3641_v0 }
 0xb98   :  { %v7921_v17 = vpop.f32.mrf.mxu0 }
 0xb9a   :  { %v3744_v36 = vpop.f32.mrf.mxu0 }
 0xb9c   :  { %v7924_v37 = vpop.f32.mrf.mxu0 }
 0xb9e   :  { %v3754_v38 = vpop.f32.mrf.mxu0 }
 0xba0   :  { %v7947_v39 = vpop.f32.mrf.mxu1  ;;  %v7927_v18 = vpop.f32.mrf.mxu0 }
 0xba1   :  { %v3911_v3 = vadd.f32 %v7947_v39, %v7921_v17 }
 0xba2   :  { %v3905_v41 = vpop.f32.mrf.mxu1  ;;  %v3764_v42 = vpop.f32.mrf.mxu0 }
 0xba3   :  { %v3906_v5 = vadd.f32 %v3905_v41, %v3744_v36 }
 0xba4   :  { %v7930_v44 = vpop.f32.mrf.mxu0  ;;  %v7950_v20 = vpop.f32.mrf.mxu1 }
 0xba5   :  { %v3921_v7 = vadd.f32 %v7950_v20, %v7924_v37 }
 0xba6   :  { %v3774_v46 = vpop.f32.mrf.mxu0  ;;  %v3915_v30 = vpop.f32.mrf.mxu1 }
 0xba7   :  { %v3916_v55 = vadd.f32 %v3915_v30, %v3754_v38 }
 0xba8   :  { %v7933_v48 = vpop.f32.mrf.mxu0  ;;  %v7953_v60 = vpop.f32.mrf.mxu1 }
 0xba9   :  { %v3931_v10 = vadd.f32 %v7953_v60, %v7927_v18 }
 0xbaa   :  { %v3784_v21 = vpop.f32.mrf.mxu0  ;;  %v3925_v62 = vpop.f32.mrf.mxu1 }
 0xbab   :  { %v3926_v31 = vadd.f32 %v3925_v62, %v3764_v42 }
 0xbac   :  { %v9680_v25 = vpop.f32.mrf.mxu0  ;;  %v7956_v26 = vpop.f32.mrf.mxu1 }
 0xbad   :  { %v3941_v34 = vadd.f32 %v7956_v26, %v7930_v44 }
 0xbae   :  { %v9682_v2 = vpop.f32.mrf.mxu0  ;;  %v3935_v8 = vpop.f32.mrf.mxu1 }
 0xbaf   :  { %v3936_v39 = vadd.f32 %v3935_v8, %v3774_v46 }
 0xbb0   :  { %v7973_v4 = vpop.f32.mrf.mxu0  ;;  %v7959_v11 = vpop.f32.mrf.mxu1 }
 0xbb1   :  { %v4126_v58 = vadd.f32 %v7973_v4, %v3911_v3  ;;  %v3951_v42 = vadd.f32 %v7959_v11, %v7933_v48 }
 0xbb2   :  { %v4066_v6 = vpop.f32.mrf.mxu0  ;;  %v3945_v35 = vpop.f32.mrf.mxu1 }
 0xbb3   :  { %v4142_v27 = vadd.f32 %v9686_v50, %v4126_v58  ;;  %v4125_v52 = vadd.f32 %v4066_v6, %v3906_v5  ;;  %v3946_v26 = vadd.f32 %v3945_v35, %v3784_v21 }
 0xbb4   :  { %v7976_v9 = vpop.f32.mrf.mxu0  ;;  %v7962_v60 = vpop.f32.mrf.mxu1 }
 0xbb5   :  { %v4154_v54 = vmul.f32 0.5, %v4142_v27  ;;  %v4141_v49 = vadd.f32 %v9686_v50, %v4125_v52  ;;  %v4128_v53 = vadd.f32 %v7976_v9, %v3921_v7  ;;  %v3961_v9 = vadd.f32 %v7962_v60, %v9680_v25 }
 0xbb6   :  { %v4076_v56 = vpop.f32.mrf.mxu0  ;;  %v3955_v7 = vpop.f32.mrf.mxu1 }
 0xbb7   :  { %8381 = vtanh.f32 %v4154_v54  ;;  %v4153_v13 = vmul.f32 0.5, %v4141_v49  ;;  %v4144_v14 = vadd.f32 %v9686_v50, %v4128_v53  ;;  %v4127_v15 = vadd.f32 %v4076_v56, %v3916_v55 }
 0xbb8   :  { %v7979_v12 = vpop.f32.mrf.mxu0  ;;  %v3956_v56 = vadd.f32 %v3955_v7, %v9682_v2 }
 0xbb9   :  { %8383 = vtanh.f32 %v4153_v13  ;;  %v4156_v0 = vmul.f32 0.5, %v4144_v14  ;;  %v4130_v32 = vadd.f32 %v7979_v12, %v3931_v10  ;;  %v4143_v33 = vadd.f32 %v9686_v50, %v4127_v15 }
 0xbba   :  { %v4086_v16 = vpop.f32.mrf.mxu0 }
 0xbbb   :  { %8385 = vtanh.f32 %v4156_v0  ;;  %v4146_v17 = vadd.f32 %v9686_v50, %v4130_v32  ;;  %v4129_v36 = vadd.f32 %v4086_v16, %v3926_v31  ;;  %v4155_v37 = vmul.f32 0.5, %v4143_v33 }
 0xbbc   :  { %v7982_v38 = vpop.f32.mrf.mxu0 }
 0xbbd   :  { %v4158_v18 = vmul.f32 0.5, %v4146_v17  ;;  %v4145_v41 = vadd.f32 %v9686_v50, %v4129_v36  ;;  %v4132_v20 = vadd.f32 %v7982_v38, %v3941_v34  ;;  %8387 = vtanh.f32 %v4155_v37 }
 0xbbe   :  { %v4096_v30 = vpop.f32.mrf.mxu0 }
 0xbbf   :  { %8389 = vtanh.f32 %v4158_v18  ;;  %v4157_v62 = vmul.f32 0.5, %v4145_v41  ;;  %v4148_v44 = vadd.f32 %v9686_v50, %v4132_v20  ;;  %v4131_v3 = vadd.f32 %v4096_v30, %v3936_v39 }
 0xbc0   :  { %v7985_v4 = vpop.f32.mrf.mxu0 }
 0xbc1   :  { %8391 = vtanh.f32 %v4157_v62  ;;  %v4160_v5 = vmul.f32 0.5, %v4148_v44  ;;  %v4147_v58 = vadd.f32 %v9686_v50, %v4131_v3  ;;  %v4134_v46 = vadd.f32 %v7985_v4, %v3951_v42 }
 0xbc2   :  { %v4106_v6 = vpop.f32.mrf.mxu0 }
 0xbc3   :  { %8393 = vtanh.f32 %v4160_v5  ;;  %v4159_v8 = vmul.f32 0.5, %v4147_v58  ;;  %v4150_v48 = vadd.f32 %v9686_v50, %v4134_v46  ;;  %v4133_v27 = vadd.f32 %v4106_v6, %v3946_v26 }
 0xbc4   :  { %v8382_v52 = vpop.eup %8381  ;;  %v7988_v54 = vpop.f32.mrf.mxu0 }
 0xbc5   :  { %8395 = vtanh.f32 %v4159_v8  ;;  %v4162_v49 = vmul.f32 0.5, %v4150_v48  ;;  %v4149_v21 = vadd.f32 %v9686_v50, %v4133_v27  ;;  %v4178_v55 = vadd.f32 1.0, %v8382_v52 }
 0xbc6   :  { %v8384_v53 = vpop.eup %8383  ;;  %v4136_v10 = vadd.f32 %v7988_v54, %v3961_v9  ;;  %v4116_v11 = vpop.f32.mrf.mxu0  ;;  %v6738_v9 = vld [vmem:[%s10220_s14 + $0x150] sm:$0xff]  ;;  %v6737_v54 = vld [vmem:[%s10220_s14 + $0x148] sm:$0xff] }
 0xbc7   :  { %v4177_v13 = vadd.f32 1.0, %v8384_v53  ;;  %8397 = vtanh.f32 %v4162_v49  ;;  %v4161_v14 = vmul.f32 0.5, %v4149_v21  ;;  %v4135_v31 = vadd.f32 %v4116_v11, %v3956_v56  ;;  %8017 = vmatprep.subr.mxu0 %v6738_v9  ;;  %v6736_v49 = vld [vmem:[%s10220_s14 + $0x140] sm:$0xff] }
 0xbc8   :  { %v8386_v15 = vpop.eup %8385  ;;  %v4152_v12 = vadd.f32 %v9686_v50, %v4136_v10  ;;  %v4190_v0 = vmul.f32 0.5, %v4178_v55  ;;  %8018 = vmatpush3.msra.mxu0 %v6738_v9  ;;  %v4204_v21 = vrot.slane %v9606_v22, %v9524_v40 }
 0xbc9   :  { %8399 = vtanh.f32 %v4161_v14  ;;  %v4189_v25 = vmul.f32 0.5, %v4177_v13  ;;  %v4151_v33 = vadd.f32 %v9686_v50, %v4135_v31  ;;  %v4180_v34 = vadd.f32 1.0, %v8386_v15  ;;  %8019 = vmatprep.subr.mxu0 %v6737_v54 }
 0xbca   :  { %v4164_v32 = vmul.f32 0.5, %v4152_v12  ;;  %v8388_v16 = vpop.eup %8387  ;;  %8020 = vmatpush3.msra.mxu0 %v6737_v54 }
 0xbcb   :  { %7997 = vmatprep.mubr.msk.f32.mxu1 %vm1564_vm7, %v4189_v25  ;;  %v4179_v35 = vadd.f32 1.0, %v8388_v16  ;;  %v4163_v17 = vmul.f32 0.5, %v4151_v33  ;;  %v4192_v38 = vmul.f32 0.5, %v4180_v34  ;;  %8021 = vmatprep.subr.mxu0 %v6736_v49 }
 0xbcc   :  { %v8390_v2 = vpop.eup %8389  ;;  %8401 = vtanh.f32 %v4164_v32  ;;  %7998 = vmatmul.mubr.msk.f32.vlgmr.msra.gmra.mxu1 %vm1564_vm7, %v4190_v0  ;;  %8022 = vmatpush3.msra.mxu0 %v6736_v49 }
 0xbcd   :  { %8403 = vtanh.f32 %v4163_v17  ;;  %v4191_v37 = vmul.f32 0.5, %v4179_v35  ;;  %v4182_v39 = vadd.f32 1.0, %v8390_v2 }
 0xbce   :  { %v8392_v36 = vpop.eup %8391 }
 0xbcf   :  { %v4181_v18 = vadd.f32 1.0, %v8392_v36  ;;  %8000 = vmatprep.mubr.msk.f32.mxu1 %vm1564_vm7, %v4191_v37  ;;  %v4194_v42 = vmul.f32 0.5, %v4182_v39 }
 0xbd0   :  { %v8394_v41 = vpop.eup %8393  ;;  %8001 = vmatmul.mubr.msk.f32.gmra.mxu1 %vm1564_vm7, %v4192_v38 }
 0xbd1   :  { %v4193_v50 = vmul.f32 0.5, %v4181_v18  ;;  %v4184_v30 = vadd.f32 1.0, %v8394_v41  ;;  %v6747_v18 = vld [vmem:[%s10220_s14 + $0x198] sm:$0xff]  ;;  %v6746_v41 = vld [vmem:[%s10220_s14 + $0x190] sm:$0xff] }
 0xbd2   :  { %v8396_v20 = vpop.eup %8395  ;;  %8041 = vmatprep.subr.mxu1 %v6747_v18 }
 0xbd3   :  { %v4183_v60 = vadd.f32 1.0, %v8396_v20  ;;  %8003 = vmatprep.mubr.msk.f32.mxu1 %vm1564_vm7, %v4193_v50  ;;  %v4196_v26 = vmul.f32 0.5, %v4184_v30  ;;  %8042 = vmatpush3.msra.mxu1 %v6747_v18  ;;  %v6745_v50 = vld [vmem:[%s10220_s14 + $0x188] sm:$0xff]  ;;  %v6744_v20 = vld [vmem:[%s10220_s14 + $0x180] sm:$0xff]  ;;  %v6742_v30 = vld [vmem:[%s10220_s14 + $0x170] sm:$0xff] }
 0xbd4   :  { %v8398_v62 = vpop.eup %8397  ;;  %8004 = vmatmul.mubr.msk.f32.gmra.mxu1 %vm1564_vm7, %v4194_v42  ;;  %8043 = vmatprep.subr.mxu1 %v6746_v41  ;;  %v6743_v42 = vld [vmem:[%s10220_s14 + $0x178] sm:$0xff] }
 0xbd5   :  { %v4195_v44 = vmul.f32 0.5, %v4183_v60  ;;  %v4186_v4 = vadd.f32 1.0, %v8398_v62  ;;  %8044 = vmatpush3.msra.mxu1 %v6746_v41  ;;  %8067 = vmatprep.subr.mxu0 %v6743_v42  ;;  %v6741_v60 = vld [vmem:[%s10220_s14 + $0x168] sm:$0xff]  ;;  %v6740_v62 = vld [vmem:[%s10220_s14 + $0x160] sm:$0xff] }
 0xbd6   :  { %v8400_v3 = vpop.eup %8399  ;;  %8045 = vmatprep.subr.mxu1 %v6745_v50 }
 0xbd7   :  { %v4185_v5 = vadd.f32 1.0, %v8400_v3  ;;  %8006 = vmatprep.mubr.msk.f32.mxu1 %vm1564_vm7, %v4195_v44  ;;  %v4198_v7 = vmul.f32 0.5, %v4186_v4  ;;  %8046 = vmatpush3.msra.mxu1 %v6745_v50  ;;  %v6751_v44 = vld [vmem:[%s10220_s14 + $0x1b8] sm:$0xff]  ;;  %v9803_v3 = vld [vmem:[%s10221_s15 + $0x8] sm:$0x7] }
 0xbd8   :  { %8007 = vmatmul.mubr.msk.f32.gmra.mxu1 %vm1564_vm7, %v4196_v26  ;;  %8047 = vmatprep.subr.mxu1 %v6744_v20  ;;  %v4404_v26 = vrot.slane %v9803_v3, %v9398_v29 }
 0xbd9   :  { %v8402_v58 = vpop.eup %8401  ;;  %v4197_v46 = vmul.f32 0.5, %v4185_v5  ;;  %8048 = vmatpush3.msra.mxu1 %v6744_v20 }
 0xbda   :  { %v8404_v6 = vpop.eup %8403  ;;  %v4188_v8 = vadd.f32 1.0, %v8402_v58  ;;  %8093 = vmatprep.subr.mxu1 %v6751_v44 }
 0xbdb   :  { %8009 = vmatprep.mubr.msk.f32.mxu1 %vm1564_vm7, %v4197_v46  ;;  %v4187_v48 = vadd.f32 1.0, %v8404_v6 }
 0xbdc   :  { %8010 = vmatmul.mubr.msk.f32.gmra.mxu1 %vm1564_vm7, %v4198_v7  ;;  %v4200_v52 = vmul.f32 0.5, %v4188_v8 }
 0xbdd   :  { %v4199_v27 = vmul.f32 0.5, %v4187_v48 }
 0xbdf   :  { %8012 = vmatprep.mubr.msk.f32.mxu1 %vm1564_vm7, %v4199_v27 }
 0xbe0   :  { %8013 = vmatmul.mubr.msk.f32.gmra.mxu1 %vm1564_vm7, %v4200_v52 }
 0xc8c   :  { %v7999_v53 = vpop.f32.mrf.mxu1 }
 0xc8d   :  { %v9727_v10 = vadd.f32 %v7999_v53, %v4204_v21 }
 0xc8e   :  { %v4307_v55 = vpop.f32.mrf.mxu1 }
 0xc8f   :  { %v9725_v56 = vadd.f32 %v4307_v55, %v4204_v21 }
 0xc90   :  { %v8002_v11 = vpop.f32.mrf.mxu1 }
 0xc91   :  { %8023 = vmatprep.mubr.msk.f32.mxu0 %vm1564_vm7, %v9725_v56  ;;  %v9735_v15 = vadd.f32 %v8002_v11, %v4204_v21 }
 0xc92   :  { %8024 = vmatmul.mubr.msk.f32.vlgmr.msra.gmra.mxu0 %vm1564_vm7, %v9727_v10  ;;  %v4317_v13 = vpop.f32.mrf.mxu1 }
 0xc93   :  { %v9733_v14 = vadd.f32 %v4317_v13, %v4204_v21  ;;  %8068 = vmatpush3.msra.mxu0 %v6743_v42  ;;  %v6748_v42 = vld [vmem:[%s10220_s14 + $0x1a0] sm:$0xff] }
 0xc94   :  { %v8005_v12 = vpop.f32.mrf.mxu1  ;;  %8069 = vmatprep.subr.mxu0 %v6742_v30 }
 0xc95   :  { %8026 = vmatprep.mubr.msk.f32.mxu0 %vm1564_vm7, %v9733_v14  ;;  %v9743_v25 = vadd.f32 %v8005_v12, %v4204_v21  ;;  %8070 = vmatpush3.msra.mxu0 %v6742_v30 }
 0xc96   :  { %v4327_v22 = vpop.f32.mrf.mxu1  ;;  %8027 = vmatmul.mubr.msk.f32.gmra.mxu0 %vm1564_vm7, %v9735_v15  ;;  %8071 = vmatprep.subr.mxu0 %v6741_v60 }
 0xc97   :  { %v9741_v31 = vadd.f32 %v4327_v22, %v4204_v21  ;;  %8072 = vmatpush3.msra.mxu0 %v6741_v60 }
 0xc98   :  { %v8008_v0 = vpop.f32.mrf.mxu1  ;;  %8073 = vmatprep.subr.mxu0 %v6740_v62 }
 0xc99   :  { %8029 = vmatprep.mubr.msk.f32.mxu0 %vm1564_vm7, %v9741_v31  ;;  %v9751_v16 = vadd.f32 %v8008_v0, %v4204_v21  ;;  %8074 = vmatpush3.msra.mxu0 %v6740_v62 }
 0xc9a   :  { %v4337_v32 = vpop.f32.mrf.mxu1  ;;  %8030 = vmatmul.mubr.msk.f32.gmra.mxu0 %vm1564_vm7, %v9743_v25 }
 0xc9b   :  { %v9749_v33 = vadd.f32 %v4337_v32, %v4204_v21  ;;  %v6750_v32 = vld [vmem:[%s10220_s14 + $0x1b0] sm:$0xff] }
 0xc9c   :  { %v8011_v34 = vpop.f32.mrf.mxu1 }
 0xc9d   :  { %8032 = vmatprep.mubr.msk.f32.mxu0 %vm1564_vm7, %v9749_v33  ;;  %v9759_v17 = vadd.f32 %v8011_v34, %v4204_v21 }
 0xc9e   :  { %v4347_v2 = vpop.f32.mrf.mxu1  ;;  %8033 = vmatmul.mubr.msk.f32.gmra.mxu0 %vm1564_vm7, %v9751_v16 }
 0xc9f   :  { %v9757_v35 = vadd.f32 %v4347_v2, %v4204_v21 }
 0xca0   :  { %v8014_v36 = vpop.f32.mrf.mxu1 }
 0xca1   :  { %8035 = vmatprep.mubr.msk.f32.mxu0 %vm1564_vm7, %v9757_v35  ;;  %v9767_v39 = vadd.f32 %v8014_v36, %v4204_v21 }
 0xca2   :  { %v4357_v37 = vpop.f32.mrf.mxu1  ;;  %8036 = vmatmul.mubr.msk.f32.gmra.mxu0 %vm1564_vm7, %v9759_v17 }
 0xca3   :  { %v9765_v38 = vadd.f32 %v4357_v37, %v4204_v21  ;;  %v6749_v37 = vld [vmem:[%s10220_s14 + $0x1a8] sm:$0xff] }
 0xca5   :  { %8038 = vmatprep.mubr.msk.f32.mxu0 %vm1564_vm7, %v9765_v38 }
 0xca6   :  { %8039 = vmatmul.mubr.msk.f32.gmra.mxu0 %vm1564_vm7, %v9767_v39 }
 0xd52   :  { %v8025_v4 = vpop.f32.mrf.mxu0 }
 0xd53   :  { %v4513_v5 = vadd.f32 %v8025_v4, %v4404_v26 }
 0xd54   :  { %v4507_v58 = vpop.f32.mrf.mxu0 }
 0xd55   :  { %8405 = vtanh.f32 %v4513_v5  ;;  %v4508_v46 = vadd.f32 %v4507_v58, %v4404_v26 }
 0xd56   :  { %v8028_v6 = vpop.f32.mrf.mxu0 }
 0xd57   :  { %8407 = vtanh.f32 %v4508_v46  ;;  %v4523_v7 = vadd.f32 %v8028_v6, %v4404_v26  ;;  %v4593_v6 = vld [vmem:[#allocation2 + $0x2c] sm:$0xff] }
 0xd58   :  { %v4517_v8 = vpop.f32.mrf.mxu0 }
 0xd59   :  { %8409 = vtanh.f32 %v4523_v7  ;;  %v4518_v48 = vadd.f32 %v4517_v8, %v4404_v26 }
 0xd5a   :  { %v8031_v27 = vpop.f32.mrf.mxu0 }
 0xd5b   :  { %8411 = vtanh.f32 %v4518_v48  ;;  %v4533_v52 = vadd.f32 %v8031_v27, %v4404_v26 }
 0xd5c   :  { %v4527_v9 = vpop.f32.mrf.mxu0 }
 0xd5d   :  { %v4528_v54 = vadd.f32 %v4527_v9, %v4404_v26 }
 0xd5e   :  { %v8034_v49 = vpop.f32.mrf.mxu0 }
 0xd5f   :  { %8413 = vtanh.f32 %v4528_v54  ;;  %v4543_v21 = vadd.f32 %v8034_v49, %v4404_v26 }
 0xd60   :  { %8415 = vtanh.f32 %v4533_v52  ;;  %v4537_v53 = vpop.f32.mrf.mxu0 }
 0xd61   :  { %8417 = vtanh.f32 %v4543_v21  ;;  %v4538_v11 = vadd.f32 %v4537_v53, %v4404_v26  ;;  %v4599_v21 = vld [vmem:[#allocation2 + $0x5c] sm:$0xff] }
 0xd62   :  { %v8406_v55 = vpop.eup %8405  ;;  %v8037_v13 = vpop.f32.mrf.mxu0 }
 0xd63   :  { %4579 = vst.msk [vmem:[#allocation2 + $0x10] sm:$0xff] %vm1564_vm7, %v8406_v55  ;;  %8419 = vtanh.f32 %v4538_v11  ;;  %v4553_v22 = vadd.f32 %v8037_v13, %v4404_v26  ;;  %v6755_v11 = vld [vmem:[%s10220_s14 + $0x1d8] sm:$0xff]  ;;  %v6754_v13 = vld [vmem:[%s10220_s14 + $0x1d0] sm:$0xff] }
 0xd64   :  { %v8408_v12 = vpop.eup %8407  ;;  %v4547_v0 = vpop.f32.mrf.mxu0  ;;  %8119 = vmatprep.subr.mxu0 %v6755_v11 }
 0xd65   :  { %4578 = vst.msk [vmem:[#allocation2 + $0x8] sm:$0xff] %vm1564_vm7, %v8408_v12  ;;  %8049 = vmatprep.mubr.msk.f32.mxu1 %vm1564_vm7, %v8408_v12  ;;  %8421 = vtanh.f32 %v4553_v22  ;;  %v4548_v34 = vadd.f32 %v4547_v0, %v4404_v26  ;;  %v6753_v12 = vld [vmem:[%s10220_s14 + $0x1c8] sm:$0xff]  ;;  %v6752_v22 = vld [vmem:[%s10220_s14 + $0x1c0] sm:$0xff]  ;;  %v6820_v0 = vld [vmem:[%s10220_s14 + $0x1f8] sm:$0xff] }
 0xd66   :  { %8050 = vmatmul.mubr.msk.f32.vlgmr.msra.gmra.mxu1 %vm1564_vm7, %v8406_v55  ;;  %v8410_v2 = vpop.eup %8409  ;;  %v8040_v36 = vpop.f32.mrf.mxu0  ;;  %v4600_v55 = vld [vmem:[#allocation2 + $0x64] sm:$0xff] }
 0xd67   :  { %8094 = vmatpush3.msra.mxu1 %v6751_v44  ;;  %4581 = vst.msk [vmem:[#allocation2 + $0x20] sm:$0xff] %vm1564_vm7, %v8410_v2  ;;  %8423 = vtanh.f32 %v4548_v34  ;;  %v4563_v41 = vadd.f32 %v8040_v36, %v4404_v26 }
 0xd68   :  { %8095 = vmatprep.subr.mxu1 %v6750_v32  ;;  %v8412_v18 = vpop.eup %8411  ;;  %v4557_v50 = vpop.f32.mrf.mxu0 }
 0xd69   :  { %8096 = vmatpush3.msra.mxu1 %v6750_v32  ;;  %4580 = vst.msk [vmem:[#allocation2 + $0x18] sm:$0xff] %vm1564_vm7, %v8412_v18  ;;  %v4558_v20 = vadd.f32 %v4557_v50, %v4404_v26  ;;  %8052 = vmatprep.mubr.msk.f32.mxu1 %vm1564_vm7, %v8412_v18 }
 0xd6a   :  { %8097 = vmatprep.subr.mxu1 %v6749_v37  ;;  %8053 = vmatmul.mubr.msk.f32.gmra.mxu1 %vm1564_vm7, %v8410_v2 }
 0xd6b   :  { %8425 = vtanh.f32 %v4558_v20  ;;  %8098 = vmatpush3.msra.mxu1 %v6749_v37 }
 0xd6c   :  { %v4588_v30 = vld [vmem:[#allocation2 + $0x4] sm:$0xff]  ;;  %v4589_v60 = vld [vmem:[#allocation2 + $0xc] sm:$0xff]  ;;  %v8414_v62 = vpop.eup %8413  ;;  %8427 = vtanh.f32 %v4563_v41  ;;  %8099 = vmatprep.subr.mxu1 %v6748_v42 }
 0xd6d   :  { %8075 = vmatprep.mubr.msk.f32.mxu0 %vm1564_vm7, %v4588_v30  ;;  %v8416_v44 = vpop.eup %8415  ;;  %4582 = vst.msk [vmem:[#allocation2 + $0x28] sm:$0x1] %vm2653_vm9, %v8414_v62  ;;  %8055 = vmatprep.mubr.msk.f32.mxu1 %vm1564_vm7, %v8414_v62 }
 0xd6e   :  { %8076 = vmatmul.mubr.msk.f32.vlgmr.msra.gmra.mxu0 %vm1564_vm7, %v4589_v60  ;;  %v8418_v26 = vpop.eup %8417  ;;  %8056 = vmatmul.mubr.msk.f32.gmra.mxu1 %vm1564_vm7, %v8416_v44 }
 0xd6f   :  { %4584 = vst.msk [vmem:[#allocation2 + $0x40] sm:$0xff] %vm1564_vm7, %v8418_v26  ;;  %8100 = vmatpush3.msra.mxu1 %v6748_v42  ;;  %8120 = vmatpush3.msra.mxu0 %v6755_v11 }
 0xd70   :  { %v8420_v4 = vpop.eup %8419  ;;  %v4590_v5 = vld [vmem:[#allocation2 + $0x14] sm:$0xff]  ;;  %v4591_v58 = vld [vmem:[#allocation2 + $0x1c] sm:$0xff]  ;;  %8121 = vmatprep.subr.mxu0 %v6754_v13  ;;  %8145 = vmatprep.subr.mxu1 %v6820_v0 }
 0xd71   :  { %4583 = vst.msk [vmem:[#allocation2 + $0x38] sm:$0xff] %vm1564_vm7, %v8420_v4  ;;  %8058 = vmatprep.mubr.msk.f32.mxu1 %vm1564_vm7, %v8420_v4  ;;  %8078 = vmatprep.mubr.msk.f32.mxu0 %vm1564_vm7, %v4590_v5 }
 0xd72   :  { %v8422_v46 = vpop.eup %8421  ;;  %8059 = vmatmul.mubr.msk.f32.gmra.mxu1 %vm1564_vm7, %v8418_v26  ;;  %8079 = vmatmul.mubr.msk.f32.gmra.mxu0 %vm1564_vm7, %v4591_v58 }
 0xd73   :  { %4586 = vst.msk [vmem:[#allocation2 + $0x50] sm:$0xff] %vm1564_vm7, %v8422_v46  ;;  %8122 = vmatpush3.msra.mxu0 %v6754_v13 }
 0xd74   :  { %v8424_v7 = vpop.eup %8423  ;;  %v4592_v8 = vld [vmem:[#allocation2 + $0x24] sm:$0xff]  ;;  %8123 = vmatprep.subr.mxu0 %v6753_v12 }
 0xd75   :  { %4585 = vst.msk [vmem:[#allocation2 + $0x48] sm:$0xff] %vm1564_vm7, %v8424_v7  ;;  %8061 = vmatprep.mubr.msk.f32.mxu1 %vm1564_vm7, %v8424_v7  ;;  %8081 = vmatprep.mubr.msk.f32.mxu0 %vm1564_vm7, %v4592_v8  ;;  %v9883_v7 = vrot.slane %v9803_v3, %v9478_v23 }
 0xd76   :  { %8062 = vmatmul.mubr.msk.f32.gmra.mxu1 %vm1564_vm7, %v8422_v46  ;;  %8082 = vmatmul.mubr.msk.f32.gmra.mxu0 %vm1564_vm7, %v4593_v6 }
 0xd77   :  { %8124 = vmatpush3.msra.mxu0 %v6753_v12 }
 0xd78   :  { %v8426_v48 = vpop.eup %8425  ;;  %v4594_v27 = vld [vmem:[#allocation2 + $0x34] sm:$0xff]  ;;  %v4595_v52 = vld [vmem:[#allocation2 + $0x3c] sm:$0xff]  ;;  %8125 = vmatprep.subr.mxu0 %v6752_v22 }
 0xd79   :  { %v8428_v9 = vpop.eup %8427  ;;  %4587 = vst.msk [vmem:[#allocation2 + $0x58] sm:$0x1] %vm2653_vm9, %v8426_v48  ;;  %8064 = vmatprep.mubr.msk.f32.mxu1 %vm1564_vm7, %v8426_v48  ;;  %8084 = vmatprep.mubr.msk.f32.mxu0 %vm1564_vm7, %v4594_v27 }
 0xd7a   :  { %8065 = vmatmul.mubr.msk.f32.gmra.mxu1 %vm1564_vm7, %v8428_v9  ;;  %8085 = vmatmul.mubr.msk.f32.gmra.mxu0 %vm1564_vm7, %v4595_v52 }
 0xd7b   :  { %8101 = vmatprep.mubr.msk.f32.mxu1 %vm1564_vm7, %v4589_v60  ;;  %8126 = vmatpush3.msra.mxu0 %v6752_v22 }
 0xd7c   :  { %v4596_v54 = vld [vmem:[#allocation2 + $0x44] sm:$0xff]  ;;  %v4597_v49 = vld [vmem:[#allocation2 + $0x4c] sm:$0xff] }
 0xd7d   :  { %8087 = vmatprep.mubr.msk.f32.mxu0 %vm1564_vm7, %v4596_v54 }
 0xd7e   :  { %8088 = vmatmul.mubr.msk.f32.gmra.mxu0 %vm1564_vm7, %v4597_v49  ;;  %8102 = vmatmul.mubr.msk.f32.vlgmr.msra.gmra.mxu1 %vm1564_vm7, %v4590_v5 }
 0xd7f   :  { %8104 = vmatprep.mubr.msk.f32.mxu1 %vm1564_vm7, %v4591_v58  ;;  %8146 = vmatpush3.msra.mxu1 %v6820_v0 }
 0xd80   :  { %v4598_v53 = vld [vmem:[#allocation2 + $0x54] sm:$0xff] }
 0xd81   :  { %8090 = vmatprep.mubr.msk.f32.mxu0 %vm1564_vm7, %v4598_v53 }
 0xd82   :  { %8091 = vmatmul.mubr.msk.f32.gmra.mxu0 %vm1564_vm7, %v4599_v21  ;;  %8105 = vmatmul.mubr.msk.f32.gmra.mxu1 %vm1564_vm7, %v4592_v8 }
 0xd83   :  { %8107 = vmatprep.mubr.msk.f32.mxu1 %vm1564_vm7, %v4593_v6 }
 0xd86   :  { %8108 = vmatmul.mubr.msk.f32.gmra.mxu1 %vm1564_vm7, %v4594_v27 }
 0xd87   :  { %8110 = vmatprep.mubr.msk.f32.mxu1 %vm1564_vm7, %v4595_v52 }
 0xd8a   :  { %8111 = vmatmul.mubr.msk.f32.gmra.mxu1 %vm1564_vm7, %v4596_v54 }
 0xd8b   :  { %8113 = vmatprep.mubr.msk.f32.mxu1 %vm1564_vm7, %v4597_v49 }
 0xd8e   :  { %8114 = vmatmul.mubr.msk.f32.gmra.mxu1 %vm1564_vm7, %v4598_v53 }
 0xd8f   :  { %8116 = vmatprep.mubr.msk.f32.mxu1 %vm1564_vm7, %v4599_v21 }
 0xd92   :  { %8117 = vmatmul.mubr.msk.f32.gmra.mxu1 %vm1564_vm7, %v4600_v55 }
 0xe26   :  { %v8051_v32 = vpop.f32.mrf.mxu1 }
 0xe28   :  { %v4703_v34 = vpop.f32.mrf.mxu1 }
 0xe2a   :  { %v8054_v2 = vpop.f32.mrf.mxu1 }
 0xe2c   :  { %v4713_v36 = vpop.f32.mrf.mxu1 }
 0xe2e   :  { %v8077_v37 = vpop.f32.mrf.mxu0  ;;  %v8057_v18 = vpop.f32.mrf.mxu1 }
 0xe2f   :  { %v4870_v46 = vadd.f32 %v8077_v37, %v8051_v32 }
 0xe30   :  { %v4864_v41 = vpop.f32.mrf.mxu0  ;;  %v4723_v50 = vpop.f32.mrf.mxu1 }
 0xe31   :  { %v4865_v48 = vadd.f32 %v4864_v41, %v4703_v34 }
 0xe32   :  { %v8060_v20 = vpop.f32.mrf.mxu1  ;;  %v8080_v42 = vpop.f32.mrf.mxu0 }
 0xe33   :  { %v4880_v9 = vadd.f32 %v8080_v42, %v8054_v2 }
 0xe34   :  { %v4733_v30 = vpop.f32.mrf.mxu1  ;;  %v4874_v60 = vpop.f32.mrf.mxu0 }
 0xe35   :  { %v4875_v12 = vadd.f32 %v4874_v60, %v4713_v36 }
 0xe36   :  { %v8063_v62 = vpop.f32.mrf.mxu1  ;;  %v8083_v44 = vpop.f32.mrf.mxu0 }
 0xe37   :  { %v4890_v0 = vadd.f32 %v8083_v44, %v8057_v18 }
 0xe38   :  { %v4743_v26 = vpop.f32.mrf.mxu1  ;;  %v4884_v4 = vpop.f32.mrf.mxu0 }
 0xe39   :  { %v4885_v2 = vadd.f32 %v4884_v4, %v4723_v50 }
 0xe3a   :  { %v9877_v5 = vpop.f32.mrf.mxu1  ;;  %v8086_v6 = vpop.f32.mrf.mxu0 }
 0xe3c   :  { %v9879_v58 = vpop.f32.mrf.mxu1  ;;  %v4894_v54 = vpop.f32.mrf.mxu0 }
 0xe3e   :  { %v8103_v8 = vpop.f32.mrf.mxu1  ;;  %v8089_v32 = vpop.f32.mrf.mxu0 }
 0xe3f   :  { %v5052_v27 = vadd.f32 %v8103_v8, %v4870_v46  ;;  %v4910_v50 = vadd.f32 %v8089_v32, %v8063_v62 }
 0xe40   :  { %v4992_v52 = vpop.f32.mrf.mxu1 }
 0xe41   :  { %v5068_v49 = vadd.f32 %v9883_v7, %v5052_v27  ;;  %v5051_v21 = vadd.f32 %v4992_v52, %v4865_v48  ;;  %v4900_v52 = vadd.f32 %v8086_v6, %v8060_v20 }
 0xe42   :  { %v8106_v53 = vpop.f32.mrf.mxu1 }
 0xe43   :  { %v5080_v55 = vmul.f32 0.5, %v5068_v49  ;;  %v5067_v11 = vadd.f32 %v9883_v7, %v5051_v21  ;;  %v5054_v13 = vadd.f32 %v8106_v53, %v4880_v9  ;;  %v4904_v49 = vpop.f32.mrf.mxu0  ;;  %v4895_v9 = vadd.f32 %v4894_v54, %v4733_v30 }
 0xe44   :  { %v5002_v22 = vpop.f32.mrf.mxu1 }
 0xe45   :  { %8429 = vtanh.f32 %v5080_v55  ;;  %v5079_v37 = vmul.f32 0.5, %v5067_v11  ;;  %v5070_v34 = vadd.f32 %v9883_v7, %v5054_v13  ;;  %v5053_v41 = vadd.f32 %v5002_v22, %v4875_v12  ;;  %v8092_v11 = vpop.f32.mrf.mxu0 }
 0xe46   :  { %v8109_v46 = vpop.f32.mrf.mxu1  ;;  %v4905_v12 = vadd.f32 %v4904_v49, %v4743_v26 }
 0xe47   :  { %8431 = vtanh.f32 %v5079_v37  ;;  %v5082_v42 = vmul.f32 0.5, %v5070_v34  ;;  %v5056_v8 = vadd.f32 %v8109_v46, %v4890_v0  ;;  %v5069_v48 = vadd.f32 %v9883_v7, %v5053_v41  ;;  %v4914_v34 = vpop.f32.mrf.mxu0 }
 0xe48   :  { %v5012_v27 = vpop.f32.mrf.mxu1 }
 0xe49   :  { %8433 = vtanh.f32 %v5082_v42  ;;  %v5072_v36 = vadd.f32 %v9883_v7, %v5056_v8  ;;  %v5055_v18 = vadd.f32 %v5012_v27, %v4885_v2  ;;  %v5081_v60 = vmul.f32 0.5, %v5069_v48 }
 0xe4a   :  { %v8112_v44 = vpop.f32.mrf.mxu1  ;;  %v4920_v2 = vadd.f32 %v8092_v11, %v9877_v5 }
 0xe4b   :  { %v5084_v21 = vmul.f32 0.5, %v5072_v36  ;;  %v5071_v53 = vadd.f32 %v9883_v7, %v5055_v18  ;;  %v5058_v55 = vadd.f32 %v8112_v44, %v4900_v52  ;;  %8435 = vtanh.f32 %v5081_v60 }
 0xe4c   :  { %v5022_v4 = vpop.f32.mrf.mxu1  ;;  %v4915_v52 = vadd.f32 %v4914_v34, %v9879_v58 }
 0xe4d   :  { %8437 = vtanh.f32 %v5084_v21  ;;  %v5083_v13 = vmul.f32 0.5, %v5071_v53  ;;  %v5074_v20 = vadd.f32 %v9883_v7, %v5058_v55  ;;  %v5057_v6 = vadd.f32 %v5022_v4, %v4895_v9 }
 0xe4e   :  { %v8115_v22 = vpop.f32.mrf.mxu1 }
 0xe4f   :  { %8439 = vtanh.f32 %v5083_v13  ;;  %v5086_v0 = vmul.f32 0.5, %v5074_v20  ;;  %v5073_v37 = vadd.f32 %v9883_v7, %v5057_v6  ;;  %v5060_v30 = vadd.f32 %v8115_v22, %v4910_v50 }
 0xe50   :  { %v5032_v54 = vpop.f32.mrf.mxu1 }
 0xe51   :  { %8441 = vtanh.f32 %v5086_v0  ;;  %v5085_v41 = vmul.f32 0.5, %v5073_v37  ;;  %v5076_v62 = vadd.f32 %v9883_v7, %v5060_v30  ;;  %v5059_v32 = vadd.f32 %v5032_v54, %v4905_v12 }
 0xe52   :  { %v8430_v46 = vpop.eup %8429  ;;  %v8118_v42 = vpop.f32.mrf.mxu1 }
 0xe53   :  { %8443 = vtanh.f32 %v5085_v41  ;;  %v5088_v8 = vmul.f32 0.5, %v5076_v62  ;;  %v5075_v26 = vadd.f32 %v9883_v7, %v5059_v32  ;;  %v5104_v27 = vadd.f32 1.0, %v8430_v46 }
 0xe54   :  { %v8432_v48 = vpop.eup %8431  ;;  %v5062_v49 = vadd.f32 %v8118_v42, %v4920_v2  ;;  %v5042_v36 = vpop.f32.mrf.mxu1 }
 0xe55   :  { %v5103_v18 = vadd.f32 1.0, %v8432_v48  ;;  %8445 = vtanh.f32 %v5088_v8  ;;  %v5087_v60 = vmul.f32 0.5, %v5075_v26  ;;  %v5061_v21 = vadd.f32 %v5042_v36, %v4915_v52 }
 0xe56   :  { %v8434_v44 = vpop.eup %8433  ;;  %v5078_v9 = vadd.f32 %v9883_v7, %v5062_v49  ;;  %v5116_v53 = vmul.f32 0.5, %v5104_v27 }
 0xe57   :  { %8447 = vtanh.f32 %v5087_v60  ;;  %v5115_v5 = vmul.f32 0.5, %v5103_v18  ;;  %v5077_v50 = vadd.f32 %v9883_v7, %v5061_v21  ;;  %v5106_v11 = vadd.f32 1.0, %v8434_v44  ;;  %v6818_v21 = vld [vmem:[%s10220_s14 + $0x1e8] sm:$0xff] }
 0xe58   :  { %v5090_v55 = vmul.f32 0.5, %v5078_v9  ;;  %v8436_v4 = vpop.eup %8435  ;;  %v6819_v9 = vld [vmem:[%s10220_s14 + $0x1f0] sm:$0xff] }
 0xe59   :  { %8127 = vmatprep.mubr.msk.f32.mxu0 %vm1564_vm7, %v5115_v5  ;;  %v5105_v13 = vadd.f32 1.0, %v8436_v4  ;;  %v5089_v20 = vmul.f32 0.5, %v5077_v50  ;;  %v5118_v22 = vmul.f32 0.5, %v5106_v11  ;;  %8147 = vmatprep.subr.mxu1 %v6819_v9  ;;  %v6817_v5 = vld [vmem:[%s10220_s14 + $0x1e0] sm:$0xff]  ;;  %v4367_v50 = vadd.f32 %v9727_v10, %v9530_v43 }
 0xe5a   :  { %v8438_v58 = vpop.eup %8437  ;;  %8449 = vtanh.f32 %v5090_v55  ;;  %8128 = vmatmul.mubr.msk.f32.vlgmr.msra.gmra.mxu0 %vm1564_vm7, %v5116_v53  ;;  %8148 = vmatpush3.msra.mxu1 %v6819_v9  ;;  %v5130_v53 = vrot.slane %v9803_v3, %v9524_v40  ;;  %v4369_v3 = vadd.f32 %v9735_v15, %v9538_v28  ;;  %v4368_v10 = vadd.f32 %v9733_v14, %v9536_v45  ;;  %v6832_v9 = vld [vmem:[%s10220_s14 + $0x258] sm:$0xff] }
 0xe5b   :  { %8451 = vtanh.f32 %v5089_v20  ;;  %v5117_v12 = vmul.f32 0.5, %v5105_v13  ;;  %v5108_v0 = vadd.f32 1.0, %v8438_v58  ;;  %8149 = vmatprep.subr.mxu1 %v6818_v21  ;;  %v4366_v58 = vadd.f32 %v9725_v56, %v9528_v19 }
 0xe5c   :  { %v8440_v6 = vpop.eup %8439  ;;  %8150 = vmatpush3.msra.mxu1 %v6818_v21  ;;  %v4370_v15 = vadd.f32 %v9741_v31, %v9544_v47  ;;  %v10013_v21 = vld [vmem:[%s10221_s15 + $0xc] sm:$0x7] }
 0xe5d   :  { %v5107_v37 = vadd.f32 1.0, %v8440_v6  ;;  %8130 = vmatprep.mubr.msk.f32.mxu0 %vm1564_vm7, %v5117_v12  ;;  %v5120_v34 = vmul.f32 0.5, %v5108_v0  ;;  %8151 = vmatprep.subr.mxu1 %v6817_v5 }
 0xe5e   :  { %v8442_v30 = vpop.eup %8441  ;;  %8131 = vmatmul.mubr.msk.f32.gmra.mxu0 %vm1564_vm7, %v5118_v22  ;;  %8152 = vmatpush3.msra.mxu1 %v6817_v5  ;;  %v5330_v5 = vrot.slane %v10013_v21, %v9398_v29 }
 0xe5f   :  { %v5119_v7 = vmul.f32 0.5, %v5107_v37  ;;  %v5110_v41 = vadd.f32 1.0, %v8442_v30  ;;  %v4371_v37 = vadd.f32 %v9743_v25, %v9546_v59 }
 0xe60   :  { %v8444_v54 = vpop.eup %8443 }
 0xe61   :  { %v5109_v62 = vadd.f32 1.0, %v8444_v54  ;;  %8133 = vmatprep.mubr.msk.f32.mxu0 %vm1564_vm7, %v5119_v7  ;;  %v5122_v42 = vmul.f32 0.5, %v5110_v41 }
 0xe62   :  { %v8446_v32 = vpop.eup %8445  ;;  %8134 = vmatmul.mubr.msk.f32.gmra.mxu0 %vm1564_vm7, %v5120_v34  ;;  %v4373_v34 = vadd.f32 %v9751_v16, %v9554_v61 }
 0xe63   :  { %v5121_v46 = vmul.f32 0.5, %v5109_v62  ;;  %v5112_v8 = vadd.f32 1.0, %v8446_v32  ;;  %v4372_v62 = vadd.f32 %v9749_v33, %v9552_v24 }
 0xe64   :  { %v8448_v2 = vpop.eup %8447 }
 0xe65   :  { %v5111_v26 = vadd.f32 1.0, %v8448_v2  ;;  %8136 = vmatprep.mubr.msk.f32.mxu0 %vm1564_vm7, %v5121_v46  ;;  %v5124_v49 = vmul.f32 0.5, %v5112_v8  ;;  %v4375_v46 = vadd.f32 %v9759_v17, %v9562_v1 }
 0xe66   :  { %8137 = vmatmul.mubr.msk.f32.gmra.mxu0 %vm1564_vm7, %v5122_v42  ;;  %v4374_v42 = vadd.f32 %v9757_v35, %v9560_v63 }
 0xe67   :  { %v8450_v48 = vpop.eup %8449  ;;  %v5123_v27 = vmul.f32 0.5, %v5111_v26  ;;  %v4377_v26 = vadd.f32 %v9767_v39, %v9570_v57  ;;  %v6828_v57 = vld [vmem:[%s10220_s14 + $0x238] sm:$0xff]  ;;  %v6827_v39 = vld [vmem:[%s10220_s14 + $0x230] sm:$0xff] }
 0xe68   :  { %v8452_v52 = vpop.eup %8451  ;;  %v5114_v36 = vadd.f32 1.0, %v8450_v48  ;;  %8171 = vmatprep.subr.mxu0 %v6828_v57 }
 0xe69   :  { %8139 = vmatprep.mubr.msk.f32.mxu0 %vm1564_vm7, %v5123_v27  ;;  %v5113_v18 = vadd.f32 1.0, %v8452_v52  ;;  %v4376_v27 = vadd.f32 %v9765_v38, %v9568_v51  ;;  %8172 = vmatpush3.msra.mxu0 %v6828_v57  ;;  %v6826_v51 = vld [vmem:[%s10220_s14 + $0x228] sm:$0xff]  ;;  %v6825_v38 = vld [vmem:[%s10220_s14 + $0x220] sm:$0xff] }
 0xe6a   :  { %8140 = vmatmul.mubr.msk.f32.gmra.mxu0 %vm1564_vm7, %v5124_v49  ;;  %v5126_v44 = vmul.f32 0.5, %v5114_v36  ;;  %8173 = vmatprep.subr.mxu0 %v6827_v39  ;;  %v6824_v49 = vld [vmem:[%s10220_s14 + $0x218] sm:$0xff]  ;;  %v6823_v36 = vld [vmem:[%s10220_s14 + $0x210] sm:$0xff] }
 0xe6b   :  { %v5125_v60 = vmul.f32 0.5, %v5113_v18  ;;  %8174 = vmatpush3.msra.mxu0 %v6827_v39  ;;  %8197 = vmatprep.subr.mxu1 %v6824_v49  ;;  %v6822_v18 = vld [vmem:[%s10220_s14 + $0x208] sm:$0xff] }
 0xe6c   :  { %8175 = vmatprep.subr.mxu0 %v6826_v51 }
 0xe6d   :  { %8142 = vmatprep.mubr.msk.f32.mxu0 %vm1564_vm7, %v5125_v60  ;;  %8176 = vmatpush3.msra.mxu0 %v6826_v51  ;;  %v6821_v60 = vld [vmem:[%s10220_s14 + $0x200] sm:$0xff]  ;;  %v5520_v51 = vld [vmem:[#allocation2 + $0x30] sm:$0xff] }
 0xe6e   :  { %8143 = vmatmul.mubr.msk.f32.gmra.mxu0 %vm1564_vm7, %v5126_v44  ;;  %8177 = vmatprep.subr.mxu0 %v6825_v38  ;;  %v5514_v44 = vld [vmem:[#allocation2] sm:$0xff] }
 0xe6f   :  { %8178 = vmatpush3.msra.mxu0 %v6825_v38 }
 0xe70   :  { %8223 = vmatprep.subr.mxu0 %v6832_v9 }
 0xf1a   :  { %v8129_v55 = vpop.f32.mrf.mxu0 }
 0xf1b   :  { %v5239_v4 = vadd.f32 %v8129_v55, %v5130_v53 }
 0xf1c   :  { %v5233_v11 = vpop.f32.mrf.mxu0 }
 0xf1d   :  { %v9926_v13 = vadd.f32 %v5239_v4, %v4367_v50  ;;  %v5234_v20 = vadd.f32 %v5233_v11, %v5130_v53 }
 0xf1e   :  { %v8132_v12 = vpop.f32.mrf.mxu0 }
 0xf1f   :  { %v9928_v6 = vadd.f32 %v5234_v20, %v4366_v58  ;;  %8153 = vmatprep.mubr.msk.f32.mxu1 %vm1564_vm7, %v5234_v20  ;;  %v5249_v22 = vadd.f32 %v8132_v12, %v5130_v53 }
 0xf20   :  { %8154 = vmatmul.mubr.msk.f32.vlgmr.msra.gmra.mxu1 %vm1564_vm7, %v5239_v4  ;;  %v5243_v43 = vpop.f32.mrf.mxu0 }
 0xf21   :  { %v9936_v0 = vadd.f32 %v5249_v22, %v4369_v3  ;;  %v5244_v19 = vadd.f32 %v5243_v43, %v5130_v53  ;;  %8198 = vmatpush3.msra.mxu1 %v6824_v49 }
 0xf22   :  { %v8135_v56 = vpop.f32.mrf.mxu0  ;;  %8199 = vmatprep.subr.mxu1 %v6823_v36 }
 0xf23   :  { %v9940_v30 = vadd.f32 %v5244_v19, %v4368_v10  ;;  %v5259_v7 = vadd.f32 %v8135_v56, %v5130_v53  ;;  %8156 = vmatprep.mubr.msk.f32.mxu1 %vm1564_vm7, %v5244_v19  ;;  %8200 = vmatpush3.msra.mxu1 %v6823_v36 }
 0xf24   :  { %v5253_v28 = vpop.f32.mrf.mxu0  ;;  %8157 = vmatmul.mubr.msk.f32.gmra.mxu1 %vm1564_vm7, %v5249_v22  ;;  %8201 = vmatprep.subr.mxu1 %v6822_v18 }
 0xf25   :  { %v9946_v54 = vadd.f32 %v5259_v7, %v4371_v37  ;;  %v5254_v45 = vadd.f32 %v5253_v28, %v5130_v53  ;;  %8202 = vmatpush3.msra.mxu1 %v6822_v18 }
 0xf26   :  { %v8138_v14 = vpop.f32.mrf.mxu0  ;;  %8203 = vmatprep.subr.mxu1 %v6821_v60 }
 0xf27   :  { %v9950_v41 = vadd.f32 %v5254_v45, %v4370_v15  ;;  %v5269_v59 = vadd.f32 %v8138_v14, %v5130_v53  ;;  %8159 = vmatprep.mubr.msk.f32.mxu1 %vm1564_vm7, %v5254_v45  ;;  %8204 = vmatpush3.msra.mxu1 %v6821_v60 }
 0xf28   :  { %v5263_v25 = vpop.f32.mrf.mxu0  ;;  %8160 = vmatmul.mubr.msk.f32.gmra.mxu1 %vm1564_vm7, %v5259_v7 }
 0xf29   :  { %v9956_v32 = vadd.f32 %v5269_v59, %v4373_v34  ;;  %v5264_v47 = vadd.f32 %v5263_v25, %v5130_v53  ;;  %v6831_v34 = vld [vmem:[%s10220_s14 + $0x250] sm:$0xff] }
 0xf2a   :  { %v8141_v31 = vpop.f32.mrf.mxu0 }
 0xf2b   :  { %v9960_v2 = vadd.f32 %v5264_v47, %v4372_v62  ;;  %v5279_v61 = vadd.f32 %v8141_v31, %v5130_v53  ;;  %8162 = vmatprep.mubr.msk.f32.mxu1 %vm1564_vm7, %v5264_v47  ;;  %v6830_v47 = vld [vmem:[%s10220_s14 + $0x248] sm:$0xff] }
 0xf2c   :  { %v5273_v16 = vpop.f32.mrf.mxu0  ;;  %8163 = vmatmul.mubr.msk.f32.gmra.mxu1 %vm1564_vm7, %v5269_v59 }
 0xf2d   :  { %v9966_v8 = vadd.f32 %v5279_v61, %v4375_v46  ;;  %v5274_v24 = vadd.f32 %v5273_v16, %v5130_v53 }
 0xf2e   :  { %v8144_v33 = vpop.f32.mrf.mxu0 }
 0xf2f   :  { %v9970_v48 = vadd.f32 %v5274_v24, %v4374_v42  ;;  %v5289_v1 = vadd.f32 %v8144_v33, %v5130_v53  ;;  %8165 = vmatprep.mubr.msk.f32.mxu1 %vm1564_vm7, %v5274_v24  ;;  %v6829_v42 = vld [vmem:[%s10220_s14 + $0x240] sm:$0xff] }
 0xf30   :  { %v5283_v17 = vpop.f32.mrf.mxu0  ;;  %8166 = vmatmul.mubr.msk.f32.gmra.mxu1 %vm1564_vm7, %v5279_v61 }
 0xf31   :  { %v9976_v52 = vadd.f32 %v5289_v1, %v4377_v26  ;;  %v5284_v63 = vadd.f32 %v5283_v17, %v5130_v53 }
 0xf33   :  { %v9978_v35 = vadd.f32 %v5284_v63, %v4376_v27  ;;  %8168 = vmatprep.mubr.msk.f32.mxu1 %vm1564_vm7, %v5284_v63 }
 0xf34   :  { %8169 = vmatmul.mubr.msk.f32.gmra.mxu1 %vm1564_vm7, %v5289_v1 }
 0xf35   :  { %8205 = vmatprep.mubr.msk.f32.mxu1 %vm1564_vm7, %v5514_v44 }
 0xfe0   :  { %v8155_v53 = vpop.f32.mrf.mxu1 }
 0xfe1   :  { %v5439_v55 = vadd.f32 %v8155_v53, %v5330_v5 }
 0xfe2   :  { %v5433_v50 = vpop.f32.mrf.mxu1 }
 0xfe3   :  { %8453 = vtanh.f32 %v5439_v55  ;;  %v5434_v4 = vadd.f32 %v5433_v50, %v5330_v5  ;;  %v5526_v55 = vld [vmem:[#allocation2 + $0x60] sm:$0xff]  ;;  %v5527_v50 = vld [vmem:[#allocation2 + $0x68] sm:$0xff] }
 0xfe4   :  { %v8158_v11 = vpop.f32.mrf.mxu1 }
 0xfe5   :  { %8455 = vtanh.f32 %v5434_v4  ;;  %v5449_v58 = vadd.f32 %v8158_v11, %v5330_v5  ;;  %v6836_v4 = vld [vmem:[%s10220_s14 + $0x278] sm:$0xff]  ;;  %v6835_v11 = vld [vmem:[%s10220_s14 + $0x270] sm:$0xff] }
 0xfe6   :  { %v5443_v20 = vpop.f32.mrf.mxu1  ;;  %8249 = vmatprep.subr.mxu1 %v6836_v4 }
 0xfe7   :  { %8457 = vtanh.f32 %v5449_v58  ;;  %v5444_v12 = vadd.f32 %v5443_v20, %v5330_v5  ;;  %v6834_v58 = vld [vmem:[%s10220_s14 + $0x268] sm:$0xff]  ;;  %v6833_v20 = vld [vmem:[%s10220_s14 + $0x260] sm:$0xff] }
 0xfe8   :  { %v8161_v3 = vpop.f32.mrf.mxu1 }
 0xfe9   :  { %8459 = vtanh.f32 %v5444_v12  ;;  %v5459_v22 = vadd.f32 %v8161_v3, %v5330_v5  ;;  %v6237_v12 = vld [vmem:[%s10222_s16 + $0x18] sm:$0xff] }
 0xfea   :  { %v5453_v43 = vpop.f32.mrf.mxu1 }
 0xfeb   :  { %v5454_v10 = vadd.f32 %v5453_v43, %v5330_v5 }
 0xfec   :  { %v8164_v19 = vpop.f32.mrf.mxu1 }
 0xfed   :  { %8461 = vtanh.f32 %v5454_v10  ;;  %v5469_v56 = vadd.f32 %v8164_v19, %v5330_v5 }
 0xfee   :  { %8463 = vtanh.f32 %v5459_v22  ;;  %v5463_v29 = vpop.f32.mrf.mxu1 }
 0xfef   :  { %8465 = vtanh.f32 %v5469_v56  ;;  %v5464_v7 = vadd.f32 %v5463_v29, %v5330_v5 }
 0xff0   :  { %v8454_v37 = vpop.eup %8453  ;;  %v8167_v28 = vpop.f32.mrf.mxu1 }
 0xff1   :  { %5505 = vst.msk [vmem:[#allocation2 + $0x10] sm:$0xff] %vm1564_vm7, %v8454_v37  ;;  %8467 = vtanh.f32 %v5464_v7  ;;  %v5479_v45 = vadd.f32 %v8167_v28, %v5330_v5 }
 0xff2   :  { %v8456_v15 = vpop.eup %8455  ;;  %v5473_v14 = vpop.f32.mrf.mxu1 }
 0xff3   :  { %5504 = vst.msk [vmem:[#allocation2 + $0x8] sm:$0xff] %vm1564_vm7, %v8456_v15  ;;  %8179 = vmatprep.mubr.msk.f32.mxu0 %vm1564_vm7, %v8456_v15  ;;  %8469 = vtanh.f32 %v5479_v45  ;;  %v5474_v59 = vadd.f32 %v5473_v14, %v5330_v5 }
 0xff4   :  { %8180 = vmatmul.mubr.msk.f32.vlgmr.msra.gmra.mxu0 %vm1564_vm7, %v8454_v37  ;;  %v8458_v25 = vpop.eup %8457  ;;  %v8170_v62 = vpop.f32.mrf.mxu1 }
 0xff5   :  { %8224 = vmatpush3.msra.mxu0 %v6832_v9  ;;  %5507 = vst.msk [vmem:[#allocation2 + $0x20] sm:$0xff] %vm1564_vm7, %v8458_v25  ;;  %8471 = vtanh.f32 %v5474_v59  ;;  %v5489_v46 = vadd.f32 %v8170_v62, %v5330_v5 }
 0xff6   :  { %8225 = vmatprep.subr.mxu0 %v6831_v34  ;;  %v8460_v31 = vpop.eup %8459  ;;  %v5483_v61 = vpop.f32.mrf.mxu1 }
 0xff7   :  { %8226 = vmatpush3.msra.mxu0 %v6831_v34  ;;  %5506 = vst.msk [vmem:[#allocation2 + $0x18] sm:$0xff] %vm1564_vm7, %v8460_v31  ;;  %v5484_v16 = vadd.f32 %v5483_v61, %v5330_v5  ;;  %8182 = vmatprep.mubr.msk.f32.mxu0 %vm1564_vm7, %v8460_v31  ;;  %v10092_v61 = vrot.slane %v10013_v21, %v9478_v23 }
 0xff8   :  { %8227 = vmatprep.subr.mxu0 %v6830_v47  ;;  %8183 = vmatmul.mubr.msk.f32.gmra.mxu0 %vm1564_vm7, %v8458_v25  ;;  %v5516_v26 = vld [vmem:[#allocation2 + $0x10] sm:$0xff] }
 0xff9   :  { %8473 = vtanh.f32 %v5484_v16  ;;  %8228 = vmatpush3.msra.mxu0 %v6830_v47 }
 0xffa   :  { %v5515_v24 = vld [vmem:[#allocation2 + $0x8] sm:$0xff]  ;;  %v8462_v33 = vpop.eup %8461  ;;  %8475 = vtanh.f32 %v5489_v46  ;;  %8229 = vmatprep.subr.mxu0 %v6829_v42 }
 0xffb   :  { %8206 = vmatmul.mubr.msk.f32.vlgmr.msra.gmra.mxu1 %vm1564_vm7, %v5515_v24  ;;  %v8464_v1 = vpop.eup %8463  ;;  %5508 = vst.msk [vmem:[#allocation2 + $0x28] sm:$0x1] %vm2653_vm9, %v8462_v33  ;;  %8185 = vmatprep.mubr.msk.f32.mxu0 %vm1564_vm7, %v8462_v33 }
 0xffc   :  { %8208 = vmatprep.mubr.msk.f32.mxu1 %vm1564_vm7, %v5516_v26  ;;  %v8466_v17 = vpop.eup %8465  ;;  %8186 = vmatmul.mubr.msk.f32.gmra.mxu0 %vm1564_vm7, %v8464_v1  ;;  %v5518_v57 = vld [vmem:[#allocation2 + $0x20] sm:$0xff] }
 0xffd   :  { %5510 = vst.msk [vmem:[#allocation2 + $0x40] sm:$0xff] %vm1564_vm7, %v8466_v17  ;;  %8230 = vmatpush3.msra.mxu0 %v6829_v42  ;;  %8250 = vmatpush3.msra.mxu1 %v6836_v4 }
 0xffe   :  { %v8468_v27 = vpop.eup %8467  ;;  %v5517_v63 = vld [vmem:[#allocation2 + $0x18] sm:$0xff]  ;;  %8251 = vmatprep.subr.mxu1 %v6835_v11  ;;  %8275 = vmatprep.subr.mxu0 %v6237_v12 }
 0xfff   :  { %5509 = vst.msk [vmem:[#allocation2 + $0x38] sm:$0xff] %vm1564_vm7, %v8468_v27  ;;  %8188 = vmatprep.mubr.msk.f32.mxu0 %vm1564_vm7, %v8468_v27  ;;  %8209 = vmatmul.mubr.msk.f32.gmra.mxu1 %vm1564_vm7, %v5517_v63 }
0x1000   :  { %v8470_v39 = vpop.eup %8469  ;;  %8189 = vmatmul.mubr.msk.f32.gmra.mxu0 %vm1564_vm7, %v8466_v17  ;;  %8211 = vmatprep.mubr.msk.f32.mxu1 %vm1564_vm7, %v5518_v57 }
0x1001   :  { %5512 = vst.msk [vmem:[#allocation2 + $0x50] sm:$0xff] %vm1564_vm7, %v8470_v39  ;;  %8252 = vmatpush3.msra.mxu1 %v6835_v11 }
0x1002   :  { %v8472_v38 = vpop.eup %8471  ;;  %v5519_v49 = vld [vmem:[#allocation2 + $0x28] sm:$0xff]  ;;  %8253 = vmatprep.subr.mxu1 %v6834_v58 }
0x1003   :  { %5511 = vst.msk [vmem:[#allocation2 + $0x48] sm:$0xff] %vm1564_vm7, %v8472_v38  ;;  %8191 = vmatprep.mubr.msk.f32.mxu0 %vm1564_vm7, %v8472_v38  ;;  %8212 = vmatmul.mubr.msk.f32.gmra.mxu1 %vm1564_vm7, %v5519_v49 }
0x1004   :  { %8192 = vmatmul.mubr.msk.f32.gmra.mxu0 %vm1564_vm7, %v8470_v39  ;;  %8214 = vmatprep.mubr.msk.f32.mxu1 %vm1564_vm7, %v5520_v51  ;;  %v5522_v44 = vld [vmem:[#allocation2 + $0x40] sm:$0xff] }
0x1005   :  { %8254 = vmatpush3.msra.mxu1 %v6834_v58 }
0x1006   :  { %v8474_v36 = vpop.eup %8473  ;;  %v5521_v18 = vld [vmem:[#allocation2 + $0x38] sm:$0xff]  ;;  %8255 = vmatprep.subr.mxu1 %v6833_v20 }
0x1007   :  { %v8476_v60 = vpop.eup %8475  ;;  %5513 = vst.msk [vmem:[#allocation2 + $0x58] sm:$0x1] %vm2653_vm9, %v8474_v36  ;;  %8194 = vmatprep.mubr.msk.f32.mxu0 %vm1564_vm7, %v8474_v36  ;;  %8215 = vmatmul.mubr.msk.f32.gmra.mxu1 %vm1564_vm7, %v5521_v18 }
0x1008   :  { %8195 = vmatmul.mubr.msk.f32.gmra.mxu0 %vm1564_vm7, %v8476_v60  ;;  %8217 = vmatprep.mubr.msk.f32.mxu1 %vm1564_vm7, %v5522_v44  ;;  %v5524_v5 = vld [vmem:[#allocation2 + $0x50] sm:$0xff] }
0x1009   :  { %8231 = vmatprep.mubr.msk.f32.mxu0 %vm1564_vm7, %v5516_v26  ;;  %8256 = vmatpush3.msra.mxu1 %v6833_v20 }
0x100a   :  { %v5523_v9 = vld [vmem:[#allocation2 + $0x48] sm:$0xff] }
0x100b   :  { %8218 = vmatmul.mubr.msk.f32.gmra.mxu1 %vm1564_vm7, %v5523_v9 }
0x100c   :  { %8220 = vmatprep.mubr.msk.f32.mxu1 %vm1564_vm7, %v5524_v5  ;;  %8232 = vmatmul.mubr.msk.f32.vlgmr.msra.gmra.mxu0 %vm1564_vm7, %v5517_v63 }
0x100d   :  { %8234 = vmatprep.mubr.msk.f32.mxu0 %vm1564_vm7, %v5518_v57  ;;  %8276 = vmatpush3.msra.mxu0 %v6237_v12 }
0x100e   :  { %v5525_v53 = vld [vmem:[#allocation2 + $0x58] sm:$0xff] }
0x100f   :  { %8221 = vmatmul.mubr.msk.f32.gmra.mxu1 %vm1564_vm7, %v5525_v53 }
0x1010   :  { %8235 = vmatmul.mubr.msk.f32.gmra.mxu0 %vm1564_vm7, %v5519_v49 }
0x1011   :  { %8237 = vmatprep.mubr.msk.f32.mxu0 %vm1564_vm7, %v5520_v51 }
0x1014   :  { %8238 = vmatmul.mubr.msk.f32.gmra.mxu0 %vm1564_vm7, %v5521_v18 }
0x1015   :  { %8240 = vmatprep.mubr.msk.f32.mxu0 %vm1564_vm7, %v5522_v44 }
0x1018   :  { %8241 = vmatmul.mubr.msk.f32.gmra.mxu0 %vm1564_vm7, %v5523_v9 }
0x1019   :  { %8243 = vmatprep.mubr.msk.f32.mxu0 %vm1564_vm7, %v5524_v5 }
0x101c   :  { %8244 = vmatmul.mubr.msk.f32.gmra.mxu0 %vm1564_vm7, %v5525_v53 }
0x101d   :  { %8246 = vmatprep.mubr.msk.f32.mxu0 %vm1564_vm7, %v5526_v55 }
0x1020   :  { %8247 = vmatmul.mubr.msk.f32.gmra.mxu0 %vm1564_vm7, %v5527_v50 }
0x10b4   :  { %v8181_v3 = vpop.f32.mrf.mxu0 }
0x10b6   :  { %v5630_v22 = vpop.f32.mrf.mxu0 }
0x10b8   :  { %v8184_v43 = vpop.f32.mrf.mxu0 }
0x10ba   :  { %v5640_v10 = vpop.f32.mrf.mxu0 }
0x10bb   :  { %v8207_v19 = vpop.f32.mrf.mxu1 }
0x10bc   :  { %v8187_v56 = vpop.f32.mrf.mxu0  ;;  %v5797_v31 = vadd.f32 %v8207_v19, %v8181_v3 }
0x10bd   :  { %v5791_v29 = vpop.f32.mrf.mxu1 }
0x10be   :  { %v5650_v37 = vpop.f32.mrf.mxu0  ;;  %v5792_v42 = vadd.f32 %v5791_v29, %v5630_v22 }
0x10bf   :  { %v8210_v7 = vpop.f32.mrf.mxu1 }
0x10c0   :  { %v8190_v28 = vpop.f32.mrf.mxu0  ;;  %v5807_v26 = vadd.f32 %v8210_v7, %v8184_v43 }
0x10c1   :  { %v5801_v15 = vpop.f32.mrf.mxu1 }
0x10c2   :  { %v5660_v45 = vpop.f32.mrf.mxu0  ;;  %v5802_v57 = vadd.f32 %v5801_v15, %v5640_v10 }
0x10c3   :  { %v8213_v14 = vpop.f32.mrf.mxu1 }
0x10c4   :  { %v8193_v34 = vpop.f32.mrf.mxu0  ;;  %v5817_v49 = vadd.f32 %v8213_v14, %v8187_v56 }
0x10c5   :  { %v5811_v25 = vpop.f32.mrf.mxu1 }
0x10c6   :  { %v5670_v59 = vpop.f32.mrf.mxu0  ;;  %v5812_v9 = vadd.f32 %v5811_v25, %v5650_v37 }
0x10c7   :  { %v8216_v46 = vpop.f32.mrf.mxu1 }
0x10c8   :  { %v10086_v62 = vpop.f32.mrf.mxu0  ;;  %v5827_v4 = vadd.f32 %v8216_v46, %v8190_v28 }
0x10c9   :  { %v5821_v1 = vpop.f32.mrf.mxu1 }
0x10ca   :  { %v10088_v47 = vpop.f32.mrf.mxu0  ;;  %v5822_v22 = vadd.f32 %v5821_v1, %v5660_v45 }
0x10cb   :  { %v8219_v18 = vpop.f32.mrf.mxu1 }
0x10cc   :  { %v8233_v16 = vpop.f32.mrf.mxu0  ;;  %v5837_v29 = vadd.f32 %v8219_v18, %v8193_v34 }
0x10cd   :  { %v5982_v24 = vadd.f32 %v8233_v16, %v5797_v31  ;;  %v5831_v58 = vpop.f32.mrf.mxu1 }
0x10ce   :  { %v5922_v33 = vpop.f32.mrf.mxu0  ;;  %v5832_v25 = vadd.f32 %v5831_v58, %v5670_v59 }
0x10cf   :  { %v5998_v17 = vadd.f32 %v10092_v61, %v5982_v24  ;;  %v5981_v27 = vadd.f32 %v5922_v33, %v5792_v42  ;;  %v8222_v7 = vpop.f32.mrf.mxu1 }
0x10d0   :  { %v8236_v63 = vpop.f32.mrf.mxu0 }
0x10d1   :  { %v6010_v39 = vmul.f32 0.5, %v5998_v17  ;;  %v5997_v51 = vadd.f32 %v10092_v61, %v5981_v27  ;;  %v5984_v38 = vadd.f32 %v8236_v63, %v5807_v26  ;;  %v5841_v24 = vpop.f32.mrf.mxu1  ;;  %v5847_v17 = vadd.f32 %v8222_v7, %v10086_v62 }
0x10d2   :  { %v5932_v36 = vpop.f32.mrf.mxu0 }
0x10d3   :  { %8477 = vtanh.f32 %v6010_v39  ;;  %v6009_v23 = vmul.f32 0.5, %v5997_v51  ;;  %v6000_v60 = vadd.f32 %v10092_v61, %v5984_v38  ;;  %v5983_v44 = vadd.f32 %v5932_v36, %v5802_v57 }
0x10d4   :  { %v8239_v5 = vpop.f32.mrf.mxu0  ;;  %v5842_v51 = vadd.f32 %v5841_v24, %v10088_v47 }
0x10d5   :  { %8479 = vtanh.f32 %v6009_v23  ;;  %v6012_v53 = vmul.f32 0.5, %v6000_v60  ;;  %v5999_v55 = vadd.f32 %v10092_v61, %v5983_v44  ;;  %v5986_v50 = vadd.f32 %v8239_v5, %v5817_v49 }
0x10d6   :  { %v5942_v11 = vpop.f32.mrf.mxu0 }
0x10d7   :  { %8481 = vtanh.f32 %v6012_v53  ;;  %v6011_v20 = vmul.f32 0.5, %v5999_v55  ;;  %v6002_v12 = vadd.f32 %v10092_v61, %v5986_v50  ;;  %v5985_v3 = vadd.f32 %v5942_v11, %v5812_v9 }
0x10d8   :  { %v8242_v43 = vpop.f32.mrf.mxu0 }
0x10d9   :  { %8483 = vtanh.f32 %v6011_v20  ;;  %v6014_v10 = vmul.f32 0.5, %v6002_v12  ;;  %v6001_v19 = vadd.f32 %v10092_v61, %v5985_v3  ;;  %v5988_v56 = vadd.f32 %v8242_v43, %v5827_v4 }
0x10da   :  { %v5952_v37 = vpop.f32.mrf.mxu0 }
0x10db   :  { %8485 = vtanh.f32 %v6014_v10  ;;  %v6013_v15 = vmul.f32 0.5, %v6001_v19  ;;  %v6004_v28 = vadd.f32 %v10092_v61, %v5988_v56  ;;  %v5987_v14 = vadd.f32 %v5952_v37, %v5822_v22 }
0x10dc   :  { %v8245_v31 = vpop.f32.mrf.mxu0 }
0x10dd   :  { %8487 = vtanh.f32 %v6013_v15  ;;  %v6016_v46 = vmul.f32 0.5, %v6004_v28  ;;  %v6003_v45 = vadd.f32 %v10092_v61, %v5987_v14  ;;  %v5990_v16 = vadd.f32 %v8245_v31, %v5837_v29 }
0x10de   :  { %v5962_v42 = vpop.f32.mrf.mxu0 }
0x10df   :  { %8489 = vtanh.f32 %v6016_v46  ;;  %v6015_v33 = vmul.f32 0.5, %v6003_v45  ;;  %v6006_v34 = vadd.f32 %v10092_v61, %v5990_v16  ;;  %v5989_v26 = vadd.f32 %v5962_v42, %v5832_v25 }
0x10e0   :  { %v8478_v1 = vpop.eup %8477  ;;  %v8248_v27 = vpop.f32.mrf.mxu0 }
0x10e1   :  { %8491 = vtanh.f32 %v6015_v33  ;;  %v6018_v63 = vmul.f32 0.5, %v6006_v34  ;;  %v6005_v59 = vadd.f32 %v10092_v61, %v5989_v26  ;;  %v6034_v39 = vadd.f32 1.0, %v8478_v1  ;;  %v6236_v26 = vld [vmem:[%s10222_s16 + $0x10] sm:$0xff]  ;;  %v6235_v1 = vld [vmem:[%s10222_s16 + $0x8] sm:$0xff] }
0x10e2   :  { %v8480_v57 = vpop.eup %8479  ;;  %v5992_v38 = vadd.f32 %v8248_v27, %v5847_v17  ;;  %v5972_v49 = vpop.f32.mrf.mxu0  ;;  %8277 = vmatprep.subr.mxu0 %v6236_v26  ;;  %v6234_v17 = vld [vmem:[%s10222_s16] sm:$0xff]  ;;  %v6060_v27 = vrot.slane %v10013_v21, %v9524_v40 }
0x10e3   :  { %v6033_v36 = vadd.f32 1.0, %v8480_v57  ;;  %8493 = vtanh.f32 %v6018_v63  ;;  %v6017_v18 = vmul.f32 0.5, %v6005_v59  ;;  %v5991_v44 = vadd.f32 %v5972_v49, %v5842_v51  ;;  %8278 = vmatpush3.msra.mxu0 %v6236_v26 }
0x10e4   :  { %v8482_v23 = vpop.eup %8481  ;;  %v6008_v60 = vadd.f32 %v10092_v61, %v5992_v38  ;;  %v6046_v5 = vmul.f32 0.5, %v6034_v39  ;;  %8279 = vmatprep.subr.mxu0 %v6235_v1 }
0x10e5   :  { %8495 = vtanh.f32 %v6017_v18  ;;  %v6045_v62 = vmul.f32 0.5, %v6033_v36  ;;  %v6036_v53 = vadd.f32 1.0, %v8482_v23  ;;  %v6007_v50 = vadd.f32 %v10092_v61, %v5991_v44  ;;  %8280 = vmatpush3.msra.mxu0 %v6235_v1 }
0x10e6   :  { %v8484_v9 = vpop.eup %8483  ;;  %v6020_v55 = vmul.f32 0.5, %v6008_v60  ;;  %8281 = vmatprep.subr.mxu0 %v6234_v17 }
0x10e7   :  { %v6035_v4 = vadd.f32 1.0, %v8484_v9  ;;  %8257 = vmatprep.mubr.msk.f32.mxu1 %vm1564_vm7, %v6045_v62  ;;  %v6019_v11 = vmul.f32 0.5, %v6007_v50  ;;  %v6048_v12 = vmul.f32 0.5, %v6036_v53  ;;  %8282 = vmatpush3.msra.mxu0 %v6234_v17 }
0x10e8   :  { %v8486_v47 = vpop.eup %8485  ;;  %8497 = vtanh.f32 %v6020_v55  ;;  %8258 = vmatmul.mubr.msk.f32.vlgmr.msra.gmra.mxu1 %vm1564_vm7, %v6046_v5 }
0x10e9   :  { %v6047_v58 = vmul.f32 0.5, %v6035_v4  ;;  %v6038_v3 = vadd.f32 1.0, %v8486_v47  ;;  %8499 = vtanh.f32 %v6019_v11 }
0x10ea   :  { %v8488_v20 = vpop.eup %8487 }
0x10eb   :  { %v6037_v22 = vadd.f32 1.0, %v8488_v20  ;;  %8260 = vmatprep.mubr.msk.f32.mxu1 %vm1564_vm7, %v6047_v58  ;;  %v6050_v19 = vmul.f32 0.5, %v6038_v3 }
0x10ec   :  { %v8490_v43 = vpop.eup %8489  ;;  %8261 = vmatmul.mubr.msk.f32.gmra.mxu1 %vm1564_vm7, %v6048_v12 }
0x10ed   :  { %v6049_v61 = vmul.f32 0.5, %v6037_v22  ;;  %v6040_v56 = vadd.f32 1.0, %v8490_v43 }
0x10ee   :  { %v8492_v10 = vpop.eup %8491 }
0x10ef   :  { %v6039_v29 = vadd.f32 1.0, %v8492_v10  ;;  %8263 = vmatprep.mubr.msk.f32.mxu1 %vm1564_vm7, %v6049_v61  ;;  %v6052_v28 = vmul.f32 0.5, %v6040_v56 }
0x10f0   :  { %v8494_v37 = vpop.eup %8493  ;;  %8264 = vmatmul.mubr.msk.f32.gmra.mxu1 %vm1564_vm7, %v6050_v19 }
0x10f1   :  { %v6051_v7 = vmul.f32 0.5, %v6039_v29  ;;  %v6042_v14 = vadd.f32 1.0, %v8494_v37 }
0x10f2   :  { %v8496_v15 = vpop.eup %8495 }
0x10f3   :  { %v6041_v25 = vadd.f32 1.0, %v8496_v15  ;;  %8266 = vmatprep.mubr.msk.f32.mxu1 %vm1564_vm7, %v6051_v7  ;;  %v6054_v45 = vmul.f32 0.5, %v6042_v14 }
0x10f4   :  { %8267 = vmatmul.mubr.msk.f32.gmra.mxu1 %vm1564_vm7, %v6052_v28 }
0x10f5   :  { %v8498_v31 = vpop.eup %8497  ;;  %v6053_v46 = vmul.f32 0.5, %v6041_v25 }
0x10f6   :  { %v8500_v16 = vpop.eup %8499  ;;  %v6044_v42 = vadd.f32 1.0, %v8498_v31 }
0x10f7   :  { %8269 = vmatprep.mubr.msk.f32.mxu1 %vm1564_vm7, %v6053_v46  ;;  %v6043_v24 = vadd.f32 1.0, %v8500_v16 }
0x10f8   :  { %8270 = vmatmul.mubr.msk.f32.gmra.mxu1 %vm1564_vm7, %v6054_v45  ;;  %v6056_v34 = vmul.f32 0.5, %v6044_v42 }
0x10f9   :  { %v6055_v33 = vmul.f32 0.5, %v6043_v24 }
0x10fb   :  { %8272 = vmatprep.mubr.msk.f32.mxu1 %vm1564_vm7, %v6055_v33 }
0x10fc   :  { %8273 = vmatmul.mubr.msk.f32.gmra.mxu1 %vm1564_vm7, %v6056_v34 }
0x11a8   :  { %v8259_v63 = vpop.f32.mrf.mxu1 }
0x11a9   :  { %v6169_v59 = vadd.f32 %v8259_v63, %v6060_v27 }
0x11aa   :  { %v6163_v57 = vpop.f32.mrf.mxu1 }
0x11ab   :  { %v6164_v39 = vadd.f32 %v6163_v57, %v6060_v27  ;;  %v6223_v49 = vadd.f32 %v6169_v59, %v9926_v13 }
0x11ac   :  { %v8262_v51 = vpop.f32.mrf.mxu1 }
0x11ad   :  { %v6222_v38 = vadd.f32 %v6164_v39, %v9928_v6  ;;  %v6179_v36 = vadd.f32 %v8262_v51, %v6060_v27 }
0x11ae   :  { %v6173_v18 = vpop.f32.mrf.mxu1 }
0x11af   :  { %v6174_v23 = vadd.f32 %v6173_v18, %v6060_v27  ;;  %8283 = vmatprep.mubr.msk.f32.mxu0 %vm1564_vm7, %v6222_v38  ;;  %v6225_v40 = vadd.f32 %v6179_v36, %v9936_v0 }
0x11b0   :  { %v8265_v60 = vpop.f32.mrf.mxu1  ;;  %8284 = vmatmul.mubr.msk.f32.vlgmr.msra.gmra.mxu0 %vm1564_vm7, %v6223_v49 }
0x11b1   :  { %v6224_v44 = vadd.f32 %v6174_v23, %v9940_v30  ;;  %v6189_v21 = vadd.f32 %v8265_v60, %v6060_v27 }
0x11b2   :  { %v6183_v62 = vpop.f32.mrf.mxu1 }
0x11b3   :  { %v6184_v9 = vadd.f32 %v6183_v62, %v6060_v27  ;;  %8286 = vmatprep.mubr.msk.f32.mxu0 %vm1564_vm7, %v6224_v44  ;;  %v6227_v5 = vadd.f32 %v6189_v21, %v9946_v54 }
0x11b4   :  { %v8268_v6 = vpop.f32.mrf.mxu1  ;;  %8287 = vmatmul.mubr.msk.f32.gmra.mxu0 %vm1564_vm7, %v6225_v40 }
0x11b5   :  { %v6226_v13 = vadd.f32 %v6184_v9, %v9950_v41  ;;  %v6199_v53 = vadd.f32 %v8268_v6, %v6060_v27 }
0x11b6   :  { %v6193_v55 = vpop.f32.mrf.mxu1 }
0x11b7   :  { %v6194_v50 = vadd.f32 %v6193_v55, %v6060_v27  ;;  %8289 = vmatprep.mubr.msk.f32.mxu0 %vm1564_vm7, %v6226_v13  ;;  %v6229_v4 = vadd.f32 %v6199_v53, %v9956_v32 }
0x11b8   :  { %v8271_v30 = vpop.f32.mrf.mxu1  ;;  %8290 = vmatmul.mubr.msk.f32.gmra.mxu0 %vm1564_vm7, %v6227_v5 }
0x11b9   :  { %v6228_v0 = vadd.f32 %v6194_v50, %v9960_v2  ;;  %v6209_v47 = vadd.f32 %v8271_v30, %v6060_v27 }
0x11ba   :  { %v6203_v11 = vpop.f32.mrf.mxu1 }
0x11bb   :  { %v6204_v58 = vadd.f32 %v6203_v11, %v6060_v27  ;;  %8292 = vmatprep.mubr.msk.f32.mxu0 %vm1564_vm7, %v6228_v0  ;;  %v6231_v20 = vadd.f32 %v6209_v47, %v9966_v8 }
0x11bc   :  { %8293 = vmatmul.mubr.msk.f32.gmra.mxu0 %vm1564_vm7, %v6229_v4  ;;  %v8274_v41 = vpop.f32.mrf.mxu1 }
0x11bd   :  { %v6230_v54 = vadd.f32 %v6204_v58, %v9970_v48  ;;  %v6219_v12 = vadd.f32 %v8274_v41, %v6060_v27  ;;  %v6898_v48 = vld [vmem:[%s10223_s17] ss:$0 sm:$0xff] }
0x11be   :  { %v6213_v3 = vpop.f32.mrf.mxu1 }
0x11bf   :  { %8295 = vmatprep.mubr.msk.f32.mxu0 %vm1564_vm7, %v6230_v54  ;;  %v6214_v22 = vadd.f32 %v6213_v3, %v6060_v27  ;;  %v6233_v2 = vadd.f32 %v6219_v12, %v9976_v52 }
0x11c0   :  { %8296 = vmatmul.mubr.msk.f32.gmra.mxu0 %vm1564_vm7, %v6231_v20 }
0x11c1   :  { %v6232_v32 = vadd.f32 %v6214_v22, %v9978_v35 }
0x11c3   :  { %8298 = vmatprep.mubr.msk.f32.mxu0 %vm1564_vm7, %v6232_v32 }
0x11c4   :  { %8299 = vmatmul.mubr.msk.f32.gmra.mxu0 %vm1564_vm7, %v6233_v2 }
0x1270   :  { %v8285_v8 = vpop.f32.mrf.mxu0 }
0x1271   :  { %v6353_v43 = vadd.f32 %v8285_v8, %v6898_v48 }
0x1272   :  { %v6347_v61 = vpop.f32.mrf.mxu0 }
0x1273   :  { %6407 = vst.msk [vmem:[%s10224_s18 + $0x8] sm:$0xff] %vm63_vm1, %v6353_v43  ;;  %v6348_v10 = vadd.f32 %v6898_v48, %v6347_v61 }
0x1274   :  { %v8288_v35 = vpop.f32.mrf.mxu0 }
0x1275   :  { %6406 = vst.msk [vmem:[%s10224_s18] sm:$0xff] %vm63_vm1, %v6348_v10  ;;  %v6363_v52 = vadd.f32 %v8288_v35, %v6898_v48 }
0x1276   :  { %v6357_v19 = vpop.f32.mrf.mxu0 }
0x1277   :  { %6409 = vst.msk [vmem:[%s10224_s18 + $0x18] sm:$0xff] %vm63_vm1, %v6363_v52  ;;  %v6358_v56 = vadd.f32 %v6898_v48, %v6357_v19 }
0x1278   :  { %v8291_v29 = vpop.f32.mrf.mxu0 }
0x1279   :  { %6408 = vst.msk [vmem:[%s10224_s18 + $0x10] sm:$0xff] %vm63_vm1, %v6358_v56  ;;  %v6373_v37 = vadd.f32 %v8291_v29, %v6898_v48 }
0x127a   :  { %v6367_v7 = vpop.f32.mrf.mxu0 }
0x127b   :  { %6411 = vst.msk [vmem:[%s10224_s18 + $0x28] sm:$0xff] %vm63_vm1, %v6373_v37  ;;  %v6368_v15 = vadd.f32 %v6898_v48, %v6367_v7 }
0x127c   :  { %v8294_v28 = vpop.f32.mrf.mxu0 }
0x127d   :  { %6410 = vst.msk [vmem:[%s10224_s18 + $0x20] sm:$0xff] %vm63_vm1, %v6368_v15  ;;  %v6383_v14 = vadd.f32 %v8294_v28, %v6898_v48 }
0x127e   :  { %v6377_v25 = vpop.f32.mrf.mxu0 }
0x127f   :  { %6413 = vst.msk [vmem:[%s10224_s18 + $0x38] sm:$0xff] %vm63_vm1, %v6383_v14  ;;  %v6378_v31 = vadd.f32 %v6898_v48, %v6377_v25 }
0x1280   :  { %v8297_v46 = vpop.f32.mrf.mxu0 }
0x1281   :  { %6412 = vst.msk [vmem:[%s10224_s18 + $0x30] sm:$0xff] %vm63_vm1, %v6378_v31  ;;  %v6393_v45 = vadd.f32 %v8297_v46, %v6898_v48 }
0x1282   :  { %v6387_v16 = vpop.f32.mrf.mxu0 }
0x1283   :  { %6415 = vst.msk [vmem:[%s10224_s18 + $0x48] sm:$0xff] %vm63_vm1, %v6393_v45  ;;  %v6388_v42 = vadd.f32 %v6898_v48, %v6387_v16 }
0x1284   :  { %v8300_v24 = vpop.f32.mrf.mxu0 }
0x1285   :  { %6414 = vst.msk [vmem:[%s10224_s18 + $0x40] sm:$0xff] %vm63_vm1, %v6388_v42  ;;  %v6403_v33 = vadd.f32 %v8300_v24, %v6898_v48 }
0x1286   :  { %v6397_v34 = vpop.f32.mrf.mxu0 }
0x1287   :  { %6417 = vst.msk [vmem:[%s10224_s18 + $0x58] sm:$0xff] %vm63_vm1, %v6403_v33  ;;  %v6398_v26 = vadd.f32 %v6898_v48, %v6397_v34 }
0x1289   :  { %6416 = vst.msk [vmem:[%s10224_s18 + $0x50] sm:$0xff] %vm63_vm1, %v6398_v26 }

</bundles_post_ra>
